<compile_context>
chip_gen: v6e
topology: v6e:2x2x1
jax: 0.10.0
libtpu: 0.0.40
codegen_flags: <defaults>
</compile_context>

<pallas_src>
import jax
import jax.numpy as jnp
from jax.experimental import pallas as pl
from jax.experimental.pallas import tpu as pltpu


# ----------------------------- fixed geometry ------------------------------
IN_H = IN_W = 32     # input spatial size
STEM_HW = 16         # stem conv output spatial size
POOL_HW = 8          # maxpool / block-1 spatial size
B2_HW = 4            # block-2 spatial size
STEM_C = 16
S1_C = 16
S2_C = 32
K_STEM = 256         # 7*7*3 = 147, zero-padded to 256 (lane/K aligned)
K_B1 = 9 * S1_C      # 144
K_B2C1 = 9 * S1_C    # 144
K_B2C2 = 9 * S2_C    # 288


def _grid_batch(n):
    """Number of programs (grid length) and per-program batch tile."""
    num_prog = 2 if (n % 2 == 0 and n >= 2) else 1   # feed both v7x TCs
    return num_prog, n // num_prog


def _parallel_params():
    return pltpu.CompilerParams(dimension_semantics=("parallel",))


# ---------------------------------------------------------------------------
# Kernel 1: stem conv (1 matmul) + ReLU + MaxPool3x3/s2/p1 + BasicBlock-1
# ---------------------------------------------------------------------------

def _stem_pool_block1_kernel(patches_ref, ws_ref, bs_ref, w11_ref, b11_ref,
                             w12_ref, b12_ref, o_ref, canvas, lhs_ref):
    bt = o_ref.shape[0]
    hw = POOL_HW
    c = S1_C

    # ---- stem: single (bt*256, 256) x (256, 16) matmul, rows phase-ordered
    lhs = patches_ref[...].reshape(bt * 4 * hw * hw, K_STEM)
    y = jnp.dot(lhs, ws_ref[...], preferred_element_type=jnp.float32)
    y = jnp.maximum(y + bs_ref[...], 0.0)
    y = y.reshape(bt, 4, hw * hw, c)                  # phases (2p+q, r*8+c, :)
    p00 = y[:, 0].reshape(bt, hw, hw, c)
    p01 = y[:, 1].reshape(bt, hw, hw, c)
    p10 = y[:, 2].reshape(bt, hw, hw, c)
    p11 = y[:, 3].reshape(bt, hw, hw, c)

    # ---- maxpool 3x3/s2/p1, assembled straight into the zero-padded canvas.
    # pooled[r,c] = max of 9 phase contributions; shifted (r-1 / c-1) terms
    # only touch the sub-rectangle where they are valid (post-ReLU >= 0, so
    # the untouched border behaves like zero padding -- same result as -inf).
    canvas[...] = jnp.zeros(canvas.shape, canvas.dtype)
    canvas[:, 1:hw + 1, 1:hw + 1, :] = jnp.maximum(jnp.maximum(p00, p01),
                                                   jnp.maximum(p10, p11))
    canvas[:, 1:hw + 1, 2:hw + 1, :] = jnp.maximum(
        canvas[:, 1:hw + 1, 2:hw + 1, :],
        jnp.maximum(p01[:, :, :hw - 1, :], p11[:, :, :hw - 1, :]))
    canvas[:, 2:hw + 1, 1:hw + 1, :] = jnp.maximum(
        canvas[:, 2:hw + 1, 1:hw + 1, :],
        jnp.maximum(p10[:, :hw - 1, :, :], p11[:, :hw - 1, :, :]))
    canvas[:, 2:hw + 1, 2:hw + 1, :] = jnp.maximum(
        canvas[:, 2:hw + 1, 2:hw + 1, :], p11[:, :hw - 1, :hw - 1, :])
    pooled = canvas[:, 1:hw + 1, 1:hw + 1, :].reshape(bt * hw * hw, c)  # f32

    def conv3x3(w_ref, b_ref):
        # in-VMEM im2col: concatenate the 9 taps along K, one matmul per conv
        for k in range(9):
            i, j = divmod(k, 3)
            win = canvas[:, i:i + hw, j:j + hw, :]
            lhs_ref[:, k * c:(k + 1) * c] = (
                win.reshape(bt * hw * hw, c).astype(lhs_ref.dtype))
        acc = jnp.dot(lhs_ref[...], w_ref[...],
                      preferred_element_type=jnp.float32)
        return acc + b_ref[...]

    # ---- BasicBlock-1 (stride 1, no downsample)
    h1 = jnp.maximum(conv3x3(w11_ref, b11_ref), 0.0)           # (bt*64, 16)
    canvas[:, 1:hw + 1, 1:hw + 1, :] = h1.reshape(bt, hw, hw, c)  # border = 0
    out = jnp.maximum(conv3x3(w12_ref, b12_ref) + pooled, 0.0)
    o_ref[...] = out.reshape(bt, hw * hw, c).astype(o_ref.dtype)


def stem_pool_block1_forward(x_nhwc, ws, bs, w11, b11, w12, b12):
    n, h, w, cin = x_nhwc.shape
    assert (h, w) == (IN_H, IN_W), "fixed-geometry kernel expects 32x32 input"
    assert 49 * cin <= K_STEM
    num_prog, bt = _grid_batch(n)

    # Stem im2col in JAX (only ~128 KB/sample bf16).  Rows are ordered
    # phase-major: (p, q, r, c) with stem-output position (2r+p, 2c+q), so the
    # kernel-side maxpool / stride-2 handling needs only stride-1 slices.
    xp = jnp.pad(x_nhwc, ((0, 0), (3, 3), (3, 3), (0, 0)))
    taps = [xp[:, i:i + 2 * STEM_HW - 1:2, j:j + 2 * STEM_HW - 1:2, :]
            for i in range(7) for j in range(7)]
    patches = jnp.concatenate(taps, axis=-1)                 # (n, 16, 16, 147)
    patches = patches.reshape(n, POOL_HW, 2, POOL_HW, 2, 49 * cin)
    patches = patches.transpose(0, 2, 4, 1, 3, 5)            # (n, p, q, r, c, K)
    patches = patches.reshape(n, 4 * POOL_HW * POOL_HW, 49 * cin)
    patches = jnp.pad(patches, ((0, 0), (0, 0), (0, K_STEM - 49 * cin)))
    patches = patches.astype(jnp.bfloat16)

    out = pl.pallas_call(
        _stem_pool_block1_kernel,
        grid=(num_prog,),
        in_specs=[
            pl.BlockSpec((bt, 4 * POOL_HW * POOL_HW, K_STEM),
                         lambda b: (b, 0, 0)),
            pl.BlockSpec((K_STEM, STEM_C), lambda b: (0, 0)),
            pl.BlockSpec((1, STEM_C), lambda b: (0, 0)),
            pl.BlockSpec((K_B1, S1_C), lambda b: (0, 0)),
            pl.BlockSpec((1, S1_C), lambda b: (0, 0)),
            pl.BlockSpec((K_B1, S1_C), lambda b: (0, 0)),
            pl.BlockSpec((1, S1_C), lambda b: (0, 0)),
        ],
        out_specs=pl.BlockSpec((bt, POOL_HW * POOL_HW, S1_C),
                               lambda b: (b, 0, 0)),
        out_shape=jax.ShapeDtypeStruct((n, POOL_HW * POOL_HW, S1_C),
                                       jnp.bfloat16),
        scratch_shapes=[
            pltpu.VMEM((bt, POOL_HW + 2, POOL_HW + 2, S1_C), jnp.float32),
            pltpu.VMEM((bt * POOL_HW * POOL_HW, K_B1), jnp.bfloat16),
        ],
        compiler_params=_parallel_params(),
    )(patches, ws, bs, w11, b11, w12, b12)
    return out.reshape(n, POOL_HW, POOL_HW, S1_C)


# ---------------------------------------------------------------------------
# Kernel 2: BasicBlock-2 (stride 2, 1x1 downsample) + global-avg-pool + FC
# ---------------------------------------------------------------------------

def _block2_head_kernel(patches_ref, w21_ref, b21_ref, wd_ref, bd_ref,
                        w22_ref, b22_ref, wf_ref, bf_ref, o_ref,
                        canvas, lhs_ref):
    bt = o_ref.shape[0]
    hw = B2_HW
    c = S2_C
    m = bt * hw * hw

    # ---- conv1 3x3/s2/p1: single matmul over the JAX-built patch matrix.
    lhs1 = patches_ref[...].reshape(m, K_B2C1)
    h1 = jnp.dot(lhs1, w21_ref[...], preferred_element_type=jnp.float32)
    h1 = jnp.maximum(h1 + b21_ref[...], 0.0)                     # (m, 32)

    # ---- 1x1/s2 downsample (+BN): its input is exactly the centre tap (1,1)
    ctr = lhs1[:, 4 * S1_C:5 * S1_C]
    ident = jnp.dot(ctr, wd_ref[...],
                    preferred_element_type=jnp.float32) + bd_ref[...]

    # ---- conv2 3x3/s1/p1: zero-padded canvas + in-VMEM im2col, one matmul.
    canvas[...] = jnp.zeros(canvas.shape, canvas.dtype)
    h1r = h1.reshape(bt, hw * hw, c)
    for r in range(hw):                     # (8,128)-friendly per-row copies
        canvas[:, r + 1, 1:hw + 1, :] = h1r[:, r * hw:(r + 1) * hw, :]
    for k in range(9):
        i, j = divmod(k, 3)
        for r in range(hw):
            lhs_ref[:, r * hw:(r + 1) * hw, k * c:(k + 1) * c] = (
                canvas[:, r + i, j:j + hw, :].astype(lhs_ref.dtype))
    acc = jnp.dot(lhs_ref[...].reshape(m, K_B2C2), w22_ref[...],
                  preferred_element_type=jnp.float32)
    out = jnp.maximum(acc + b22_ref[...] + ident, 0.0)            # (m, 32)

    # ---- global average pool + fully-connected head (whole-map, no loops)
    gap = jnp.sum(out.reshape(bt, hw * hw, c), axis=1) * (1.0 / (hw * hw))
    logits = jnp.dot(gap, wf_ref[...], preferred_element_type=jnp.float32)
    o_ref[:, 0, :] = (logits + bf_ref[...]).astype(o_ref.dtype)


def block2_head_forward(x1, w21, b21, wd, bd, w22, b22, wf, bf):
    n = x1.shape[0]
    classes = wf.shape[1]
    num_prog, bt = _grid_batch(n)

    # Stride-2 handling in JAX: build the 3x3/s2 patch matrix (~4.6 KB/sample
    # bf16) so the kernel's conv1 and downsample are dense matmuls.
    x1p = jnp.pad(x1, ((0, 0), (1, 0), (1, 0), (0, 0)))          # top/left pad
    taps = [x1p[:, i:i + 2 * B2_HW - 1:2, j:j + 2 * B2_HW - 1:2, :]
            for i in range(3) for j in range(3)]
    patches = jnp.concatenate(taps, axis=-1).reshape(n, B2_HW * B2_HW, K_B2C1)
    patches = patches.astype(jnp.bfloat16)

    out = pl.pallas_call(
        _block2_head_kernel,
        grid=(num_prog,),
        in_specs=[
            pl.BlockSpec((bt, B2_HW * B2_HW, K_B2C1), lambda b: (b, 0, 0)),
            pl.BlockSpec((K_B2C1, S2_C), lambda b: (0, 0)),
            pl.BlockSpec((1, S2_C), lambda b: (0, 0)),
            pl.BlockSpec((S1_C, S2_C), lambda b: (0, 0)),
            pl.BlockSpec((1, S2_C), lambda b: (0, 0)),
            pl.BlockSpec((K_B2C2, S2_C), lambda b: (0, 0)),
            pl.BlockSpec((1, S2_C), lambda b: (0, 0)),
            pl.BlockSpec((S2_C, classes), lambda b: (0, 0)),
            pl.BlockSpec((1, classes), lambda b: (0, 0)),
        ],
        out_specs=pl.BlockSpec((bt, 1, classes), lambda b: (b, 0, 0)),
        out_shape=jax.ShapeDtypeStruct((n, 1, classes), jnp.float32),
        scratch_shapes=[
            pltpu.VMEM((bt, B2_HW + 2, B2_HW + 2, S2_C), jnp.float32),
            pltpu.VMEM((bt, B2_HW * B2_HW, K_B2C2), jnp.bfloat16),
        ],
        compiler_params=_parallel_params(),
    )(patches, w21, b21, wd, bd, w22, b22, wf, bf)
    return out.reshape(n, classes)


# ---------------------------------------------------------------------------
# Parameters (kaiming-normal convs/linear, inference-mode BN folded in,
# weights pre-reshaped to tap-concatenated (K, Cout) form)
# ---------------------------------------------------------------------------

def init_params(key, in_channels=3, classes=10, eps=1e-5):
    keys = iter(jax.random.split(key, 8))
    bn_scale = (1.0 + eps) ** -0.5      # gamma=1, beta=0, mean=0, var=1

    def conv_w(k, kh, kw, cin, cout):
        fan_in = kh * kw * cin
        w = jax.random.normal(k, (kh, kw, cin, cout), jnp.float32)
        w = w * (2.0 / fan_in) ** 0.5 * bn_scale        # fold BN scale
        return w.reshape(kh * kw * cin, cout).astype(jnp.bfloat16)

    def bn_bias(c):
        return jnp.zeros((1, c), jnp.float32)           # folded BN bias = 0

    p = {}
    w_stem = conv_w(next(keys), 7, 7, in_channels, STEM_C)       # (147, 16)
    p["stem_w"] = jnp.pad(w_stem, ((0, K_STEM - w_stem.shape[0]), (0, 0)))
    p["stem_b"] = bn_bias(STEM_C)
    p["b1_conv1_w"] = conv_w(next(keys), 3, 3, S1_C, S1_C)       # (144, 16)
    p["b1_conv1_b"] = bn_bias(S1_C)
    p["b1_conv2_w"] = conv_w(next(keys), 3, 3, S1_C, S1_C)
    p["b1_conv2_b"] = bn_bias(S1_C)
    p["b2_conv1_w"] = conv_w(next(keys), 3, 3, S1_C, S2_C)       # (144, 32)
    p["b2_conv1_b"] = bn_bias(S2_C)
    p["b2_down_w"] = conv_w(next(keys), 1, 1, S1_C, S2_C)        # (16, 32)
    p["b2_down_b"] = bn_bias(S2_C)
    p["b2_conv2_w"] = conv_w(next(keys), 3, 3, S2_C, S2_C)       # (288, 32)
    p["b2_conv2_b"] = bn_bias(S2_C)
    p["fc_w"] = (jax.random.normal(next(keys), (S2_C, classes), jnp.float32)
                 * (2.0 / S2_C) ** 0.5)
    p["fc_b"] = jnp.zeros((1, classes), jnp.float32)
    return p


# ---------------------------------------------------------------------------
# Forward pass
# ---------------------------------------------------------------------------

@jax.jit
def resnet_forward(params, x_nchw):
    """Input: NCHW float32.  Output: (batch, classes) float32."""
    x = jnp.transpose(x_nchw, (0, 2, 3, 1))              # NCHW -> NHWC
    x1 = stem_pool_block1_forward(
        x, params["stem_w"], params["stem_b"],
        params["b1_conv1_w"], params["b1_conv1_b"],
        params["b1_conv2_w"], params["b1_conv2_b"])
    return block2_head_forward(
        x1, params["b2_conv1_w"], params["b2_conv1_b"],
        params["b2_down_w"], params["b2_down_b"],
        params["b2_conv2_w"], params["b2_conv2_b"],
        params["fc_w"], params["fc_b"])


if __name__ == "__main__":
    key = jax.random.PRNGKey(0)
    pkey, xkey = jax.random.split(key)
    params = init_params(pkey, in_channels=3, classes=10)
    x = jax.random.normal(xkey, (2, 3, 32, 32), jnp.float32)     # NCHW
    out = resnet_forward(params, x)
    out = jax.block_until_ready(out)
    assert out.shape == (2, 10), out.shape
    assert bool(jnp.all(jnp.isfinite(out)))
    print("KERNEL_OK")
</pallas_src>

<mosaic_0001>
module attributes {stable_mosaic.version = 11 : i64} {
  func.func @_stem_pool_block1_kernel(%arg0: i32, %arg1: memref<1x256x256xbf16, #tpu.memory_space<vmem>>, %arg2: memref<256x16xbf16, #tpu.memory_space<vmem>>, %arg3: memref<1x16xf32, #tpu.memory_space<vmem>>, %arg4: memref<144x16xbf16, #tpu.memory_space<vmem>>, %arg5: memref<1x16xf32, #tpu.memory_space<vmem>>, %arg6: memref<144x16xbf16, #tpu.memory_space<vmem>>, %arg7: memref<1x16xf32, #tpu.memory_space<vmem>>, %arg8: memref<1x64x16xbf16, #tpu.memory_space<vmem>>, %arg9: memref<1x10x10x16xf32, #tpu.memory_space<vmem>>, %arg10: memref<64x144xbf16, #tpu.memory_space<vmem>>) attributes {dimension_semantics = [#tpu.dimension_semantics<parallel>], iteration_bounds = array<i64: 2>, scalar_prefetch = 0 : i64, scratch_operands = 2 : i64, tpu.core_type = #tpu.core_type<tc>, window_params = [{transform_indices = @transform_0, window_bounds = array<i64: 1, 256, 256>}, {pipeline_mode = #tpu.pipeline_mode<synchronous>, transform_indices = @transform_1, window_bounds = array<i64: 256, 16>}, {pipeline_mode = #tpu.pipeline_mode<synchronous>, transform_indices = @transform_2, window_bounds = array<i64: 1, 16>}, {pipeline_mode = #tpu.pipeline_mode<synchronous>, transform_indices = @transform_3, window_bounds = array<i64: 144, 16>}, {pipeline_mode = #tpu.pipeline_mode<synchronous>, transform_indices = @transform_4, window_bounds = array<i64: 1, 16>}, {pipeline_mode = #tpu.pipeline_mode<synchronous>, transform_indices = @transform_5, window_bounds = array<i64: 144, 16>}, {pipeline_mode = #tpu.pipeline_mode<synchronous>, transform_indices = @transform_6, window_bounds = array<i64: 1, 16>}, {transform_indices = @transform_7, window_bounds = array<i64: 1, 64, 16>}]} {
    %c0 = arith.constant 0 : index
    %c0_0 = arith.constant 0 : index
    %c0_1 = arith.constant 0 : index
    %0 = vector.load %arg1[%c0, %c0_0, %c0_1] : memref<1x256x256xbf16, #tpu.memory_space<vmem>>, vector<1x256x256xbf16>
    %1 = vector.shape_cast %0 : vector<1x256x256xbf16> to vector<256x256xbf16>
    %c0_2 = arith.constant 0 : index
    %c0_3 = arith.constant 0 : index
    %2 = vector.load %arg2[%c0_2, %c0_3] : memref<256x16xbf16, #tpu.memory_space<vmem>>, vector<256x16xbf16>
    %cst = arith.constant dense<0.000000e+00> : vector<256x16xf32>
    %3 = tpu.matmul %1, %2, %cst {dimension_numbers = #tpu.dot_dimension_numbers<[1], [0], [0], [1], [0, 0, 1, 1], [], []>} : vector<256x256xbf16>, vector<256x16xbf16>, vector<256x16xf32> -> vector<256x16xf32>
    %c0_4 = arith.constant 0 : index
    %c0_5 = arith.constant 0 : index
    %4 = vector.load %arg3[%c0_4, %c0_5] : memref<1x16xf32, #tpu.memory_space<vmem>>, vector<1x16xf32>
    %5 = vector.broadcast %4 : vector<1x16xf32> to vector<256x16xf32>
    %6 = arith.addf %3, %5 : vector<256x16xf32>
    %cst_6 = arith.constant 0.000000e+00 : f32
    %7 = vector.broadcast %cst_6 : f32 to vector<256x16xf32>
    %8 = arith.maximumf %6, %7 : vector<256x16xf32>
    %9 = vector.shape_cast %8 : vector<256x16xf32> to vector<1x4x64x16xf32>
    %10 = vector.extract_strided_slice %9 {offsets = [0, 0, 0, 0], sizes = [1, 1, 64, 16], strides = [1, 1, 1, 1]} : vector<1x4x64x16xf32> to vector<1x1x64x16xf32>
    %11 = vector.shape_cast %10 : vector<1x1x64x16xf32> to vector<1x64x16xf32>
    %12 = vector.shape_cast %11 : vector<1x64x16xf32> to vector<1x8x8x16xf32>
    %13 = vector.extract_strided_slice %9 {offsets = [0, 1, 0, 0], sizes = [1, 1, 64, 16], strides = [1, 1, 1, 1]} : vector<1x4x64x16xf32> to vector<1x1x64x16xf32>
    %14 = vector.shape_cast %13 : vector<1x1x64x16xf32> to vector<1x64x16xf32>
    %15 = vector.shape_cast %14 : vector<1x64x16xf32> to vector<1x8x8x16xf32>
    %16 = vector.extract_strided_slice %9 {offsets = [0, 2, 0, 0], sizes = [1, 1, 64, 16], strides = [1, 1, 1, 1]} : vector<1x4x64x16xf32> to vector<1x1x64x16xf32>
    %17 = vector.shape_cast %16 : vector<1x1x64x16xf32> to vector<1x64x16xf32>
    %18 = vector.shape_cast %17 : vector<1x64x16xf32> to vector<1x8x8x16xf32>
    %19 = vector.extract_strided_slice %9 {offsets = [0, 3, 0, 0], sizes = [1, 1, 64, 16], strides = [1, 1, 1, 1]} : vector<1x4x64x16xf32> to vector<1x1x64x16xf32>
    %20 = vector.shape_cast %19 : vector<1x1x64x16xf32> to vector<1x64x16xf32>
    %21 = vector.shape_cast %20 : vector<1x64x16xf32> to vector<1x8x8x16xf32>
    %cst_7 = arith.constant 0.000000e+00 : f32
    %22 = vector.broadcast %cst_7 : f32 to vector<1x10x10x16xf32>
    %c0_8 = arith.constant 0 : index
    %c0_9 = arith.constant 0 : index
    %c0_10 = arith.constant 0 : index
    %c0_11 = arith.constant 0 : index
    %23 = vector.load %arg9[%c0_8, %c0_9, %c0_10, %c0_11] : memref<1x10x10x16xf32, #tpu.memory_space<vmem>>, vector<1x10x10x16xf32>
    tpu.vector_store %arg9[%c0_8, %c0_9, %c0_10, %c0_11], %22 {strides = array<i32>} : memref<1x10x10x16xf32, #tpu.memory_space<vmem>>, vector<1x10x10x16xf32>,
    %24 = arith.maximumf %12, %15 : vector<1x8x8x16xf32>
    %25 = arith.maximumf %18, %21 : vector<1x8x8x16xf32>
    %26 = arith.maximumf %24, %25 : vector<1x8x8x16xf32>
    %c0_12 = arith.constant 0 : index
    %c1 = arith.constant 1 : index
    %c1_13 = arith.constant 1 : index
    %c0_14 = arith.constant 0 : index
    %27 = vector.load %arg9[%c0_12, %c1, %c1_13, %c0_14] : memref<1x10x10x16xf32, #tpu.memory_space<vmem>>, vector<1x8x8x16xf32>
    tpu.vector_store %arg9[%c0_12, %c1, %c1_13, %c0_14], %26 {strides = array<i32>} : memref<1x10x10x16xf32, #tpu.memory_space<vmem>>, vector<1x8x8x16xf32>,
    %c0_15 = arith.constant 0 : index
    %c1_16 = arith.constant 1 : index
    %c2 = arith.constant 2 : index
    %c0_17 = arith.constant 0 : index
    %28 = vector.load %arg9[%c0_15, %c1_16, %c2, %c0_17] : memref<1x10x10x16xf32, #tpu.memory_space<vmem>>, vector<1x8x7x16xf32>
    %29 = vector.extract_strided_slice %15 {offsets = [0, 0, 0, 0], sizes = [1, 8, 7, 16], strides = [1, 1, 1, 1]} : vector<1x8x8x16xf32> to vector<1x8x7x16xf32>
    %30 = vector.extract_strided_slice %21 {offsets = [0, 0, 0, 0], sizes = [1, 8, 7, 16], strides = [1, 1, 1, 1]} : vector<1x8x8x16xf32> to vector<1x8x7x16xf32>
    %31 = arith.maximumf %29, %30 : vector<1x8x7x16xf32>
    %32 = arith.maximumf %28, %31 : vector<1x8x7x16xf32>
    %c0_18 = arith.constant 0 : index
    %c1_19 = arith.constant 1 : index
    %c2_20 = arith.constant 2 : index
    %c0_21 = arith.constant 0 : index
    %33 = vector.load %arg9[%c0_18, %c1_19, %c2_20, %c0_21] : memref<1x10x10x16xf32, #tpu.memory_space<vmem>>, vector<1x8x7x16xf32>
    tpu.vector_store %arg9[%c0_18, %c1_19, %c2_20, %c0_21], %32 {strides = array<i32>} : memref<1x10x10x16xf32, #tpu.memory_space<vmem>>, vector<1x8x7x16xf32>,
    %c0_22 = arith.constant 0 : index
    %c2_23 = arith.constant 2 : index
    %c1_24 = arith.constant 1 : index
    %c0_25 = arith.constant 0 : index
    %34 = vector.load %arg9[%c0_22, %c2_23, %c1_24, %c0_25] : memref<1x10x10x16xf32, #tpu.memory_space<vmem>>, vector<1x7x8x16xf32>
    %35 = vector.extract_strided_slice %18 {offsets = [0, 0, 0, 0], sizes = [1, 7, 8, 16], strides = [1, 1, 1, 1]} : vector<1x8x8x16xf32> to vector<1x7x8x16xf32>
    %36 = vector.extract_strided_slice %21 {offsets = [0, 0, 0, 0], sizes = [1, 7, 8, 16], strides = [1, 1, 1, 1]} : vector<1x8x8x16xf32> to vector<1x7x8x16xf32>
    %37 = arith.maximumf %35, %36 : vector<1x7x8x16xf32>
    %38 = arith.maximumf %34, %37 : vector<1x7x8x16xf32>
    %c0_26 = arith.constant 0 : index
    %c2_27 = arith.constant 2 : index
    %c1_28 = arith.constant 1 : index
    %c0_29 = arith.constant 0 : index
    %39 = vector.load %arg9[%c0_26, %c2_27, %c1_28, %c0_29] : memref<1x10x10x16xf32, #tpu.memory_space<vmem>>, vector<1x7x8x16xf32>
    tpu.vector_store %arg9[%c0_26, %c2_27, %c1_28, %c0_29], %38 {strides = array<i32>} : memref<1x10x10x16xf32, #tpu.memory_space<vmem>>, vector<1x7x8x16xf32>,
    %c0_30 = arith.constant 0 : index
    %c2_31 = arith.constant 2 : index
    %c2_32 = arith.constant 2 : index
    %c0_33 = arith.constant 0 : index
    %40 = vector.load %arg9[%c0_30, %c2_31, %c2_32, %c0_33] : memref<1x10x10x16xf32, #tpu.memory_space<vmem>>, vector<1x7x7x16xf32>
    %41 = vector.extract_strided_slice %21 {offsets = [0, 0, 0, 0], sizes = [1, 7, 7, 16], strides = [1, 1, 1, 1]} : vector<1x8x8x16xf32> to vector<1x7x7x16xf32>
    %42 = arith.maximumf %40, %41 : vector<1x7x7x16xf32>
    %c0_34 = arith.constant 0 : index
    %c2_35 = arith.constant 2 : index
    %c2_36 = arith.constant 2 : index
    %c0_37 = arith.constant 0 : index
    %43 = vector.load %arg9[%c0_34, %c2_35, %c2_36, %c0_37] : memref<1x10x10x16xf32, #tpu.memory_space<vmem>>, vector<1x7x7x16xf32>
    tpu.vector_store %arg9[%c0_34, %c2_35, %c2_36, %c0_37], %42 {strides = array<i32>} : memref<1x10x10x16xf32, #tpu.memory_space<vmem>>, vector<1x7x7x16xf32>,
    %c0_38 = arith.constant 0 : index
    %c1_39 = arith.constant 1 : index
    %c1_40 = arith.constant 1 : index
    %c0_41 = arith.constant 0 : index
    %44 = vector.load %arg9[%c0_38, %c1_39, %c1_40, %c0_41] : memref<1x10x10x16xf32, #tpu.memory_space<vmem>>, vector<1x8x8x16xf32>
    %45 = vector.shape_cast %44 : vector<1x8x8x16xf32> to vector<64x16xf32>
    %c0_42 = arith.constant 0 : index
    %c0_43 = arith.constant 0 : index
    %c0_44 = arith.constant 0 : index
    %c0_45 = arith.constant 0 : index
    %46 = vector.load %arg9[%c0_42, %c0_43, %c0_44, %c0_45] : memref<1x10x10x16xf32, #tpu.memory_space<vmem>>, vector<1x8x8x16xf32>
    %47 = vector.shape_cast %46 : vector<1x8x8x16xf32> to vector<64x16xf32>
    %48 = arith.truncf %47 : vector<64x16xf32> to vector<64x16xbf16>
    %c0_46 = arith.constant 0 : index
    %c0_47 = arith.constant 0 : index
    %49 = vector.load %arg10[%c0_46, %c0_47] : memref<64x144xbf16, #tpu.memory_space<vmem>>, vector<64x16xbf16>
    tpu.vector_store %arg10[%c0_46, %c0_47], %48 {strides = array<i32>} : memref<64x144xbf16, #tpu.memory_space<vmem>>, vector<64x16xbf16>,
    %c0_48 = arith.constant 0 : index
    %c0_49 = arith.constant 0 : index
    %c1_50 = arith.constant 1 : index
    %c0_51 = arith.constant 0 : index
    %50 = vector.load %arg9[%c0_48, %c0_49, %c1_50, %c0_51] : memref<1x10x10x16xf32, #tpu.memory_space<vmem>>, vector<1x8x8x16xf32>
    %51 = vector.shape_cast %50 : vector<1x8x8x16xf32> to vector<64x16xf32>
    %52 = arith.truncf %51 : vector<64x16xf32> to vector<64x16xbf16>
    %c0_52 = arith.constant 0 : index
    %c16 = arith.constant 16 : index
    %53 = vector.load %arg10[%c0_52, %c16] : memref<64x144xbf16, #tpu.memory_space<vmem>>, vector<64x16xbf16>
    tpu.vector_store %arg10[%c0_52, %c16], %52 {strides = array<i32>} : memref<64x144xbf16, #tpu.memory_space<vmem>>, vector<64x16xbf16>,
    %c0_53 = arith.constant 0 : index
    %c0_54 = arith.constant 0 : index
    %c2_55 = arith.constant 2 : index
    %c0_56 = arith.constant 0 : index
    %54 = vector.load %arg9[%c0_53, %c0_54, %c2_55, %c0_56] : memref<1x10x10x16xf32, #tpu.memory_space<vmem>>, vector<1x8x8x16xf32>
    %55 = vector.shape_cast %54 : vector<1x8x8x16xf32> to vector<64x16xf32>
    %56 = arith.truncf %55 : vector<64x16xf32> to vector<64x16xbf16>
    %c0_57 = arith.constant 0 : index
    %c32 = arith.constant 32 : index
    %57 = vector.load %arg10[%c0_57, %c32] : memref<64x144xbf16, #tpu.memory_space<vmem>>, vector<64x16xbf16>
    tpu.vector_store %arg10[%c0_57, %c32], %56 {strides = array<i32>} : memref<64x144xbf16, #tpu.memory_space<vmem>>, vector<64x16xbf16>,
    %c0_58 = arith.constant 0 : index
    %c1_59 = arith.constant 1 : index
    %c0_60 = arith.constant 0 : index
    %c0_61 = arith.constant 0 : index
    %58 = vector.load %arg9[%c0_58, %c1_59, %c0_60, %c0_61] : memref<1x10x10x16xf32, #tpu.memory_space<vmem>>, vector<1x8x8x16xf32>
    %59 = vector.shape_cast %58 : vector<1x8x8x16xf32> to vector<64x16xf32>
    %60 = arith.truncf %59 : vector<64x16xf32> to vector<64x16xbf16>
    %c0_62 = arith.constant 0 : index
    %c48 = arith.constant 48 : index
    %61 = vector.load %arg10[%c0_62, %c48] : memref<64x144xbf16, #tpu.memory_space<vmem>>, vector<64x16xbf16>
    tpu.vector_store %arg10[%c0_62, %c48], %60 {strides = array<i32>} : memref<64x144xbf16, #tpu.memory_space<vmem>>, vector<64x16xbf16>,
    %c0_63 = arith.constant 0 : index
    %c1_64 = arith.constant 1 : index
    %c1_65 = arith.constant 1 : index
    %c0_66 = arith.constant 0 : index
    %62 = vector.load %arg9[%c0_63, %c1_64, %c1_65, %c0_66] : memref<1x10x10x16xf32, #tpu.memory_space<vmem>>, vector<1x8x8x16xf32>
    %63 = vector.shape_cast %62 : vector<1x8x8x16xf32> to vector<64x16xf32>
    %64 = arith.truncf %63 : vector<64x16xf32> to vector<64x16xbf16>
    %c0_67 = arith.constant 0 : index
    %c64 = arith.constant 64 : index
    %65 = vector.load %arg10[%c0_67, %c64] : memref<64x144xbf16, #tpu.memory_space<vmem>>, vector<64x16xbf16>
    tpu.vector_store %arg10[%c0_67, %c64], %64 {strides = array<i32>} : memref<64x144xbf16, #tpu.memory_space<vmem>>, vector<64x16xbf16>,
    %c0_68 = arith.constant 0 : index
    %c1_69 = arith.constant 1 : index
    %c2_70 = arith.constant 2 : index
    %c0_71 = arith.constant 0 : index
    %66 = vector.load %arg9[%c0_68, %c1_69, %c2_70, %c0_71] : memref<1x10x10x16xf32, #tpu.memory_space<vmem>>, vector<1x8x8x16xf32>
    %67 = vector.shape_cast %66 : vector<1x8x8x16xf32> to vector<64x16xf32>
    %68 = arith.truncf %67 : vector<64x16xf32> to vector<64x16xbf16>
    %c0_72 = arith.constant 0 : index
    %c80 = arith.constant 80 : index
    %69 = vector.load %arg10[%c0_72, %c80] : memref<64x144xbf16, #tpu.memory_space<vmem>>, vector<64x16xbf16>
    tpu.vector_store %arg10[%c0_72, %c80], %68 {strides = array<i32>} : memref<64x144xbf16, #tpu.memory_space<vmem>>, vector<64x16xbf16>,
    %c0_73 = arith.constant 0 : index
    %c2_74 = arith.constant 2 : index
    %c0_75 = arith.constant 0 : index
    %c0_76 = arith.constant 0 : index
    %70 = vector.load %arg9[%c0_73, %c2_74, %c0_75, %c0_76] : memref<1x10x10x16xf32, #tpu.memory_space<vmem>>, vector<1x8x8x16xf32>
    %71 = vector.shape_cast %70 : vector<1x8x8x16xf32> to vector<64x16xf32>
    %72 = arith.truncf %71 : vector<64x16xf32> to vector<64x16xbf16>
    %c0_77 = arith.constant 0 : index
    %c96 = arith.constant 96 : index
    %73 = vector.load %arg10[%c0_77, %c96] : memref<64x144xbf16, #tpu.memory_space<vmem>>, vector<64x16xbf16>
    tpu.vector_store %arg10[%c0_77, %c96], %72 {strides = array<i32>} : memref<64x144xbf16, #tpu.memory_space<vmem>>, vector<64x16xbf16>,
    %c0_78 = arith.constant 0 : index
    %c2_79 = arith.constant 2 : index
    %c1_80 = arith.constant 1 : index
    %c0_81 = arith.constant 0 : index
    %74 = vector.load %arg9[%c0_78, %c2_79, %c1_80, %c0_81] : memref<1x10x10x16xf32, #tpu.memory_space<vmem>>, vector<1x8x8x16xf32>
    %75 = vector.shape_cast %74 : vector<1x8x8x16xf32> to vector<64x16xf32>
    %76 = arith.truncf %75 : vector<64x16xf32> to vector<64x16xbf16>
    %c0_82 = arith.constant 0 : index
    %c112 = arith.constant 112 : index
    %77 = vector.load %arg10[%c0_82, %c112] : memref<64x144xbf16, #tpu.memory_space<vmem>>, vector<64x16xbf16>
    tpu.vector_store %arg10[%c0_82, %c112], %76 {strides = array<i32>} : memref<64x144xbf16, #tpu.memory_space<vmem>>, vector<64x16xbf16>,
    %c0_83 = arith.constant 0 : index
    %c2_84 = arith.constant 2 : index
    %c2_85 = arith.constant 2 : index
    %c0_86 = arith.constant 0 : index
    %78 = vector.load %arg9[%c0_83, %c2_84, %c2_85, %c0_86] : memref<1x10x10x16xf32, #tpu.memory_space<vmem>>, vector<1x8x8x16xf32>
    %79 = vector.shape_cast %78 : vector<1x8x8x16xf32> to vector<64x16xf32>
    %80 = arith.truncf %79 : vector<64x16xf32> to vector<64x16xbf16>
    %c0_87 = arith.constant 0 : index
    %c128 = arith.constant 128 : index
    %81 = vector.load %arg10[%c0_87, %c128] : memref<64x144xbf16, #tpu.memory_space<vmem>>, vector<64x16xbf16>
    tpu.vector_store %arg10[%c0_87, %c128], %80 {strides = array<i32>} : memref<64x144xbf16, #tpu.memory_space<vmem>>, vector<64x16xbf16>,
    %c0_88 = arith.constant 0 : index
    %c0_89 = arith.constant 0 : index
    %82 = vector.load %arg10[%c0_88, %c0_89] : memref<64x144xbf16, #tpu.memory_space<vmem>>, vector<64x144xbf16>
    %c0_90 = arith.constant 0 : index
    %c0_91 = arith.constant 0 : index
    %83 = vector.load %arg4[%c0_90, %c0_91] : memref<144x16xbf16, #tpu.memory_space<vmem>>, vector<144x16xbf16>
    %cst_92 = arith.constant dense<0.000000e+00> : vector<64x16xf32>
    %84 = tpu.matmul %82, %83, %cst_92 {dimension_numbers = #tpu.dot_dimension_numbers<[1], [0], [0], [1], [0, 0, 1, 1], [], []>} : vector<64x144xbf16>, vector<144x16xbf16>, vector<64x16xf32> -> vector<64x16xf32>
    %c0_93 = arith.constant 0 : index
    %c0_94 = arith.constant 0 : index
    %85 = vector.load %arg5[%c0_93, %c0_94] : memref<1x16xf32, #tpu.memory_space<vmem>>, vector<1x16xf32>
    %86 = vector.broadcast %85 : vector<1x16xf32> to vector<64x16xf32>
    %87 = arith.addf %84, %86 : vector<64x16xf32>
    %cst_95 = arith.constant 0.000000e+00 : f32
    %88 = vector.broadcast %cst_95 : f32 to vector<64x16xf32>
    %89 = arith.maximumf %87, %88 : vector<64x16xf32>
    %90 = vector.shape_cast %89 : vector<64x16xf32> to vector<1x8x8x16xf32>
    %c0_96 = arith.constant 0 : index
    %c1_97 = arith.constant 1 : index
    %c1_98 = arith.constant 1 : index
    %c0_99 = arith.constant 0 : index
    %91 = vector.load %arg9[%c0_96, %c1_97, %c1_98, %c0_99] : memref<1x10x10x16xf32, #tpu.memory_space<vmem>>, vector<1x8x8x16xf32>
    tpu.vector_store %arg9[%c0_96, %c1_97, %c1_98, %c0_99], %90 {strides = array<i32>} : memref<1x10x10x16xf32, #tpu.memory_space<vmem>>, vector<1x8x8x16xf32>,
    %c0_100 = arith.constant 0 : index
    %c0_101 = arith.constant 0 : index
    %c0_102 = arith.constant 0 : index
    %c0_103 = arith.constant 0 : index
    %92 = vector.load %arg9[%c0_100, %c0_101, %c0_102, %c0_103] : memref<1x10x10x16xf32, #tpu.memory_space<vmem>>, vector<1x8x8x16xf32>
    %93 = vector.shape_cast %92 : vector<1x8x8x16xf32> to vector<64x16xf32>
    %94 = arith.truncf %93 : vector<64x16xf32> to vector<64x16xbf16>
    %c0_104 = arith.constant 0 : index
    %c0_105 = arith.constant 0 : index
    %95 = vector.load %arg10[%c0_104, %c0_105] : memref<64x144xbf16, #tpu.memory_space<vmem>>, vector<64x16xbf16>
    tpu.vector_store %arg10[%c0_104, %c0_105], %94 {strides = array<i32>} : memref<64x144xbf16, #tpu.memory_space<vmem>>, vector<64x16xbf16>,
    %c0_106 = arith.constant 0 : index
    %c0_107 = arith.constant 0 : index
    %c1_108 = arith.constant 1 : index
    %c0_109 = arith.constant 0 : index
    %96 = vector.load %arg9[%c0_106, %c0_107, %c1_108, %c0_109] : memref<1x10x10x16xf32, #tpu.memory_space<vmem>>, vector<1x8x8x16xf32>
    %97 = vector.shape_cast %96 : vector<1x8x8x16xf32> to vector<64x16xf32>
    %98 = arith.truncf %97 : vector<64x16xf32> to vector<64x16xbf16>
    %c0_110 = arith.constant 0 : index
    %c16_111 = arith.constant 16 : index
    %99 = vector.load %arg10[%c0_110, %c16_111] : memref<64x144xbf16, #tpu.memory_space<vmem>>, vector<64x16xbf16>
    tpu.vector_store %arg10[%c0_110, %c16_111], %98 {strides = array<i32>} : memref<64x144xbf16, #tpu.memory_space<vmem>>, vector<64x16xbf16>,
    %c0_112 = arith.constant 0 : index
    %c0_113 = arith.constant 0 : index
    %c2_114 = arith.constant 2 : index
    %c0_115 = arith.constant 0 : index
    %100 = vector.load %arg9[%c0_112, %c0_113, %c2_114, %c0_115] : memref<1x10x10x16xf32, #tpu.memory_space<vmem>>, vector<1x8x8x16xf32>
    %101 = vector.shape_cast %100 : vector<1x8x8x16xf32> to vector<64x16xf32>
    %102 = arith.truncf %101 : vector<64x16xf32> to vector<64x16xbf16>
    %c0_116 = arith.constant 0 : index
    %c32_117 = arith.constant 32 : index
    %103 = vector.load %arg10[%c0_116, %c32_117] : memref<64x144xbf16, #tpu.memory_space<vmem>>, vector<64x16xbf16>
    tpu.vector_store %arg10[%c0_116, %c32_117], %102 {strides = array<i32>} : memref<64x144xbf16, #tpu.memory_space<vmem>>, vector<64x16xbf16>,
    %c0_118 = arith.constant 0 : index
    %c1_119 = arith.constant 1 : index
    %c0_120 = arith.constant 0 : index
    %c0_121 = arith.constant 0 : index
    %104 = vector.load %arg9[%c0_118, %c1_119, %c0_120, %c0_121] : memref<1x10x10x16xf32, #tpu.memory_space<vmem>>, vector<1x8x8x16xf32>
    %105 = vector.shape_cast %104 : vector<1x8x8x16xf32> to vector<64x16xf32>
    %106 = arith.truncf %105 : vector<64x16xf32> to vector<64x16xbf16>
    %c0_122 = arith.constant 0 : index
    %c48_123 = arith.constant 48 : index
    %107 = vector.load %arg10[%c0_122, %c48_123] : memref<64x144xbf16, #tpu.memory_space<vmem>>, vector<64x16xbf16>
    tpu.vector_store %arg10[%c0_122, %c48_123], %106 {strides = array<i32>} : memref<64x144xbf16, #tpu.memory_space<vmem>>, vector<64x16xbf16>,
    %c0_124 = arith.constant 0 : index
    %c1_125 = arith.constant 1 : index
    %c1_126 = arith.constant 1 : index
    %c0_127 = arith.constant 0 : index
    %108 = vector.load %arg9[%c0_124, %c1_125, %c1_126, %c0_127] : memref<1x10x10x16xf32, #tpu.memory_space<vmem>>, vector<1x8x8x16xf32>
    %109 = vector.shape_cast %108 : vector<1x8x8x16xf32> to vector<64x16xf32>
    %110 = arith.truncf %109 : vector<64x16xf32> to vector<64x16xbf16>
    %c0_128 = arith.constant 0 : index
    %c64_129 = arith.constant 64 : index
    %111 = vector.load %arg10[%c0_128, %c64_129] : memref<64x144xbf16, #tpu.memory_space<vmem>>, vector<64x16xbf16>
    tpu.vector_store %arg10[%c0_128, %c64_129], %110 {strides = array<i32>} : memref<64x144xbf16, #tpu.memory_space<vmem>>, vector<64x16xbf16>,
    %c0_130 = arith.constant 0 : index
    %c1_131 = arith.constant 1 : index
    %c2_132 = arith.constant 2 : index
    %c0_133 = arith.constant 0 : index
    %112 = vector.load %arg9[%c0_130, %c1_131, %c2_132, %c0_133] : memref<1x10x10x16xf32, #tpu.memory_space<vmem>>, vector<1x8x8x16xf32>
    %113 = vector.shape_cast %112 : vector<1x8x8x16xf32> to vector<64x16xf32>
    %114 = arith.truncf %113 : vector<64x16xf32> to vector<64x16xbf16>
    %c0_134 = arith.constant 0 : index
    %c80_135 = arith.constant 80 : index
    %115 = vector.load %arg10[%c0_134, %c80_135] : memref<64x144xbf16, #tpu.memory_space<vmem>>, vector<64x16xbf16>
    tpu.vector_store %arg10[%c0_134, %c80_135], %114 {strides = array<i32>} : memref<64x144xbf16, #tpu.memory_space<vmem>>, vector<64x16xbf16>,
    %c0_136 = arith.constant 0 : index
    %c2_137 = arith.constant 2 : index
    %c0_138 = arith.constant 0 : index
    %c0_139 = arith.constant 0 : index
    %116 = vector.load %arg9[%c0_136, %c2_137, %c0_138, %c0_139] : memref<1x10x10x16xf32, #tpu.memory_space<vmem>>, vector<1x8x8x16xf32>
    %117 = vector.shape_cast %116 : vector<1x8x8x16xf32> to vector<64x16xf32>
    %118 = arith.truncf %117 : vector<64x16xf32> to vector<64x16xbf16>
    %c0_140 = arith.constant 0 : index
    %c96_141 = arith.constant 96 : index
    %119 = vector.load %arg10[%c0_140, %c96_141] : memref<64x144xbf16, #tpu.memory_space<vmem>>, vector<64x16xbf16>
    tpu.vector_store %arg10[%c0_140, %c96_141], %118 {strides = array<i32>} : memref<64x144xbf16, #tpu.memory_space<vmem>>, vector<64x16xbf16>,
    %c0_142 = arith.constant 0 : index
    %c2_143 = arith.constant 2 : index
    %c1_144 = arith.constant 1 : index
    %c0_145 = arith.constant 0 : index
    %120 = vector.load %arg9[%c0_142, %c2_143, %c1_144, %c0_145] : memref<1x10x10x16xf32, #tpu.memory_space<vmem>>, vector<1x8x8x16xf32>
    %121 = vector.shape_cast %120 : vector<1x8x8x16xf32> to vector<64x16xf32>
    %122 = arith.truncf %121 : vector<64x16xf32> to vector<64x16xbf16>
    %c0_146 = arith.constant 0 : index
    %c112_147 = arith.constant 112 : index
    %123 = vector.load %arg10[%c0_146, %c112_147] : memref<64x144xbf16, #tpu.memory_space<vmem>>, vector<64x16xbf16>
    tpu.vector_store %arg10[%c0_146, %c112_147], %122 {strides = array<i32>} : memref<64x144xbf16, #tpu.memory_space<vmem>>, vector<64x16xbf16>,
    %c0_148 = arith.constant 0 : index
    %c2_149 = arith.constant 2 : index
    %c2_150 = arith.constant 2 : index
    %c0_151 = arith.constant 0 : index
    %124 = vector.load %arg9[%c0_148, %c2_149, %c2_150, %c0_151] : memref<1x10x10x16xf32, #tpu.memory_space<vmem>>, vector<1x8x8x16xf32>
    %125 = vector.shape_cast %124 : vector<1x8x8x16xf32> to vector<64x16xf32>
    %126 = arith.truncf %125 : vector<64x16xf32> to vector<64x16xbf16>
    %c0_152 = arith.constant 0 : index
    %c128_153 = arith.constant 128 : index
    %127 = vector.load %arg10[%c0_152, %c128_153] : memref<64x144xbf16, #tpu.memory_space<vmem>>, vector<64x16xbf16>
    tpu.vector_store %arg10[%c0_152, %c128_153], %126 {strides = array<i32>} : memref<64x144xbf16, #tpu.memory_space<vmem>>, vector<64x16xbf16>,
    %c0_154 = arith.constant 0 : index
    %c0_155 = arith.constant 0 : index
    %128 = vector.load %arg10[%c0_154, %c0_155] : memref<64x144xbf16, #tpu.memory_space<vmem>>, vector<64x144xbf16>
    %c0_156 = arith.constant 0 : index
    %c0_157 = arith.constant 0 : index
    %129 = vector.load %arg6[%c0_156, %c0_157] : memref<144x16xbf16, #tpu.memory_space<vmem>>, vector<144x16xbf16>
    %cst_158 = arith.constant dense<0.000000e+00> : vector<64x16xf32>
    %130 = tpu.matmul %128, %129, %cst_158 {dimension_numbers = #tpu.dot_dimension_numbers<[1], [0], [0], [1], [0, 0, 1, 1], [], []>} : vector<64x144xbf16>, vector<144x16xbf16>, vector<64x16xf32> -> vector<64x16xf32>
    %c0_159 = arith.constant 0 : index
    %c0_160 = arith.constant 0 : index
    %131 = vector.load %arg7[%c0_159, %c0_160] : memref<1x16xf32, #tpu.memory_space<vmem>>, vector<1x16xf32>
    %132 = vector.broadcast %131 : vector<1x16xf32> to vector<64x16xf32>
    %133 = arith.addf %130, %132 : vector<64x16xf32>
    %134 = arith.addf %133, %45 : vector<64x16xf32>
    %cst_161 = arith.constant 0.000000e+00 : f32
    %135 = vector.broadcast %cst_161 : f32 to vector<64x16xf32>
    %136 = arith.maximumf %134, %135 : vector<64x16xf32>
    %137 = vector.shape_cast %136 : vector<64x16xf32> to vector<1x64x16xf32>
    %138 = arith.truncf %137 : vector<1x64x16xf32> to vector<1x64x16xbf16>
    %c0_162 = arith.constant 0 : index
    %c0_163 = arith.constant 0 : index
    %c0_164 = arith.constant 0 : index
    %139 = vector.load %arg8[%c0_162, %c0_163, %c0_164] : memref<1x64x16xbf16, #tpu.memory_space<vmem>>, vector<1x64x16xbf16>
    tpu.vector_store %arg8[%c0_162, %c0_163, %c0_164], %138 {strides = array<i32>} : memref<1x64x16xbf16, #tpu.memory_space<vmem>>, vector<1x64x16xbf16>,
    return
  }
  func.func @transform_0(%arg0: i32) -> (i32, i32, i32) {
    %c0_i32 = arith.constant 0 : i32
    %c0_i32_0 = arith.constant 0 : i32
    %c0_i32_1 = arith.constant 0 : i32
    return %arg0, %c0_i32, %c0_i32_0 : i32, i32, i32
  }
  func.func @transform_1(%arg0: i32) -> (i32, i32) {
    %c0_i32 = arith.constant 0 : i32
    %c0_i32_0 = arith.constant 0 : i32
    %c0_i32_1 = arith.constant 0 : i32
    return %c0_i32, %c0_i32_0 : i32, i32
  }
  func.func @transform_2(%arg0: i32) -> (i32, i32) {
    %c0_i32 = arith.constant 0 : i32
    %c0_i32_0 = arith.constant 0 : i32
    %c0_i32_1 = arith.constant 0 : i32
    return %c0_i32, %c0_i32_0 : i32, i32
  }
  func.func @transform_3(%arg0: i32) -> (i32, i32) {
    %c0_i32 = arith.constant 0 : i32
    %c0_i32_0 = arith.constant 0 : i32
    %c0_i32_1 = arith.constant 0 : i32
    return %c0_i32, %c0_i32_0 : i32, i32
  }
  func.func @transform_4(%arg0: i32) -> (i32, i32) {
    %c0_i32 = arith.constant 0 : i32
    %c0_i32_0 = arith.constant 0 : i32
    %c0_i32_1 = arith.constant 0 : i32
    return %c0_i32, %c0_i32_0 : i32, i32
  }
  func.func @transform_5(%arg0: i32) -> (i32, i32) {
    %c0_i32 = arith.constant 0 : i32
    %c0_i32_0 = arith.constant 0 : i32
    %c0_i32_1 = arith.constant 0 : i32
    return %c0_i32, %c0_i32_0 : i32, i32
  }
  func.func @transform_6(%arg0: i32) -> (i32, i32) {
    %c0_i32 = arith.constant 0 : i32
    %c0_i32_0 = arith.constant 0 : i32
    %c0_i32_1 = arith.constant 0 : i32
    return %c0_i32, %c0_i32_0 : i32, i32
  }
  func.func @transform_7(%arg0: i32) -> (i32, i32, i32) {
    %c0_i32 = arith.constant 0 : i32
    %c0_i32_0 = arith.constant 0 : i32
    %c0_i32_1 = arith.constant 0 : i32
    return %arg0, %c0_i32, %c0_i32_0 : i32, i32, i32
  }
}

module attributes {stable_mosaic.version = 11 : i64} {
  func.func @_block2_head_kernel(%arg0: i32, %arg1: memref<1x16x144xbf16, #tpu.memory_space<vmem>>, %arg2: memref<144x32xbf16, #tpu.memory_space<vmem>>, %arg3: memref<1x32xf32, #tpu.memory_space<vmem>>, %arg4: memref<16x32xbf16, #tpu.memory_space<vmem>>, %arg5: memref<1x32xf32, #tpu.memory_space<vmem>>, %arg6: memref<288x32xbf16, #tpu.memory_space<vmem>>, %arg7: memref<1x32xf32, #tpu.memory_space<vmem>>, %arg8: memref<32x10xf32, #tpu.memory_space<vmem>>, %arg9: memref<1x10xf32, #tpu.memory_space<vmem>>, %arg10: memref<1x1x10xf32, #tpu.memory_space<vmem>>, %arg11: memref<1x6x6x32xf32, #tpu.memory_space<vmem>>, %arg12: memref<1x16x288xbf16, #tpu.memory_space<vmem>>) attributes {dimension_semantics = [#tpu.dimension_semantics<parallel>], iteration_bounds = array<i64: 2>, scalar_prefetch = 0 : i64, scratch_operands = 2 : i64, tpu.core_type = #tpu.core_type<tc>, window_params = [{transform_indices = @transform_0, window_bounds = array<i64: 1, 16, 144>}, {pipeline_mode = #tpu.pipeline_mode<synchronous>, transform_indices = @transform_1, window_bounds = array<i64: 144, 32>}, {pipeline_mode = #tpu.pipeline_mode<synchronous>, transform_indices = @transform_2, window_bounds = array<i64: 1, 32>}, {pipeline_mode = #tpu.pipeline_mode<synchronous>, transform_indices = @transform_3, window_bounds = array<i64: 16, 32>}, {pipeline_mode = #tpu.pipeline_mode<synchronous>, transform_indices = @transform_4, window_bounds = array<i64: 1, 32>}, {pipeline_mode = #tpu.pipeline_mode<synchronous>, transform_indices = @transform_5, window_bounds = array<i64: 288, 32>}, {pipeline_mode = #tpu.pipeline_mode<synchronous>, transform_indices = @transform_6, window_bounds = array<i64: 1, 32>}, {pipeline_mode = #tpu.pipeline_mode<synchronous>, transform_indices = @transform_7, window_bounds = array<i64: 32, 10>}, {pipeline_mode = #tpu.pipeline_mode<synchronous>, transform_indices = @transform_8, window_bounds = array<i64: 1, 10>}, {transform_indices = @transform_9, window_bounds = array<i64: 1, 1, 10>}]} {
    %c0 = arith.constant 0 : index
    %c0_0 = arith.constant 0 : index
    %c0_1 = arith.constant 0 : index
    %0 = vector.load %arg1[%c0, %c0_0, %c0_1] : memref<1x16x144xbf16, #tpu.memory_space<vmem>>, vector<1x16x144xbf16>
    %1 = vector.shape_cast %0 : vector<1x16x144xbf16> to vector<16x144xbf16>
    %c0_2 = arith.constant 0 : index
    %c0_3 = arith.constant 0 : index
    %2 = vector.load %arg2[%c0_2, %c0_3] : memref<144x32xbf16, #tpu.memory_space<vmem>>, vector<144x32xbf16>
    %cst = arith.constant dense<0.000000e+00> : vector<16x32xf32>
    %3 = tpu.matmul %1, %2, %cst {dimension_numbers = #tpu.dot_dimension_numbers<[1], [0], [0], [1], [0, 0, 1, 1], [], []>} : vector<16x144xbf16>, vector<144x32xbf16>, vector<16x32xf32> -> vector<16x32xf32>
    %c0_4 = arith.constant 0 : index
    %c0_5 = arith.constant 0 : index
    %4 = vector.load %arg3[%c0_4, %c0_5] : memref<1x32xf32, #tpu.memory_space<vmem>>, vector<1x32xf32>
    %5 = vector.broadcast %4 : vector<1x32xf32> to vector<16x32xf32>
    %6 = arith.addf %3, %5 : vector<16x32xf32>
    %cst_6 = arith.constant 0.000000e+00 : f32
    %7 = vector.broadcast %cst_6 : f32 to vector<16x32xf32>
    %8 = arith.maximumf %6, %7 : vector<16x32xf32>
    %9 = vector.extract_strided_slice %1 {offsets = [0, 64], sizes = [16, 16], strides = [1, 1]} : vector<16x144xbf16> to vector<16x16xbf16>
    %c0_7 = arith.constant 0 : index
    %c0_8 = arith.constant 0 : index
    %10 = vector.load %arg4[%c0_7, %c0_8] : memref<16x32xbf16, #tpu.memory_space<vmem>>, vector<16x32xbf16>
    %cst_9 = arith.constant dense<0.000000e+00> : vector<16x32xf32>
    %11 = tpu.matmul %9, %10, %cst_9 {dimension_numbers = #tpu.dot_dimension_numbers<[1], [0], [0], [1], [0, 0, 1, 1], [], []>} : vector<16x16xbf16>, vector<16x32xbf16>, vector<16x32xf32> -> vector<16x32xf32>
    %c0_10 = arith.constant 0 : index
    %c0_11 = arith.constant 0 : index
    %12 = vector.load %arg5[%c0_10, %c0_11] : memref<1x32xf32, #tpu.memory_space<vmem>>, vector<1x32xf32>
    %13 = vector.broadcast %12 : vector<1x32xf32> to vector<16x32xf32>
    %14 = arith.addf %11, %13 : vector<16x32xf32>
    %cst_12 = arith.constant 0.000000e+00 : f32
    %15 = vector.broadcast %cst_12 : f32 to vector<1x6x6x32xf32>
    %c0_13 = arith.constant 0 : index
    %c0_14 = arith.constant 0 : index
    %c0_15 = arith.constant 0 : index
    %c0_16 = arith.constant 0 : index
    %16 = vector.load %arg11[%c0_13, %c0_14, %c0_15, %c0_16] : memref<1x6x6x32xf32, #tpu.memory_space<vmem>>, vector<1x6x6x32xf32>
    tpu.vector_store %arg11[%c0_13, %c0_14, %c0_15, %c0_16], %15 {strides = array<i32>} : memref<1x6x6x32xf32, #tpu.memory_space<vmem>>, vector<1x6x6x32xf32>,
    %17 = vector.shape_cast %8 : vector<16x32xf32> to vector<1x16x32xf32>
    %18 = vector.extract_strided_slice %17 {offsets = [0, 0, 0], sizes = [1, 4, 32], strides = [1, 1, 1]} : vector<1x16x32xf32> to vector<1x4x32xf32>
    %c0_17 = arith.constant 0 : index
    %c1 = arith.constant 1 : index
    %c1_18 = arith.constant 1 : index
    %c0_19 = arith.constant 0 : index
    %19 = vector.load %arg11[%c0_17, %c1, %c1_18, %c0_19] : memref<1x6x6x32xf32, #tpu.memory_space<vmem>>, vector<1x1x4x32xf32>
    %20 = vector.shape_cast %19 : vector<1x1x4x32xf32> to vector<1x4x32xf32>
    %21 = vector.shape_cast %18 : vector<1x4x32xf32> to vector<1x1x4x32xf32>
    tpu.vector_store %arg11[%c0_17, %c1, %c1_18, %c0_19], %21 {strides = array<i32>} : memref<1x6x6x32xf32, #tpu.memory_space<vmem>>, vector<1x1x4x32xf32>,
    %22 = vector.extract_strided_slice %17 {offsets = [0, 4, 0], sizes = [1, 4, 32], strides = [1, 1, 1]} : vector<1x16x32xf32> to vector<1x4x32xf32>
    %c0_20 = arith.constant 0 : index
    %c2 = arith.constant 2 : index
    %c1_21 = arith.constant 1 : index
    %c0_22 = arith.constant 0 : index
    %23 = vector.load %arg11[%c0_20, %c2, %c1_21, %c0_22] : memref<1x6x6x32xf32, #tpu.memory_space<vmem>>, vector<1x1x4x32xf32>
    %24 = vector.shape_cast %23 : vector<1x1x4x32xf32> to vector<1x4x32xf32>
    %25 = vector.shape_cast %22 : vector<1x4x32xf32> to vector<1x1x4x32xf32>
    tpu.vector_store %arg11[%c0_20, %c2, %c1_21, %c0_22], %25 {strides = array<i32>} : memref<1x6x6x32xf32, #tpu.memory_space<vmem>>, vector<1x1x4x32xf32>,
    %26 = vector.extract_strided_slice %17 {offsets = [0, 8, 0], sizes = [1, 4, 32], strides = [1, 1, 1]} : vector<1x16x32xf32> to vector<1x4x32xf32>
    %c0_23 = arith.constant 0 : index
    %c3 = arith.constant 3 : index
    %c1_24 = arith.constant 1 : index
    %c0_25 = arith.constant 0 : index
    %27 = vector.load %arg11[%c0_23, %c3, %c1_24, %c0_25] : memref<1x6x6x32xf32, #tpu.memory_space<vmem>>, vector<1x1x4x32xf32>
    %28 = vector.shape_cast %27 : vector<1x1x4x32xf32> to vector<1x4x32xf32>
    %29 = vector.shape_cast %26 : vector<1x4x32xf32> to vector<1x1x4x32xf32>
    tpu.vector_store %arg11[%c0_23, %c3, %c1_24, %c0_25], %29 {strides = array<i32>} : memref<1x6x6x32xf32, #tpu.memory_space<vmem>>, vector<1x1x4x32xf32>,
    %30 = vector.extract_strided_slice %17 {offsets = [0, 12, 0], sizes = [1, 4, 32], strides = [1, 1, 1]} : vector<1x16x32xf32> to vector<1x4x32xf32>
    %c0_26 = arith.constant 0 : index
    %c4 = arith.constant 4 : index
    %c1_27 = arith.constant 1 : index
    %c0_28 = arith.constant 0 : index
    %31 = vector.load %arg11[%c0_26, %c4, %c1_27, %c0_28] : memref<1x6x6x32xf32, #tpu.memory_space<vmem>>, vector<1x1x4x32xf32>
    %32 = vector.shape_cast %31 : vector<1x1x4x32xf32> to vector<1x4x32xf32>
    %33 = vector.shape_cast %30 : vector<1x4x32xf32> to vector<1x1x4x32xf32>
    tpu.vector_store %arg11[%c0_26, %c4, %c1_27, %c0_28], %33 {strides = array<i32>} : memref<1x6x6x32xf32, #tpu.memory_space<vmem>>, vector<1x1x4x32xf32>,
    %c0_29 = arith.constant 0 : index
    %c0_30 = arith.constant 0 : index
    %c0_31 = arith.constant 0 : index
    %c0_32 = arith.constant 0 : index
    %34 = vector.load %arg11[%c0_29, %c0_30, %c0_31, %c0_32] : memref<1x6x6x32xf32, #tpu.memory_space<vmem>>, vector<1x1x4x32xf32>
    %35 = vector.shape_cast %34 : vector<1x1x4x32xf32> to vector<1x4x32xf32>
    %36 = arith.truncf %35 : vector<1x4x32xf32> to vector<1x4x32xbf16>
    %c0_33 = arith.constant 0 : index
    %c0_34 = arith.constant 0 : index
    %c0_35 = arith.constant 0 : index
    %37 = vector.load %arg12[%c0_33, %c0_34, %c0_35] : memref<1x16x288xbf16, #tpu.memory_space<vmem>>, vector<1x4x32xbf16>
    tpu.vector_store %arg12[%c0_33, %c0_34, %c0_35], %36 {strides = array<i32>} : memref<1x16x288xbf16, #tpu.memory_space<vmem>>, vector<1x4x32xbf16>,
    %c0_36 = arith.constant 0 : index
    %c1_37 = arith.constant 1 : index
    %c0_38 = arith.constant 0 : index
    %c0_39 = arith.constant 0 : index
    %38 = vector.load %arg11[%c0_36, %c1_37, %c0_38, %c0_39] : memref<1x6x6x32xf32, #tpu.memory_space<vmem>>, vector<1x1x4x32xf32>
    %39 = vector.shape_cast %38 : vector<1x1x4x32xf32> to vector<1x4x32xf32>
    %40 = arith.truncf %39 : vector<1x4x32xf32> to vector<1x4x32xbf16>
    %c0_40 = arith.constant 0 : index
    %c4_41 = arith.constant 4 : index
    %c0_42 = arith.constant 0 : index
    %41 = vector.load %arg12[%c0_40, %c4_41, %c0_42] : memref<1x16x288xbf16, #tpu.memory_space<vmem>>, vector<1x4x32xbf16>
    tpu.vector_store %arg12[%c0_40, %c4_41, %c0_42], %40 {strides = array<i32>} : memref<1x16x288xbf16, #tpu.memory_space<vmem>>, vector<1x4x32xbf16>,
    %c0_43 = arith.constant 0 : index
    %c2_44 = arith.constant 2 : index
    %c0_45 = arith.constant 0 : index
    %c0_46 = arith.constant 0 : index
    %42 = vector.load %arg11[%c0_43, %c2_44, %c0_45, %c0_46] : memref<1x6x6x32xf32, #tpu.memory_space<vmem>>, vector<1x1x4x32xf32>
    %43 = vector.shape_cast %42 : vector<1x1x4x32xf32> to vector<1x4x32xf32>
    %44 = arith.truncf %43 : vector<1x4x32xf32> to vector<1x4x32xbf16>
    %c0_47 = arith.constant 0 : index
    %c8 = arith.constant 8 : index
    %c0_48 = arith.constant 0 : index
    %45 = vector.load %arg12[%c0_47, %c8, %c0_48] : memref<1x16x288xbf16, #tpu.memory_space<vmem>>, vector<1x4x32xbf16>
    tpu.vector_store %arg12[%c0_47, %c8, %c0_48], %44 {strides = array<i32>} : memref<1x16x288xbf16, #tpu.memory_space<vmem>>, vector<1x4x32xbf16>,
    %c0_49 = arith.constant 0 : index
    %c3_50 = arith.constant 3 : index
    %c0_51 = arith.constant 0 : index
    %c0_52 = arith.constant 0 : index
    %46 = vector.load %arg11[%c0_49, %c3_50, %c0_51, %c0_52] : memref<1x6x6x32xf32, #tpu.memory_space<vmem>>, vector<1x1x4x32xf32>
    %47 = vector.shape_cast %46 : vector<1x1x4x32xf32> to vector<1x4x32xf32>
    %48 = arith.truncf %47 : vector<1x4x32xf32> to vector<1x4x32xbf16>
    %c0_53 = arith.constant 0 : index
    %c12 = arith.constant 12 : index
    %c0_54 = arith.constant 0 : index
    %49 = vector.load %arg12[%c0_53, %c12, %c0_54] : memref<1x16x288xbf16, #tpu.memory_space<vmem>>, vector<1x4x32xbf16>
    tpu.vector_store %arg12[%c0_53, %c12, %c0_54], %48 {strides = array<i32>} : memref<1x16x288xbf16, #tpu.memory_space<vmem>>, vector<1x4x32xbf16>,
    %c0_55 = arith.constant 0 : index
    %c0_56 = arith.constant 0 : index
    %c1_57 = arith.constant 1 : index
    %c0_58 = arith.constant 0 : index
    %50 = vector.load %arg11[%c0_55, %c0_56, %c1_57, %c0_58] : memref<1x6x6x32xf32, #tpu.memory_space<vmem>>, vector<1x1x4x32xf32>
    %51 = vector.shape_cast %50 : vector<1x1x4x32xf32> to vector<1x4x32xf32>
    %52 = arith.truncf %51 : vector<1x4x32xf32> to vector<1x4x32xbf16>
    %c0_59 = arith.constant 0 : index
    %c0_60 = arith.constant 0 : index
    %c32 = arith.constant 32 : index
    %53 = vector.load %arg12[%c0_59, %c0_60, %c32] : memref<1x16x288xbf16, #tpu.memory_space<vmem>>, vector<1x4x32xbf16>
    tpu.vector_store %arg12[%c0_59, %c0_60, %c32], %52 {strides = array<i32>} : memref<1x16x288xbf16, #tpu.memory_space<vmem>>, vector<1x4x32xbf16>,
    %c0_61 = arith.constant 0 : index
    %c1_62 = arith.constant 1 : index
    %c1_63 = arith.constant 1 : index
    %c0_64 = arith.constant 0 : index
    %54 = vector.load %arg11[%c0_61, %c1_62, %c1_63, %c0_64] : memref<1x6x6x32xf32, #tpu.memory_space<vmem>>, vector<1x1x4x32xf32>
    %55 = vector.shape_cast %54 : vector<1x1x4x32xf32> to vector<1x4x32xf32>
    %56 = arith.truncf %55 : vector<1x4x32xf32> to vector<1x4x32xbf16>
    %c0_65 = arith.constant 0 : index
    %c4_66 = arith.constant 4 : index
    %c32_67 = arith.constant 32 : index
    %57 = vector.load %arg12[%c0_65, %c4_66, %c32_67] : memref<1x16x288xbf16, #tpu.memory_space<vmem>>, vector<1x4x32xbf16>
    tpu.vector_store %arg12[%c0_65, %c4_66, %c32_67], %56 {strides = array<i32>} : memref<1x16x288xbf16, #tpu.memory_space<vmem>>, vector<1x4x32xbf16>,
    %c0_68 = arith.constant 0 : index
    %c2_69 = arith.constant 2 : index
    %c1_70 = arith.constant 1 : index
    %c0_71 = arith.constant 0 : index
    %58 = vector.load %arg11[%c0_68, %c2_69, %c1_70, %c0_71] : memref<1x6x6x32xf32, #tpu.memory_space<vmem>>, vector<1x1x4x32xf32>
    %59 = vector.shape_cast %58 : vector<1x1x4x32xf32> to vector<1x4x32xf32>
    %60 = arith.truncf %59 : vector<1x4x32xf32> to vector<1x4x32xbf16>
    %c0_72 = arith.constant 0 : index
    %c8_73 = arith.constant 8 : index
    %c32_74 = arith.constant 32 : index
    %61 = vector.load %arg12[%c0_72, %c8_73, %c32_74] : memref<1x16x288xbf16, #tpu.memory_space<vmem>>, vector<1x4x32xbf16>
    tpu.vector_store %arg12[%c0_72, %c8_73, %c32_74], %60 {strides = array<i32>} : memref<1x16x288xbf16, #tpu.memory_space<vmem>>, vector<1x4x32xbf16>,
    %c0_75 = arith.constant 0 : index
    %c3_76 = arith.constant 3 : index
    %c1_77 = arith.constant 1 : index
    %c0_78 = arith.constant 0 : index
    %62 = vector.load %arg11[%c0_75, %c3_76, %c1_77, %c0_78] : memref<1x6x6x32xf32, #tpu.memory_space<vmem>>, vector<1x1x4x32xf32>
    %63 = vector.shape_cast %62 : vector<1x1x4x32xf32> to vector<1x4x32xf32>
    %64 = arith.truncf %63 : vector<1x4x32xf32> to vector<1x4x32xbf16>
    %c0_79 = arith.constant 0 : index
    %c12_80 = arith.constant 12 : index
    %c32_81 = arith.constant 32 : index
    %65 = vector.load %arg12[%c0_79, %c12_80, %c32_81] : memref<1x16x288xbf16, #tpu.memory_space<vmem>>, vector<1x4x32xbf16>
    tpu.vector_store %arg12[%c0_79, %c12_80, %c32_81], %64 {strides = array<i32>} : memref<1x16x288xbf16, #tpu.memory_space<vmem>>, vector<1x4x32xbf16>,
    %c0_82 = arith.constant 0 : index
    %c0_83 = arith.constant 0 : index
    %c2_84 = arith.constant 2 : index
    %c0_85 = arith.constant 0 : index
    %66 = vector.load %arg11[%c0_82, %c0_83, %c2_84, %c0_85] : memref<1x6x6x32xf32, #tpu.memory_space<vmem>>, vector<1x1x4x32xf32>
    %67 = vector.shape_cast %66 : vector<1x1x4x32xf32> to vector<1x4x32xf32>
    %68 = arith.truncf %67 : vector<1x4x32xf32> to vector<1x4x32xbf16>
    %c0_86 = arith.constant 0 : index
    %c0_87 = arith.constant 0 : index
    %c64 = arith.constant 64 : index
    %69 = vector.load %arg12[%c0_86, %c0_87, %c64] : memref<1x16x288xbf16, #tpu.memory_space<vmem>>, vector<1x4x32xbf16>
    tpu.vector_store %arg12[%c0_86, %c0_87, %c64], %68 {strides = array<i32>} : memref<1x16x288xbf16, #tpu.memory_space<vmem>>, vector<1x4x32xbf16>,
    %c0_88 = arith.constant 0 : index
    %c1_89 = arith.constant 1 : index
    %c2_90 = arith.constant 2 : index
    %c0_91 = arith.constant 0 : index
    %70 = vector.load %arg11[%c0_88, %c1_89, %c2_90, %c0_91] : memref<1x6x6x32xf32, #tpu.memory_space<vmem>>, vector<1x1x4x32xf32>
    %71 = vector.shape_cast %70 : vector<1x1x4x32xf32> to vector<1x4x32xf32>
    %72 = arith.truncf %71 : vector<1x4x32xf32> to vector<1x4x32xbf16>
    %c0_92 = arith.constant 0 : index
    %c4_93 = arith.constant 4 : index
    %c64_94 = arith.constant 64 : index
    %73 = vector.load %arg12[%c0_92, %c4_93, %c64_94] : memref<1x16x288xbf16, #tpu.memory_space<vmem>>, vector<1x4x32xbf16>
    tpu.vector_store %arg12[%c0_92, %c4_93, %c64_94], %72 {strides = array<i32>} : memref<1x16x288xbf16, #tpu.memory_space<vmem>>, vector<1x4x32xbf16>,
    %c0_95 = arith.constant 0 : index
    %c2_96 = arith.constant 2 : index
    %c2_97 = arith.constant 2 : index
    %c0_98 = arith.constant 0 : index
    %74 = vector.load %arg11[%c0_95, %c2_96, %c2_97, %c0_98] : memref<1x6x6x32xf32, #tpu.memory_space<vmem>>, vector<1x1x4x32xf32>
    %75 = vector.shape_cast %74 : vector<1x1x4x32xf32> to vector<1x4x32xf32>
    %76 = arith.truncf %75 : vector<1x4x32xf32> to vector<1x4x32xbf16>
    %c0_99 = arith.constant 0 : index
    %c8_100 = arith.constant 8 : index
    %c64_101 = arith.constant 64 : index
    %77 = vector.load %arg12[%c0_99, %c8_100, %c64_101] : memref<1x16x288xbf16, #tpu.memory_space<vmem>>, vector<1x4x32xbf16>
    tpu.vector_store %arg12[%c0_99, %c8_100, %c64_101], %76 {strides = array<i32>} : memref<1x16x288xbf16, #tpu.memory_space<vmem>>, vector<1x4x32xbf16>,
    %c0_102 = arith.constant 0 : index
    %c3_103 = arith.constant 3 : index
    %c2_104 = arith.constant 2 : index
    %c0_105 = arith.constant 0 : index
    %78 = vector.load %arg11[%c0_102, %c3_103, %c2_104, %c0_105] : memref<1x6x6x32xf32, #tpu.memory_space<vmem>>, vector<1x1x4x32xf32>
    %79 = vector.shape_cast %78 : vector<1x1x4x32xf32> to vector<1x4x32xf32>
    %80 = arith.truncf %79 : vector<1x4x32xf32> to vector<1x4x32xbf16>
    %c0_106 = arith.constant 0 : index
    %c12_107 = arith.constant 12 : index
    %c64_108 = arith.constant 64 : index
    %81 = vector.load %arg12[%c0_106, %c12_107, %c64_108] : memref<1x16x288xbf16, #tpu.memory_space<vmem>>, vector<1x4x32xbf16>
    tpu.vector_store %arg12[%c0_106, %c12_107, %c64_108], %80 {strides = array<i32>} : memref<1x16x288xbf16, #tpu.memory_space<vmem>>, vector<1x4x32xbf16>,
    %c0_109 = arith.constant 0 : index
    %c1_110 = arith.constant 1 : index
    %c0_111 = arith.constant 0 : index
    %c0_112 = arith.constant 0 : index
    %82 = vector.load %arg11[%c0_109, %c1_110, %c0_111, %c0_112] : memref<1x6x6x32xf32, #tpu.memory_space<vmem>>, vector<1x1x4x32xf32>
    %83 = vector.shape_cast %82 : vector<1x1x4x32xf32> to vector<1x4x32xf32>
    %84 = arith.truncf %83 : vector<1x4x32xf32> to vector<1x4x32xbf16>
    %c0_113 = arith.constant 0 : index
    %c0_114 = arith.constant 0 : index
    %c96 = arith.constant 96 : index
    %85 = vector.load %arg12[%c0_113, %c0_114, %c96] : memref<1x16x288xbf16, #tpu.memory_space<vmem>>, vector<1x4x32xbf16>
    tpu.vector_store %arg12[%c0_113, %c0_114, %c96], %84 {strides = array<i32>} : memref<1x16x288xbf16, #tpu.memory_space<vmem>>, vector<1x4x32xbf16>,
    %c0_115 = arith.constant 0 : index
    %c2_116 = arith.constant 2 : index
    %c0_117 = arith.constant 0 : index
    %c0_118 = arith.constant 0 : index
    %86 = vector.load %arg11[%c0_115, %c2_116, %c0_117, %c0_118] : memref<1x6x6x32xf32, #tpu.memory_space<vmem>>, vector<1x1x4x32xf32>
    %87 = vector.shape_cast %86 : vector<1x1x4x32xf32> to vector<1x4x32xf32>
    %88 = arith.truncf %87 : vector<1x4x32xf32> to vector<1x4x32xbf16>
    %c0_119 = arith.constant 0 : index
    %c4_120 = arith.constant 4 : index
    %c96_121 = arith.constant 96 : index
    %89 = vector.load %arg12[%c0_119, %c4_120, %c96_121] : memref<1x16x288xbf16, #tpu.memory_space<vmem>>, vector<1x4x32xbf16>
    tpu.vector_store %arg12[%c0_119, %c4_120, %c96_121], %88 {strides = array<i32>} : memref<1x16x288xbf16, #tpu.memory_space<vmem>>, vector<1x4x32xbf16>,
    %c0_122 = arith.constant 0 : index
    %c3_123 = arith.constant 3 : index
    %c0_124 = arith.constant 0 : index
    %c0_125 = arith.constant 0 : index
    %90 = vector.load %arg11[%c0_122, %c3_123, %c0_124, %c0_125] : memref<1x6x6x32xf32, #tpu.memory_space<vmem>>, vector<1x1x4x32xf32>
    %91 = vector.shape_cast %90 : vector<1x1x4x32xf32> to vector<1x4x32xf32>
    %92 = arith.truncf %91 : vector<1x4x32xf32> to vector<1x4x32xbf16>
    %c0_126 = arith.constant 0 : index
    %c8_127 = arith.constant 8 : index
    %c96_128 = arith.constant 96 : index
    %93 = vector.load %arg12[%c0_126, %c8_127, %c96_128] : memref<1x16x288xbf16, #tpu.memory_space<vmem>>, vector<1x4x32xbf16>
    tpu.vector_store %arg12[%c0_126, %c8_127, %c96_128], %92 {strides = array<i32>} : memref<1x16x288xbf16, #tpu.memory_space<vmem>>, vector<1x4x32xbf16>,
    %c0_129 = arith.constant 0 : index
    %c4_130 = arith.constant 4 : index
    %c0_131 = arith.constant 0 : index
    %c0_132 = arith.constant 0 : index
    %94 = vector.load %arg11[%c0_129, %c4_130, %c0_131, %c0_132] : memref<1x6x6x32xf32, #tpu.memory_space<vmem>>, vector<1x1x4x32xf32>
    %95 = vector.shape_cast %94 : vector<1x1x4x32xf32> to vector<1x4x32xf32>
    %96 = arith.truncf %95 : vector<1x4x32xf32> to vector<1x4x32xbf16>
    %c0_133 = arith.constant 0 : index
    %c12_134 = arith.constant 12 : index
    %c96_135 = arith.constant 96 : index
    %97 = vector.load %arg12[%c0_133, %c12_134, %c96_135] : memref<1x16x288xbf16, #tpu.memory_space<vmem>>, vector<1x4x32xbf16>
    tpu.vector_store %arg12[%c0_133, %c12_134, %c96_135], %96 {strides = array<i32>} : memref<1x16x288xbf16, #tpu.memory_space<vmem>>, vector<1x4x32xbf16>,
    %c0_136 = arith.constant 0 : index
    %c1_137 = arith.constant 1 : index
    %c1_138 = arith.constant 1 : index
    %c0_139 = arith.constant 0 : index
    %98 = vector.load %arg11[%c0_136, %c1_137, %c1_138, %c0_139] : memref<1x6x6x32xf32, #tpu.memory_space<vmem>>, vector<1x1x4x32xf32>
    %99 = vector.shape_cast %98 : vector<1x1x4x32xf32> to vector<1x4x32xf32>
    %100 = arith.truncf %99 : vector<1x4x32xf32> to vector<1x4x32xbf16>
    %c0_140 = arith.constant 0 : index
    %c0_141 = arith.constant 0 : index
    %c128 = arith.constant 128 : index
    %101 = vector.load %arg12[%c0_140, %c0_141, %c128] : memref<1x16x288xbf16, #tpu.memory_space<vmem>>, vector<1x4x32xbf16>
    tpu.vector_store %arg12[%c0_140, %c0_141, %c128], %100 {strides = array<i32>} : memref<1x16x288xbf16, #tpu.memory_space<vmem>>, vector<1x4x32xbf16>,
    %c0_142 = arith.constant 0 : index
    %c2_143 = arith.constant 2 : index
    %c1_144 = arith.constant 1 : index
    %c0_145 = arith.constant 0 : index
    %102 = vector.load %arg11[%c0_142, %c2_143, %c1_144, %c0_145] : memref<1x6x6x32xf32, #tpu.memory_space<vmem>>, vector<1x1x4x32xf32>
    %103 = vector.shape_cast %102 : vector<1x1x4x32xf32> to vector<1x4x32xf32>
    %104 = arith.truncf %103 : vector<1x4x32xf32> to vector<1x4x32xbf16>
    %c0_146 = arith.constant 0 : index
    %c4_147 = arith.constant 4 : index
    %c128_148 = arith.constant 128 : index
    %105 = vector.load %arg12[%c0_146, %c4_147, %c128_148] : memref<1x16x288xbf16, #tpu.memory_space<vmem>>, vector<1x4x32xbf16>
    tpu.vector_store %arg12[%c0_146, %c4_147, %c128_148], %104 {strides = array<i32>} : memref<1x16x288xbf16, #tpu.memory_space<vmem>>, vector<1x4x32xbf16>,
    %c0_149 = arith.constant 0 : index
    %c3_150 = arith.constant 3 : index
    %c1_151 = arith.constant 1 : index
    %c0_152 = arith.constant 0 : index
    %106 = vector.load %arg11[%c0_149, %c3_150, %c1_151, %c0_152] : memref<1x6x6x32xf32, #tpu.memory_space<vmem>>, vector<1x1x4x32xf32>
    %107 = vector.shape_cast %106 : vector<1x1x4x32xf32> to vector<1x4x32xf32>
    %108 = arith.truncf %107 : vector<1x4x32xf32> to vector<1x4x32xbf16>
    %c0_153 = arith.constant 0 : index
    %c8_154 = arith.constant 8 : index
    %c128_155 = arith.constant 128 : index
    %109 = vector.load %arg12[%c0_153, %c8_154, %c128_155] : memref<1x16x288xbf16, #tpu.memory_space<vmem>>, vector<1x4x32xbf16>
    tpu.vector_store %arg12[%c0_153, %c8_154, %c128_155], %108 {strides = array<i32>} : memref<1x16x288xbf16, #tpu.memory_space<vmem>>, vector<1x4x32xbf16>,
    %c0_156 = arith.constant 0 : index
    %c4_157 = arith.constant 4 : index
    %c1_158 = arith.constant 1 : index
    %c0_159 = arith.constant 0 : index
    %110 = vector.load %arg11[%c0_156, %c4_157, %c1_158, %c0_159] : memref<1x6x6x32xf32, #tpu.memory_space<vmem>>, vector<1x1x4x32xf32>
    %111 = vector.shape_cast %110 : vector<1x1x4x32xf32> to vector<1x4x32xf32>
    %112 = arith.truncf %111 : vector<1x4x32xf32> to vector<1x4x32xbf16>
    %c0_160 = arith.constant 0 : index
    %c12_161 = arith.constant 12 : index
    %c128_162 = arith.constant 128 : index
    %113 = vector.load %arg12[%c0_160, %c12_161, %c128_162] : memref<1x16x288xbf16, #tpu.memory_space<vmem>>, vector<1x4x32xbf16>
    tpu.vector_store %arg12[%c0_160, %c12_161, %c128_162], %112 {strides = array<i32>} : memref<1x16x288xbf16, #tpu.memory_space<vmem>>, vector<1x4x32xbf16>,
    %c0_163 = arith.constant 0 : index
    %c1_164 = arith.constant 1 : index
    %c2_165 = arith.constant 2 : index
    %c0_166 = arith.constant 0 : index
    %114 = vector.load %arg11[%c0_163, %c1_164, %c2_165, %c0_166] : memref<1x6x6x32xf32, #tpu.memory_space<vmem>>, vector<1x1x4x32xf32>
    %115 = vector.shape_cast %114 : vector<1x1x4x32xf32> to vector<1x4x32xf32>
    %116 = arith.truncf %115 : vector<1x4x32xf32> to vector<1x4x32xbf16>
    %c0_167 = arith.constant 0 : index
    %c0_168 = arith.constant 0 : index
    %c160 = arith.constant 160 : index
    %117 = vector.load %arg12[%c0_167, %c0_168, %c160] : memref<1x16x288xbf16, #tpu.memory_space<vmem>>, vector<1x4x32xbf16>
    tpu.vector_store %arg12[%c0_167, %c0_168, %c160], %116 {strides = array<i32>} : memref<1x16x288xbf16, #tpu.memory_space<vmem>>, vector<1x4x32xbf16>,
    %c0_169 = arith.constant 0 : index
    %c2_170 = arith.constant 2 : index
    %c2_171 = arith.constant 2 : index
    %c0_172 = arith.constant 0 : index
    %118 = vector.load %arg11[%c0_169, %c2_170, %c2_171, %c0_172] : memref<1x6x6x32xf32, #tpu.memory_space<vmem>>, vector<1x1x4x32xf32>
    %119 = vector.shape_cast %118 : vector<1x1x4x32xf32> to vector<1x4x32xf32>
    %120 = arith.truncf %119 : vector<1x4x32xf32> to vector<1x4x32xbf16>
    %c0_173 = arith.constant 0 : index
    %c4_174 = arith.constant 4 : index
    %c160_175 = arith.constant 160 : index
    %121 = vector.load %arg12[%c0_173, %c4_174, %c160_175] : memref<1x16x288xbf16, #tpu.memory_space<vmem>>, vector<1x4x32xbf16>
    tpu.vector_store %arg12[%c0_173, %c4_174, %c160_175], %120 {strides = array<i32>} : memref<1x16x288xbf16, #tpu.memory_space<vmem>>, vector<1x4x32xbf16>,
    %c0_176 = arith.constant 0 : index
    %c3_177 = arith.constant 3 : index
    %c2_178 = arith.constant 2 : index
    %c0_179 = arith.constant 0 : index
    %122 = vector.load %arg11[%c0_176, %c3_177, %c2_178, %c0_179] : memref<1x6x6x32xf32, #tpu.memory_space<vmem>>, vector<1x1x4x32xf32>
    %123 = vector.shape_cast %122 : vector<1x1x4x32xf32> to vector<1x4x32xf32>
    %124 = arith.truncf %123 : vector<1x4x32xf32> to vector<1x4x32xbf16>
    %c0_180 = arith.constant 0 : index
    %c8_181 = arith.constant 8 : index
    %c160_182 = arith.constant 160 : index
    %125 = vector.load %arg12[%c0_180, %c8_181, %c160_182] : memref<1x16x288xbf16, #tpu.memory_space<vmem>>, vector<1x4x32xbf16>
    tpu.vector_store %arg12[%c0_180, %c8_181, %c160_182], %124 {strides = array<i32>} : memref<1x16x288xbf16, #tpu.memory_space<vmem>>, vector<1x4x32xbf16>,
    %c0_183 = arith.constant 0 : index
    %c4_184 = arith.constant 4 : index
    %c2_185 = arith.constant 2 : index
    %c0_186 = arith.constant 0 : index
    %126 = vector.load %arg11[%c0_183, %c4_184, %c2_185, %c0_186] : memref<1x6x6x32xf32, #tpu.memory_space<vmem>>, vector<1x1x4x32xf32>
    %127 = vector.shape_cast %126 : vector<1x1x4x32xf32> to vector<1x4x32xf32>
    %128 = arith.truncf %127 : vector<1x4x32xf32> to vector<1x4x32xbf16>
    %c0_187 = arith.constant 0 : index
    %c12_188 = arith.constant 12 : index
    %c160_189 = arith.constant 160 : index
    %129 = vector.load %arg12[%c0_187, %c12_188, %c160_189] : memref<1x16x288xbf16, #tpu.memory_space<vmem>>, vector<1x4x32xbf16>
    tpu.vector_store %arg12[%c0_187, %c12_188, %c160_189], %128 {strides = array<i32>} : memref<1x16x288xbf16, #tpu.memory_space<vmem>>, vector<1x4x32xbf16>,
    %c0_190 = arith.constant 0 : index
    %c2_191 = arith.constant 2 : index
    %c0_192 = arith.constant 0 : index
    %c0_193 = arith.constant 0 : index
    %130 = vector.load %arg11[%c0_190, %c2_191, %c0_192, %c0_193] : memref<1x6x6x32xf32, #tpu.memory_space<vmem>>, vector<1x1x4x32xf32>
    %131 = vector.shape_cast %130 : vector<1x1x4x32xf32> to vector<1x4x32xf32>
    %132 = arith.truncf %131 : vector<1x4x32xf32> to vector<1x4x32xbf16>
    %c0_194 = arith.constant 0 : index
    %c0_195 = arith.constant 0 : index
    %c192 = arith.constant 192 : index
    %133 = vector.load %arg12[%c0_194, %c0_195, %c192] : memref<1x16x288xbf16, #tpu.memory_space<vmem>>, vector<1x4x32xbf16>
    tpu.vector_store %arg12[%c0_194, %c0_195, %c192], %132 {strides = array<i32>} : memref<1x16x288xbf16, #tpu.memory_space<vmem>>, vector<1x4x32xbf16>,
    %c0_196 = arith.constant 0 : index
    %c3_197 = arith.constant 3 : index
    %c0_198 = arith.constant 0 : index
    %c0_199 = arith.constant 0 : index
    %134 = vector.load %arg11[%c0_196, %c3_197, %c0_198, %c0_199] : memref<1x6x6x32xf32, #tpu.memory_space<vmem>>, vector<1x1x4x32xf32>
    %135 = vector.shape_cast %134 : vector<1x1x4x32xf32> to vector<1x4x32xf32>
    %136 = arith.truncf %135 : vector<1x4x32xf32> to vector<1x4x32xbf16>
    %c0_200 = arith.constant 0 : index
    %c4_201 = arith.constant 4 : index
    %c192_202 = arith.constant 192 : index
    %137 = vector.load %arg12[%c0_200, %c4_201, %c192_202] : memref<1x16x288xbf16, #tpu.memory_space<vmem>>, vector<1x4x32xbf16>
    tpu.vector_store %arg12[%c0_200, %c4_201, %c192_202], %136 {strides = array<i32>} : memref<1x16x288xbf16, #tpu.memory_space<vmem>>, vector<1x4x32xbf16>,
    %c0_203 = arith.constant 0 : index
    %c4_204 = arith.constant 4 : index
    %c0_205 = arith.constant 0 : index
    %c0_206 = arith.constant 0 : index
    %138 = vector.load %arg11[%c0_203, %c4_204, %c0_205, %c0_206] : memref<1x6x6x32xf32, #tpu.memory_space<vmem>>, vector<1x1x4x32xf32>
    %139 = vector.shape_cast %138 : vector<1x1x4x32xf32> to vector<1x4x32xf32>
    %140 = arith.truncf %139 : vector<1x4x32xf32> to vector<1x4x32xbf16>
    %c0_207 = arith.constant 0 : index
    %c8_208 = arith.constant 8 : index
    %c192_209 = arith.constant 192 : index
    %141 = vector.load %arg12[%c0_207, %c8_208, %c192_209] : memref<1x16x288xbf16, #tpu.memory_space<vmem>>, vector<1x4x32xbf16>
    tpu.vector_store %arg12[%c0_207, %c8_208, %c192_209], %140 {strides = array<i32>} : memref<1x16x288xbf16, #tpu.memory_space<vmem>>, vector<1x4x32xbf16>,
    %c0_210 = arith.constant 0 : index
    %c5 = arith.constant 5 : index
    %c0_211 = arith.constant 0 : index
    %c0_212 = arith.constant 0 : index
    %142 = vector.load %arg11[%c0_210, %c5, %c0_211, %c0_212] : memref<1x6x6x32xf32, #tpu.memory_space<vmem>>, vector<1x1x4x32xf32>
    %143 = vector.shape_cast %142 : vector<1x1x4x32xf32> to vector<1x4x32xf32>
    %144 = arith.truncf %143 : vector<1x4x32xf32> to vector<1x4x32xbf16>
    %c0_213 = arith.constant 0 : index
    %c12_214 = arith.constant 12 : index
    %c192_215 = arith.constant 192 : index
    %145 = vector.load %arg12[%c0_213, %c12_214, %c192_215] : memref<1x16x288xbf16, #tpu.memory_space<vmem>>, vector<1x4x32xbf16>
    tpu.vector_store %arg12[%c0_213, %c12_214, %c192_215], %144 {strides = array<i32>} : memref<1x16x288xbf16, #tpu.memory_space<vmem>>, vector<1x4x32xbf16>,
    %c0_216 = arith.constant 0 : index
    %c2_217 = arith.constant 2 : index
    %c1_218 = arith.constant 1 : index
    %c0_219 = arith.constant 0 : index
    %146 = vector.load %arg11[%c0_216, %c2_217, %c1_218, %c0_219] : memref<1x6x6x32xf32, #tpu.memory_space<vmem>>, vector<1x1x4x32xf32>
    %147 = vector.shape_cast %146 : vector<1x1x4x32xf32> to vector<1x4x32xf32>
    %148 = arith.truncf %147 : vector<1x4x32xf32> to vector<1x4x32xbf16>
    %c0_220 = arith.constant 0 : index
    %c0_221 = arith.constant 0 : index
    %c224 = arith.constant 224 : index
    %149 = vector.load %arg12[%c0_220, %c0_221, %c224] : memref<1x16x288xbf16, #tpu.memory_space<vmem>>, vector<1x4x32xbf16>
    tpu.vector_store %arg12[%c0_220, %c0_221, %c224], %148 {strides = array<i32>} : memref<1x16x288xbf16, #tpu.memory_space<vmem>>, vector<1x4x32xbf16>,
    %c0_222 = arith.constant 0 : index
    %c3_223 = arith.constant 3 : index
    %c1_224 = arith.constant 1 : index
    %c0_225 = arith.constant 0 : index
    %150 = vector.load %arg11[%c0_222, %c3_223, %c1_224, %c0_225] : memref<1x6x6x32xf32, #tpu.memory_space<vmem>>, vector<1x1x4x32xf32>
    %151 = vector.shape_cast %150 : vector<1x1x4x32xf32> to vector<1x4x32xf32>
    %152 = arith.truncf %151 : vector<1x4x32xf32> to vector<1x4x32xbf16>
    %c0_226 = arith.constant 0 : index
    %c4_227 = arith.constant 4 : index
    %c224_228 = arith.constant 224 : index
    %153 = vector.load %arg12[%c0_226, %c4_227, %c224_228] : memref<1x16x288xbf16, #tpu.memory_space<vmem>>, vector<1x4x32xbf16>
    tpu.vector_store %arg12[%c0_226, %c4_227, %c224_228], %152 {strides = array<i32>} : memref<1x16x288xbf16, #tpu.memory_space<vmem>>, vector<1x4x32xbf16>,
    %c0_229 = arith.constant 0 : index
    %c4_230 = arith.constant 4 : index
    %c1_231 = arith.constant 1 : index
    %c0_232 = arith.constant 0 : index
    %154 = vector.load %arg11[%c0_229, %c4_230, %c1_231, %c0_232] : memref<1x6x6x32xf32, #tpu.memory_space<vmem>>, vector<1x1x4x32xf32>
    %155 = vector.shape_cast %154 : vector<1x1x4x32xf32> to vector<1x4x32xf32>
    %156 = arith.truncf %155 : vector<1x4x32xf32> to vector<1x4x32xbf16>
    %c0_233 = arith.constant 0 : index
    %c8_234 = arith.constant 8 : index
    %c224_235 = arith.constant 224 : index
    %157 = vector.load %arg12[%c0_233, %c8_234, %c224_235] : memref<1x16x288xbf16, #tpu.memory_space<vmem>>, vector<1x4x32xbf16>
    tpu.vector_store %arg12[%c0_233, %c8_234, %c224_235], %156 {strides = array<i32>} : memref<1x16x288xbf16, #tpu.memory_space<vmem>>, vector<1x4x32xbf16>,
    %c0_236 = arith.constant 0 : index
    %c5_237 = arith.constant 5 : index
    %c1_238 = arith.constant 1 : index
    %c0_239 = arith.constant 0 : index
    %158 = vector.load %arg11[%c0_236, %c5_237, %c1_238, %c0_239] : memref<1x6x6x32xf32, #tpu.memory_space<vmem>>, vector<1x1x4x32xf32>
    %159 = vector.shape_cast %158 : vector<1x1x4x32xf32> to vector<1x4x32xf32>
    %160 = arith.truncf %159 : vector<1x4x32xf32> to vector<1x4x32xbf16>
    %c0_240 = arith.constant 0 : index
    %c12_241 = arith.constant 12 : index
    %c224_242 = arith.constant 224 : index
    %161 = vector.load %arg12[%c0_240, %c12_241, %c224_242] : memref<1x16x288xbf16, #tpu.memory_space<vmem>>, vector<1x4x32xbf16>
    tpu.vector_store %arg12[%c0_240, %c12_241, %c224_242], %160 {strides = array<i32>} : memref<1x16x288xbf16, #tpu.memory_space<vmem>>, vector<1x4x32xbf16>,
    %c0_243 = arith.constant 0 : index
    %c2_244 = arith.constant 2 : index
    %c2_245 = arith.constant 2 : index
    %c0_246 = arith.constant 0 : index
    %162 = vector.load %arg11[%c0_243, %c2_244, %c2_245, %c0_246] : memref<1x6x6x32xf32, #tpu.memory_space<vmem>>, vector<1x1x4x32xf32>
    %163 = vector.shape_cast %162 : vector<1x1x4x32xf32> to vector<1x4x32xf32>
    %164 = arith.truncf %163 : vector<1x4x32xf32> to vector<1x4x32xbf16>
    %c0_247 = arith.constant 0 : index
    %c0_248 = arith.constant 0 : index
    %c256 = arith.constant 256 : index
    %165 = vector.load %arg12[%c0_247, %c0_248, %c256] : memref<1x16x288xbf16, #tpu.memory_space<vmem>>, vector<1x4x32xbf16>
    tpu.vector_store %arg12[%c0_247, %c0_248, %c256], %164 {strides = array<i32>} : memref<1x16x288xbf16, #tpu.memory_space<vmem>>, vector<1x4x32xbf16>,
    %c0_249 = arith.constant 0 : index
    %c3_250 = arith.constant 3 : index
    %c2_251 = arith.constant 2 : index
    %c0_252 = arith.constant 0 : index
    %166 = vector.load %arg11[%c0_249, %c3_250, %c2_251, %c0_252] : memref<1x6x6x32xf32, #tpu.memory_space<vmem>>, vector<1x1x4x32xf32>
    %167 = vector.shape_cast %166 : vector<1x1x4x32xf32> to vector<1x4x32xf32>
    %168 = arith.truncf %167 : vector<1x4x32xf32> to vector<1x4x32xbf16>
    %c0_253 = arith.constant 0 : index
    %c4_254 = arith.constant 4 : index
    %c256_255 = arith.constant 256 : index
    %169 = vector.load %arg12[%c0_253, %c4_254, %c256_255] : memref<1x16x288xbf16, #tpu.memory_space<vmem>>, vector<1x4x32xbf16>
    tpu.vector_store %arg12[%c0_253, %c4_254, %c256_255], %168 {strides = array<i32>} : memref<1x16x288xbf16, #tpu.memory_space<vmem>>, vector<1x4x32xbf16>,
    %c0_256 = arith.constant 0 : index
    %c4_257 = arith.constant 4 : index
    %c2_258 = arith.constant 2 : index
    %c0_259 = arith.constant 0 : index
    %170 = vector.load %arg11[%c0_256, %c4_257, %c2_258, %c0_259] : memref<1x6x6x32xf32, #tpu.memory_space<vmem>>, vector<1x1x4x32xf32>
    %171 = vector.shape_cast %170 : vector<1x1x4x32xf32> to vector<1x4x32xf32>
    %172 = arith.truncf %171 : vector<1x4x32xf32> to vector<1x4x32xbf16>
    %c0_260 = arith.constant 0 : index
    %c8_261 = arith.constant 8 : index
    %c256_262 = arith.constant 256 : index
    %173 = vector.load %arg12[%c0_260, %c8_261, %c256_262] : memref<1x16x288xbf16, #tpu.memory_space<vmem>>, vector<1x4x32xbf16>
    tpu.vector_store %arg12[%c0_260, %c8_261, %c256_262], %172 {strides = array<i32>} : memref<1x16x288xbf16, #tpu.memory_space<vmem>>, vector<1x4x32xbf16>,
    %c0_263 = arith.constant 0 : index
    %c5_264 = arith.constant 5 : index
    %c2_265 = arith.constant 2 : index
    %c0_266 = arith.constant 0 : index
    %174 = vector.load %arg11[%c0_263, %c5_264, %c2_265, %c0_266] : memref<1x6x6x32xf32, #tpu.memory_space<vmem>>, vector<1x1x4x32xf32>
    %175 = vector.shape_cast %174 : vector<1x1x4x32xf32> to vector<1x4x32xf32>
    %176 = arith.truncf %175 : vector<1x4x32xf32> to vector<1x4x32xbf16>
    %c0_267 = arith.constant 0 : index
    %c12_268 = arith.constant 12 : index
    %c256_269 = arith.constant 256 : index
    %177 = vector.load %arg12[%c0_267, %c12_268, %c256_269] : memref<1x16x288xbf16, #tpu.memory_space<vmem>>, vector<1x4x32xbf16>
    tpu.vector_store %arg12[%c0_267, %c12_268, %c256_269], %176 {strides = array<i32>} : memref<1x16x288xbf16, #tpu.memory_space<vmem>>, vector<1x4x32xbf16>,
    %c0_270 = arith.constant 0 : index
    %c0_271 = arith.constant 0 : index
    %c0_272 = arith.constant 0 : index
    %178 = vector.load %arg12[%c0_270, %c0_271, %c0_272] : memref<1x16x288xbf16, #tpu.memory_space<vmem>>, vector<1x16x288xbf16>
    %179 = vector.shape_cast %178 : vector<1x16x288xbf16> to vector<16x288xbf16>
    %c0_273 = arith.constant 0 : index
    %c0_274 = arith.constant 0 : index
    %180 = vector.load %arg6[%c0_273, %c0_274] : memref<288x32xbf16, #tpu.memory_space<vmem>>, vector<288x32xbf16>
    %cst_275 = arith.constant dense<0.000000e+00> : vector<16x32xf32>
    %181 = tpu.matmul %179, %180, %cst_275 {dimension_numbers = #tpu.dot_dimension_numbers<[1], [0], [0], [1], [0, 0, 1, 1], [], []>} : vector<16x288xbf16>, vector<288x32xbf16>, vector<16x32xf32> -> vector<16x32xf32>
    %c0_276 = arith.constant 0 : index
    %c0_277 = arith.constant 0 : index
    %182 = vector.load %arg7[%c0_276, %c0_277] : memref<1x32xf32, #tpu.memory_space<vmem>>, vector<1x32xf32>
    %183 = vector.broadcast %182 : vector<1x32xf32> to vector<16x32xf32>
    %184 = arith.addf %181, %183 : vector<16x32xf32>
    %185 = arith.addf %184, %14 : vector<16x32xf32>
    %cst_278 = arith.constant 0.000000e+00 : f32
    %186 = vector.broadcast %cst_278 : f32 to vector<16x32xf32>
    %187 = arith.maximumf %185, %186 : vector<16x32xf32>
    %188 = vector.shape_cast %187 : vector<16x32xf32> to vector<1x16x32xf32>
    %cst_279 = arith.constant dense<0.000000e+00> : vector<1x32xf32>
    %189 = vector.multi_reduction <add>, %188, %cst_279 [1] : vector<1x16x32xf32> to vector<1x32xf32>
    %cst_280 = arith.constant 6.250000e-02 : f32
    %190 = vector.broadcast %cst_280 : f32 to vector<1x32xf32>
    %191 = arith.mulf %189, %190 : vector<1x32xf32>
    %c0_281 = arith.constant 0 : index
    %c0_282 = arith.constant 0 : index
    %192 = vector.load %arg8[%c0_281, %c0_282] : memref<32x10xf32, #tpu.memory_space<vmem>>, vector<32x10xf32>
    %cst_283 = arith.constant dense<0.000000e+00> : vector<1x10xf32>
    %193 = tpu.matmul %191, %192, %cst_283 {dimension_numbers = #tpu.dot_dimension_numbers<[1], [0], [0], [1], [0, 0, 1, 1], [], []>} : vector<1x32xf32>, vector<32x10xf32>, vector<1x10xf32> -> vector<1x10xf32>
    %c0_284 = arith.constant 0 : index
    %c0_285 = arith.constant 0 : index
    %194 = vector.load %arg9[%c0_284, %c0_285] : memref<1x10xf32, #tpu.memory_space<vmem>>, vector<1x10xf32>
    %195 = arith.addf %193, %194 : vector<1x10xf32>
    %c0_286 = arith.constant 0 : index
    %c0_287 = arith.constant 0 : index
    %c0_288 = arith.constant 0 : index
    %196 = vector.load %arg10[%c0_286, %c0_287, %c0_288] : memref<1x1x10xf32, #tpu.memory_space<vmem>>, vector<1x1x10xf32>
    %197 = vector.shape_cast %196 : vector<1x1x10xf32> to vector<1x10xf32>
    %198 = vector.shape_cast %195 : vector<1x10xf32> to vector<1x1x10xf32>
    tpu.vector_store %arg10[%c0_286, %c0_287, %c0_288], %198 {strides = array<i32>} : memref<1x1x10xf32, #tpu.memory_space<vmem>>, vector<1x1x10xf32>,
    return
  }
  func.func @transform_0(%arg0: i32) -> (i32, i32, i32) {
    %c0_i32 = arith.constant 0 : i32
    %c0_i32_0 = arith.constant 0 : i32
    %c0_i32_1 = arith.constant 0 : i32
    return %arg0, %c0_i32, %c0_i32_0 : i32, i32, i32
  }
  func.func @transform_1(%arg0: i32) -> (i32, i32) {
    %c0_i32 = arith.constant 0 : i32
    %c0_i32_0 = arith.constant 0 : i32
    %c0_i32_1 = arith.constant 0 : i32
    return %c0_i32, %c0_i32_0 : i32, i32
  }
  func.func @transform_2(%arg0: i32) -> (i32, i32) {
    %c0_i32 = arith.constant 0 : i32
    %c0_i32_0 = arith.constant 0 : i32
    %c0_i32_1 = arith.constant 0 : i32
    return %c0_i32, %c0_i32_0 : i32, i32
  }
  func.func @transform_3(%arg0: i32) -> (i32, i32) {
    %c0_i32 = arith.constant 0 : i32
    %c0_i32_0 = arith.constant 0 : i32
    %c0_i32_1 = arith.constant 0 : i32
    return %c0_i32, %c0_i32_0 : i32, i32
  }
  func.func @transform_4(%arg0: i32) -> (i32, i32) {
    %c0_i32 = arith.constant 0 : i32
    %c0_i32_0 = arith.constant 0 : i32
    %c0_i32_1 = arith.constant 0 : i32
    return %c0_i32, %c0_i32_0 : i32, i32
  }
  func.func @transform_5(%arg0: i32) -> (i32, i32) {
    %c0_i32 = arith.constant 0 : i32
    %c0_i32_0 = arith.constant 0 : i32
    %c0_i32_1 = arith.constant 0 : i32
    return %c0_i32, %c0_i32_0 : i32, i32
  }
  func.func @transform_6(%arg0: i32) -> (i32, i32) {
    %c0_i32 = arith.constant 0 : i32
    %c0_i32_0 = arith.constant 0 : i32
    %c0_i32_1 = arith.constant 0 : i32
    return %c0_i32, %c0_i32_0 : i32, i32
  }
  func.func @transform_7(%arg0: i32) -> (i32, i32) {
    %c0_i32 = arith.constant 0 : i32
    %c0_i32_0 = arith.constant 0 : i32
    %c0_i32_1 = arith.constant 0 : i32
    return %c0_i32, %c0_i32_0 : i32, i32
  }
  func.func @transform_8(%arg0: i32) -> (i32, i32) {
    %c0_i32 = arith.constant 0 : i32
    %c0_i32_0 = arith.constant 0 : i32
    %c0_i32_1 = arith.constant 0 : i32
    return %c0_i32, %c0_i32_0 : i32, i32
  }
  func.func @transform_9(%arg0: i32) -> (i32, i32, i32) {
    %c0_i32 = arith.constant 0 : i32
    %c0_i32_0 = arith.constant 0 : i32
    %c0_i32_1 = arith.constant 0 : i32
    return %arg0, %c0_i32, %c0_i32_0 : i32, i32, i32
  }
}

</mosaic_0001>

<bundles_post_ra>
// kernel: resnet_forward.3
= control target key start
LH: loop header
LB: loop body
LE: loop exit
PB: predicated region body
PF: predicated region fallthrough
CT: control target
= control target key end

     0   :  { %14 = vsyncpa [#allocation5], 0  ;;  %s1916_s0 = inlined_call_operand.vmem [shape: bf16[2,16,144], index: 0, kind: input, shape index: {}]   ;;  %s1917_s1 = inlined_call_operand.vmem [shape: bf16[144,32], index: 1, kind: input, shape index: {}]   ;;  %s1918_s2 = inlined_call_operand.vmem [shape: f32[1,32], index: 2, kind: input, shape index: {}]   ;;  %s1919_s3 = inlined_call_operand.vmem [shape: bf16[16,32], index: 3, kind: input, shape index: {}]   ;;  %s1920_s4 = inlined_call_operand.vmem [shape: f32[1,32], index: 4, kind: input, shape index: {}]   ;;  %s1921_s5 = inlined_call_operand.vmem [shape: bf16[288,32], index: 5, kind: input, shape index: {}]   ;;  %s1922_s6 = inlined_call_operand.vmem [shape: f32[1,32], index: 6, kind: input, shape index: {}]   ;;  %s1923_s7 = inlined_call_operand.vmem [shape: f32[32,10], index: 7, kind: input, shape index: {}]   ;;  %s1924_s8 = inlined_call_operand.vmem [shape: f32[1,10], index: 8, kind: input, shape index: {}]   ;;  %s1925_s9 = inlined_call_operand.hbm [shape: f32[2,1,10], index: 9, kind: output, shape index: {}]  }
   0x1   :  { %16 = vsyncpa [#allocation5 + $0x1], 0  ;;  %s1633_s30 = smov 0   ;;  %s1635_s10 = smov 0  }
   0x2   :  { %s1637_s11 = smov 0   ;;  %s1639_s12 = smov 0  }
   0x3 LB: > { %s1654_s13 = sadd.s32 4294967295, %s1574_s12   ;;  %s1267_s14 = sadd.s32 4294967294, %s1574_s12   ;;  %s1574_s12 = sphi %s1639_s12, %s1931_s12   ;;  %s1570_s11 = sphi %s1637_s11, %s1930_s11   ;;  %s1566_s10 = sphi %s1635_s10, %s1929_s10   ;;  %s1562_s30 = sphi %s1633_s30, %s1928_s30  }
   0x4   : > { %s1658_s15 = sadd.s32 1, %s1574_s12   ;;  %s223_s16 = sadd.s32 1, %s1570_s11 }
   0x5   : > { %s220_s17 = ssub.s32 %s1574_s12, %s1658_s15  ;;  %p233_p0 = scmp.ne.s32.totalorder %s1570_s11, %s1566_s10 }
   0x6   : > { %p221_p1 = scmp.eq.s32.totalorder %s220_s17, 0  ;;  %p234_p2 = scmp.eq.s32.totalorder %s1654_s13, 1 }
   0x7   : > { %p239_p3 = scmp.ne.s32.totalorder %s1566_s10, %s1562_s30  ;;  %p240_p4 = scmp.eq.s32.totalorder %s1267_s14, 1 }
   0x8   : > { %s1669_s18 = scalar_select %p221_p1, %s1570_s11, %s223_s16  }
   0x9   : > { %p1671_p5 = por %p234_p2, %p233_p0  ;;  %p1675_p6 = por %p240_p4, %p239_p3 }
   0xa   : > { %p1270_p7 = scmp.ge.s32.totalorder %s1574_s12, 1  ;;  %p290_p8 = scmp.lt.s32.totalorder %s1574_s12, 3 }
   0xc   : > { %p291_p9 = pnand %p1270_p7, %p290_p8 }
   0xd   : > { %p325_p10 = scmp.lt.s32.totalorder (!%p291_p9), %s1654_s13, 1  ;;  %s1579_s21 = smov (!%p291_p9), 32  }
   0xe   : > { %294 = sbr.rel (%p291_p9) target bundleno = 863 (0x35f), region = 56 }
  0x13   : > { %v1479_v0 = vld [vmem:[%s1917_s1 + $0x38] sm:$0xff]   ;;  %v1576_v1 = vmov 0   ;;  %v1480_v2 = vld [vmem:[%s1917_s1 + $0x30] sm:$0xff]   ;;  %s326_s25 = scalar_select %p325_p10, %s1654_s13, 1  ;;  %v1481_v3 = vld [vmem:[%s1917_s1 + $0x28] sm:$0xff]   ;;  %vm421_vm0 = vcmask 130048  }
  0x14   : > { %425 = vmatprep.subr.bf16.mxu0 %v1576_v1  ;;  %v1482_v4 = vld [vmem:[%s1917_s1 + $0x20] sm:$0xff]   ;;  %v1483_v6 = vld [vmem:[%s1917_s1 + $0x18] sm:$0xff]   ;;  %v1484_v7 = vld [vmem:[%s1917_s1 + $0x10] sm:$0xff]   ;;  %vm529_vm1 = vcmask 259072   ;;  %v1577_v12 = vmov 0.0   ;;  %vm557_vm2 = vcmask 257026  }
  0x15   : > { %426 = vmatpush1.bf16.msra.mxu0 %v1479_v0  ;;  %s1346_s26 = sshll.u32 %s326_s25, 4  ;;  %v1485_v8 = vld [vmem:[%s1917_s1 + $0x8] sm:$0xff]   ;;  %v1486_v9 = vld [vmem:[%s1917_s1] sm:$0xff]   ;;  %530 = vst.msk [vmem:[#allocation2] sm:$0x3f] %vm529_vm1, %v1577_v12  ;;  %1409 = vmatprep.subr.bf16.mxu1 %v1577_v12  ;;  %vm1580_vm3 = vmmov 0  }
  0x16   : > { %427 = vmatprep.subr.bf16.mxu0 %v1576_v1  ;;  %s329_s16 = scalar_lea.vmem %s1916_s0, %s1346_s26  ;;  %v1487_v10 = vld [vmem:[%s1917_s1 + $0x40] sm:$0xff]   ;;  %531 = vst.msk [vmem:[#allocation2 + $0x8] sm:$0x3f] %vm529_vm1, %v1577_v12  ;;  %532 = vst.msk [vmem:[#allocation2 + $0x10] sm:$0x3f] %vm529_vm1, %v1577_v12  ;;  %v1491_v23 = vld [vmem:[%s1921_s5 + $0x88] sm:$0xff]   ;;  %1411 = vmatprep.mubr.msk.bf16.mxu1 %vm1580_vm3, %v1577_v12 }
  0x17   : > { %v1490_v5 = vld [vmem:[%s329_s16 + $0x4] ss:$8 sps:$4 sm:$0xff]   ;;  %v1488_v11 = vld [vmem:[%s329_s16] ss:$8 sps:$4 sm:$0xff]   ;;  %535 = vst.msk [vmem:[#allocation2 + $0x28] sm:$0x3f] %vm529_vm1, %v1577_v12 }
  0x18   : > { %1285 = vmatprep.mubr.msk.bf16.mxu0 %vm421_vm0, %v1490_v5  ;;  %533 = vst.msk [vmem:[#allocation2 + $0x18] sm:$0x3f] %vm529_vm1, %v1577_v12  ;;  %534 = vst.msk [vmem:[#allocation2 + $0x20] sm:$0x3f] %vm529_vm1, %v1577_v12  ;;  %s1578_s16 = smov 64   ;;  %v1492_v24 = vld [vmem:[%s1921_s5 + $0x80] sm:$0xff]  }
  0x19   : > { %428 = vmatpush1.bf16.msra.mxu0 %v1480_v2  ;;  %477 = vrot.lane.b32.xlu0 %v1488_v11, %s1578_s16  ;;  %v1494_v25 = vld [vmem:[%s1919_s3] sm:$0xff]   ;;  %vm548_vm4 = vcmask 254976   ;;  %vm578_vm5 = vcmask 517376   ;;  %vm618_vm6 = vcmask 779776   ;;  %vm537_vm7 = vcmask 257024   ;;  %v1495_v2 = vld [vmem:[%s1921_s5 + $0x78] sm:$0xff]  }
  0x1a   : > { %429 = vmatprep.subr.bf16.mxu0 %v1576_v1  ;;  %1410 = vmatpush3.bf16.msra.mxu1 %v1494_v25  ;;  %v1273_v31 = vld [vmem:[%s1918_s2] ss:$0 sm:$0xff]  ;;  %vm540_vm8 = vcmask 261124   ;;  %s1581_s26 = smov 96   ;;  %vm1019_vm9 = vcmask 261120   ;;  %vm589_vm10 = vcmask 519426  }
  0x1b   : > { %1379 = vmatprep.subr.bf16.mxu1 %v1495_v2  ;;  %vm658_vm11 = vcmask 1042176   ;;  %vm629_vm12 = vcmask 781826   ;;  %vm669_vm13 = vcmask 1044226   ;;  %s1343_s25 = sshll.u32 %s1654_s13, 4  ;;  %vm1197_vm14 = vcmask 73728   ;;  %s1582_s13 = smov [#allocation4]  }
  0x1c   : > { %v570_v13 = vld [vmem:[#allocation2 + $0x1] sm:$0xf]  ;;  %s1881_s17 = scalar_lea.hbm %s1925_s9, %s1343_s25  ;;  %s1518_s23 = sshll.u32 %s1582_s13, 4  ;;  %s1519_s23 = int_to_ptr.vmem [resolvable:$false] %s1518_s23 }
  0x1d   : > { %430 = vmatpush1.bf16.msra.mxu0 %v1481_v3  ;;  %v1349_v14 = vpack.c.bf16 %v570_v13, %v570_v13  ;;  %v610_v15 = vld [vmem:[#allocation2 + $0x2] sm:$0xf] }
  0x1e   : > { %431 = vmatprep.subr.bf16.mxu0 %v1576_v1  ;;  %v779_v16 = vld [vmem:[#allocation2 + $0x28] sm:$0xf]  ;;  %v1353_v17 = vpack.c.bf16 %v610_v15, %v610_v15  ;;  %v546_v26 = vld [vmem:[#allocation2] sm:$0xf] }
  0x1f   : > { %575 = vrot.lane.b32.xlu0 %v1349_v14, %s1579_s21  ;;  %v1370_v18 = vpack.c.bf16 %v779_v16, %v779_v16  ;;  %v841_v20 = vld [vmem:[#allocation2 + $0x2a] sm:$0xf]  ;;  %v547_v27 = vpack.c.bf16 %v546_v26, %v546_v26  ;;  %v1497_v14 = vld [vmem:[%s1921_s5 + $0x70] sm:$0xff]  }
  0x20   : > { %615 = vrot.lane.b32.xlu1 %v1353_v17, %s1578_s16  ;;  %v1376_v21 = vpack.c.bf16 %v841_v20, %v841_v20 }
  0x21   : > { %432 = vmatpush1.bf16.msra.mxu0 %v1482_v4  ;;  %v784_v19 = vrot.slane %v1370_v18, 6  ;;  %549 = vst.msk [vmem:[#allocation3] sm:$0x3] %vm548_vm4, %v547_v27 }
  0x22   : > { %433 = vmatprep.subr.bf16.mxu0 %v1576_v1  ;;  %v846_v22 = vrot.slane %v1376_v21, 6 }
  0x23   : > { %785 = vrot.lane.b32.xlu0 %v784_v19, %s1578_s16 }
  0x24   : > { %848 = vst.msk [vmem:[#allocation3 + $0x14] sm:$0xc] %vm557_vm2, %v846_v22 }
  0x25   : > { %434 = vmatpush1.bf16.msra.mxu0 %v1483_v6 }
  0x26   : > { %435 = vmatprep.subr.bf16.mxu0 %v1576_v1 }
  0x29   : > { %436 = vmatpush1.bf16.msra.mxu0 %v1484_v7 }
  0x2a   : > { %437 = vmatprep.subr.bf16.mxu0 %v1576_v1 }
  0x2d   : > { %438 = vmatpush1.bf16.msra.mxu0 %v1485_v8 }
  0x2e   : > { %439 = vmatprep.subr.bf16.mxu0 %v1576_v1 }
  0x31   : > { %440 = vmatpush1.bf16.msra.mxu0 %v1486_v9  ;;  %v1496_v9 = vld [vmem:[%s1921_s5 + $0x38] sm:$0xff]  }
  0x32   : > { %455 = vmatprep.subr.bf16.mxu0 %v1576_v1 }
  0x35   : > { %456 = vmatpush2.bf16.msra.mxu0 %v1487_v10 }
  0x36   : > { %1415 = vmatprep.subr.bf16.mxu0 %v1577_v12 }
  0x38   : > { %458 = vmatmul.mubr.bf16.vlgmr.msra.gmra.mxu0 %v1488_v11 }
  0x39   : > { %1416 = vmatpush3.bf16.msra.mxu0 %v1491_v23  ;;  %1419 = vmatprep.mubr.msk.bf16.mxu0 %vm1580_vm3, %v1577_v12 }
  0x3a   : > { %1417 = vmatprep.subr.bf16.mxu0 %v1577_v12 }
  0x3d   : > { %1418 = vmatpush3.bf16.msra.mxu0 %v1492_v24 }
  0x8b   : > { %v478_v28 = vpop.permute.xlu0 %477 }
  0x8c   : > { %1412 = vmatmul.mubr.msk.bf16.vlgmr.msra.gmra.mxu1 %vm421_vm0, %v478_v28 }
  0x8d   : > { %1380 = vmatpush3.bf16.msra.mxu1 %v1496_v9 }
  0x8e   : > { %1381 = vmatprep.subr.bf16.mxu1 %v1497_v14 }
  0x91   : > { %v576_v29 = vpop.permute.xlu0 %575 }
  0x92   : > { %579 = vst.msk [vmem:[#allocation3] sm:$0x3] %vm578_vm5, %v576_v29  ;;  %v616_v30 = vpop.permute.xlu1 %615  ;;  %v1498_v29 = vld [vmem:[%s1921_s5 + $0x30] sm:$0xff]  }
  0x93   : > { %619 = vst.msk [vmem:[#allocation3] sm:$0x3] %vm618_vm6, %v616_v30  ;;  %1382 = vmatpush3.bf16.msra.mxu1 %v1498_v29 }
  0xf8   : > { %v459_v32 = vpop.f32.mrf.mxu0 }
  0xf9   : > { %v460_v33 = vadd.f32 %v1273_v31, %v459_v32 }
  0xfa   : > { %v461_v34 = vpop.f32.mrf.mxu0 }
  0xfb   : > { %v466_v35 = vmax.f32 %v460_v33, 0.0 }
  0xfc   : > { %v462_v36 = vpop.f32.mrf.mxu0 }
  0xfd   : > { %538 = vst.msk [vmem:[#allocation2 + $0x9] sm:$0xf] %vm537_vm7, %v466_v35  ;;  %v463_v37 = vadd.f32 %v1273_v31, %v462_v36  ;;  %v1499_v31 = vld [vmem:[%s1921_s5 + $0x68] sm:$0xff]  }
  0xfe   : > { %541 = vst.msk [vmem:[#allocation2 + $0xd] sm:$0xf0] %vm540_vm8, %v466_v35  ;;  %v464_v38 = vpop.f32.mrf.mxu0  ;;  %1383 = vmatprep.subr.bf16.mxu1 %v1499_v31  ;;  %v1500_v35 = vld [vmem:[%s1921_s5 + $0x28] sm:$0xff]  }
  0xff   : > { %v467_v39 = vmax.f32 %v463_v37, 0.0  ;;  %1384 = vmatpush3.bf16.msra.mxu1 %v1500_v35 }
 0x101   : > { %543 = vst.msk [vmem:[#allocation2 + $0x19] sm:$0xf] %vm537_vm7, %v467_v39 }
 0x102   : > { %545 = vst.msk [vmem:[#allocation2 + $0x1d] sm:$0xf0] %vm540_vm8, %v467_v39  ;;  %v1501_v39 = vld [vmem:[%s1921_s5 + $0x60] sm:$0xff]  }
 0x103   : > { %1385 = vmatprep.subr.bf16.mxu1 %v1501_v39 }
 0x104   : > { %v620_v46 = vld [vmem:[#allocation2 + $0xa] sm:$0xf] }
 0x105   : > { %v827_v40 = vld [vmem:[#allocation2 + $0x12] sm:$0xf]  ;;  %v712_v47 = vld [vmem:[#allocation2 + $0xa] sm:$0xf]  ;;  %v1354_v49 = vpack.c.bf16 %v620_v46, %v620_v46  ;;  %v1503_v46 = vld [vmem:[%s1921_s5 + $0x58] sm:$0xff]  }
 0x106   : > { %v591_v41 = vld [vmem:[#allocation2 + $0x11] sm:$0xf]  ;;  %v828_v43 = vpack.c.bf16 %v827_v40, %v827_v40  ;;  %v1363_v55 = vpack.c.bf16 %v712_v47, %v712_v47  ;;  %v690_v7 = vld [vmem:[#allocation2 + $0x9] sm:$0xf] }
 0x107   : > { %v721_v42 = vld [vmem:[#allocation2 + $0x12] sm:$0xf]  ;;  %v1351_v44 = vpack.c.bf16 %v591_v41, %v591_v41  ;;  %v625_v58 = vrot.slane %v1354_v49, 6  ;;  %v691_v10 = vpack.c.bf16 %v690_v7, %v690_v7  ;;  %v550_v15 = vld [vmem:[#allocation2 + $0x8] sm:$0xf]  ;;  %v1504_v49 = vld [vmem:[%s1921_s5 + $0x18] sm:$0xff]  }
 0x108   : > { %v1364_v45 = vpack.c.bf16 %v721_v42, %v721_v42  ;;  %829 = vst.msk [vmem:[#allocation3 + $0x8] sm:$0x3] %vm548_vm4, %v828_v43  ;;  %v830_v50 = vld [vmem:[#allocation2 + $0x1a] sm:$0xf]  ;;  %v660_v52 = vld [vmem:[#allocation2 + $0x10] sm:$0xf]  ;;  %v1347_v19 = vpack.c.bf16 %v550_v15, %v550_v15 }
 0x109   : > { %596 = vrot.lane.b32.xlu1 %v1351_v44, %s1579_s21  ;;  %v838_v51 = vld [vmem:[#allocation2 + $0x22] sm:$0xf]  ;;  %v1375_v53 = vpack.c.bf16 %v830_v50, %v830_v50  ;;  %v631_v56 = vld [vmem:[#allocation2 + $0x12] sm:$0xf]  ;;  %v1358_v59 = vpack.c.bf16 %v660_v52, %v660_v52  ;;  %v600_v60 = vld [vmem:[#allocation2 + $0x19] sm:$0xf] }
 0x10a   : > { %v726_v48 = vrot.slane %v1364_v45, 6  ;;  %v839_v54 = vpack.c.bf16 %v838_v51, %v838_v51  ;;  %v1355_v61 = vpack.c.bf16 %v631_v56, %v631_v56  ;;  %v750_v62 = vld [vmem:[#allocation2 + $0x10] sm:$0xf]  ;;  %v740_v63 = vld [vmem:[#allocation2 + $0x22] sm:$0xf]  ;;  %v1352_v4 = vpack.c.bf16 %v600_v60, %v600_v60 }
 0x10b   : > { %v835_v57 = vrot.slane %v1375_v53, 6  ;;  %v559_v0 = vld [vmem:[#allocation2 + $0x10] sm:$0xf]  ;;  %v665_v3 = vrot.slane %v1358_v59, 6  ;;  %v562_v8 = vld [vmem:[#allocation2 + $0x18] sm:$0xf]  ;;  %v1367_v16 = vpack.c.bf16 %v750_v62, %v750_v62  ;;  %v1366_v25 = vpack.c.bf16 %v740_v63, %v740_v63 }
 0x10c   : > { %727 = vrot.lane.b32.xlu0 %v726_v48, %s1579_s21  ;;  %840 = vst.msk [vmem:[#allocation3 + $0x14] sm:$0x3] %vm548_vm4, %v839_v54  ;;  %v693_v1 = vld [vmem:[#allocation2 + $0x11] sm:$0xf]  ;;  %v560_v5 = vpack.c.bf16 %v559_v0, %v559_v0  ;;  %v1348_v11 = vpack.c.bf16 %v562_v8, %v562_v8  ;;  %v704_v13 = vld [vmem:[#allocation2 + $0x21] sm:$0xf]  ;;  %v786_v8 = vpop.permute.xlu0 %785 }
 0x10d   : > { %717 = vrot.lane.b32.xlu1 %v1363_v55, %s1579_s21  ;;  %837 = vst.msk [vmem:[#allocation3 + $0x8] sm:$0xc] %vm557_vm2, %v835_v57  ;;  %v1361_v6 = vpack.c.bf16 %v693_v1, %v693_v1  ;;  %v1362_v18 = vpack.c.bf16 %v704_v13, %v704_v13  ;;  %v701_v20 = vld [vmem:[#allocation2 + $0x19] sm:$0xf]  ;;  %v650_v21 = vld [vmem:[#allocation2 + $0x8] sm:$0xf] }
 0x10e   : > { %561 = vst.msk [vmem:[#allocation3 + $0xc] sm:$0x3] %vm548_vm4, %v560_v5  ;;  %692 = vst.msk [vmem:[#allocation3 + $0x4] sm:$0x3] %vm548_vm4, %v691_v10  ;;  %v567_v22 = vrot.slane %v1348_v11, 6  ;;  %v702_v23 = vpack.c.bf16 %v701_v20, %v701_v20  ;;  %v605_v24 = vrot.slane %v1352_v4, 6  ;;  %v1357_v32 = vpack.c.bf16 %v650_v21, %v650_v21 }
 0x10f   : > { %v698_v17 = vrot.slane %v1361_v6, 6  ;;  %v640_v26 = vld [vmem:[#allocation2 + $0x1a] sm:$0xf]  ;;  %v709_v27 = vrot.slane %v1362_v18, 6  ;;  %v555_v28 = vrot.slane %v1347_v19, 6  ;;  %v745_v36 = vrot.slane %v1366_v25, 6 }
 0x110   : > { %626 = vrot.lane.b32.xlu0 %v625_v58, %s1578_s16  ;;  %569 = vst.msk [vmem:[#allocation3 + $0xc] sm:$0xc] %vm557_vm2, %v567_v22  ;;  %v789_v33 = vld [vmem:[#allocation2 + $0x11] sm:$0xf]  ;;  %v580_v34 = vld [vmem:[#allocation2 + $0x9] sm:$0xf]  ;;  %v1356_v37 = vpack.c.bf16 %v640_v26, %v640_v26 }
 0x111   : > { %636 = vrot.lane.b32.xlu1 %v1355_v61, %s1578_s16  ;;  %700 = vst.msk [vmem:[#allocation3 + $0x4] sm:$0xc] %vm557_vm2, %v698_v17  ;;  %711 = vst.msk [vmem:[#allocation3 + $0x10] sm:$0xc] %vm557_vm2, %v709_v27  ;;  %v759_v38 = vld [vmem:[#allocation2 + $0x18] sm:$0xf]  ;;  %v1371_v40 = vpack.c.bf16 %v789_v33, %v789_v33  ;;  %v1350_v41 = vpack.c.bf16 %v580_v34, %v580_v34 }
 0x112   : > { %703 = vst.msk [vmem:[#allocation3 + $0x10] sm:$0x3] %vm548_vm4, %v702_v23  ;;  %v1502_v42 = vld [vmem:[%s1921_s5 + $0x20] sm:$0xff]   ;;  %v645_v43 = vrot.slane %v1356_v37, 6  ;;  %v1368_v44 = vpack.c.bf16 %v759_v38, %v759_v38  ;;  %v731_v48 = vld [vmem:[#allocation2 + $0x1a] sm:$0xf] }
 0x113   : > { %558 = vst.msk [vmem:[#allocation3] sm:$0xc] %vm557_vm2, %v555_v28  ;;  %v680_v45 = vld [vmem:[#allocation2 + $0x20] sm:$0xf]  ;;  %v585_v47 = vrot.slane %v1350_v41, 6  ;;  %1386 = vmatpush3.bf16.msra.mxu1 %v1502_v42  ;;  %v1505_v50 = vld [vmem:[%s1921_s5 + $0x50] sm:$0xff]   ;;  %v1365_v54 = vpack.c.bf16 %v731_v48, %v731_v48 }
 0x114   : > { %666 = vrot.lane.b32.xlu0 %v665_v3, %s1581_s26  ;;  %v1493_v30 = vld [vmem:[#allocation3 + $0x8] ss:$12 sps:$4 sm:$0xff]   ;;  %1387 = vmatprep.subr.bf16.mxu1 %v1503_v46  ;;  %v764_v51 = vrot.slane %v1368_v44, 6  ;;  %v1360_v52 = vpack.c.bf16 %v680_v45, %v680_v45  ;;  %v817_v55 = vld [vmem:[#allocation2 + $0x29] sm:$0xf]  ;;  %v1506_v57 = vld [vmem:[%s1921_s5 + $0x10] sm:$0xff]  }
 0x115   : > { %755 = vrot.lane.b32.xlu1 %v1367_v16, %s1578_s16  ;;  %1420 = vmatmul.mubr.msk.bf16.vlgmr.msra.gmra.mxu0 %vm1019_vm9, %v1493_v30  ;;  %v798_v53 = vld [vmem:[#allocation2 + $0x19] sm:$0xf]  ;;  %v769_v56 = vld [vmem:[#allocation2 + $0x20] sm:$0xf]  ;;  %v1507_v58 = vld [vmem:[%s1921_s5 + $0x48] sm:$0xff]   ;;  %v1374_v62 = vpack.c.bf16 %v817_v55, %v817_v55 }
 0x116   : > { %v685_v59 = vrot.slane %v1360_v52, 6  ;;  %v1372_v60 = vpack.c.bf16 %v798_v53, %v798_v53  ;;  %v1369_v61 = vpack.c.bf16 %v769_v56, %v769_v56  ;;  %v1508_v63 = vld [vmem:[%s1921_s5 + $0x8] sm:$0xff]   ;;  %v671_v0 = vld [vmem:[#allocation2 + $0x18] sm:$0xf]  ;;  %v1509_v1 = vld [vmem:[%s1921_s5 + $0x40] sm:$0xff]  }
 0x117   : > { %1388 = vmatpush3.bf16.msra.mxu1 %v1504_v49  ;;  %v1359_v3 = vpack.c.bf16 %v671_v0, %v671_v0  ;;  %v822_v4 = vrot.slane %v1374_v62, 6  ;;  %v1510_v5 = vld [vmem:[%s1921_s5] sm:$0xff]   ;;  %v1122_v41 = vld [vmem:[%s1923_s7 + $0x18] sm:$0xff]  ;;  %v1121_v42 = vld [vmem:[%s1923_s7 + $0x10] sm:$0xff] }
 0x118   : > { %606 = vrot.lane.b32.xlu0 %v605_v24, %s1579_s21  ;;  %1389 = vmatprep.subr.bf16.mxu1 %v1505_v50  ;;  %v803_v2 = vrot.slane %v1372_v60, 6  ;;  %v808_v6 = vld [vmem:[#allocation2 + $0x21] sm:$0xf]  ;;  %v1319_v46 = vld [vmem:[%s1922_s6] ss:$0 sm:$0xff] }
 0x119   : > { %655 = vrot.lane.b32.xlu1 %v1357_v32, %s1581_s26  ;;  %v1373_v7 = vpack.c.bf16 %v808_v6, %v808_v6  ;;  %v1119_v44 = vld [vmem:[%s1923_s7] sm:$0xff] }
 0x11a   : > { %v1286_v49 = vld [vmem:[%s1920_s4] ss:$0 sm:$0xff] }
 0x11b   : > { %1390 = vmatpush3.bf16.msra.mxu1 %v1506_v57 }
 0x11c   : > { %746 = vrot.lane.b32.xlu0 %v745_v36, %s1579_s21  ;;  %1391 = vmatprep.subr.bf16.mxu1 %v1507_v58 }
 0x11d   : > { %794 = vrot.lane.b32.xlu1 %v1371_v40, %s1581_s26 }
 0x11f   : > { %1392 = vmatpush3.bf16.msra.mxu1 %v1508_v63 }
 0x120   : > { %646 = vrot.lane.b32.xlu0 %v645_v43, %s1578_s16  ;;  %1393 = vmatprep.subr.bf16.mxu1 %v1509_v1  ;;  %v1120_v43 = vld [vmem:[%s1923_s7 + $0x8] sm:$0xff] }
 0x121   : > { %586 = vrot.lane.b32.xlu1 %v585_v47, %s1579_s21 }
 0x123   : > { %1394 = vmatpush3.bf16.msra.mxu1 %v1510_v5 }
 0x124   : > { %765 = vrot.lane.b32.xlu0 %v764_v51, %s1578_s16  ;;  %1423 = vmatprep.subr.mxu1 %v1577_v12 }
 0x125   : > { %736 = vrot.lane.b32.xlu1 %v1365_v54, %s1579_s21 }
 0x128   : > { %686 = vrot.lane.b32.xlu0 %v685_v59, %s1581_s26 }
 0x129   : > { %774 = vrot.lane.b32.xlu1 %v1369_v61, %s1578_s16  ;;  %s323_s16 = sand.u32 1, %s1566_s10  }
 0x12a   : > { %s324_s27 = scalar_lea.vmem [#allocation4], %s323_s16  ;;  %s1200_s22 = scalar_lea.sflag [#allocation5], %s323_s16 }
 0x12b   : > { %s1212_s28 = sshll.u32 %s324_s27, 4  ;;  %s1213_s28 = int_to_ptr.vmem [resolvable:$true] %s1212_s28 }
 0x12c   : > { %804 = vrot.lane.b32.xlu0 %v803_v2, %s1581_s26  ;;  %s1514_s21 = scalar_lea.vmem %s1213_s28, 16  ;;  %p1521_p0 = scmp.lt.s32.totalorder %s1213_s28, %s1519_s23 }
 0x12d   : > { %676 = vrot.lane.b32.xlu1 %v1359_v3, %s1581_s26  ;;  %p1515_p11 = scmp.ne.s32.totalorder %s1213_s28, %s1514_s21 }
 0x12f   : > { %p1516_p12 = pnand %p1515_p11, %p1671_p5 }
 0x130   : > { %823 = vrot.lane.b32.xlu0 %v822_v4, %s1581_s26 }
 0x131   : > { %813 = vrot.lane.b32.xlu1 %v1373_v7, %s1581_s26  ;;  %p1517_p13 = pneg %p1516_p12  ;;  %s1520_s26 = scalar_lea.vmem %s1519_s23, 32 }
 0x132   : > { %p1522_p1 = scmp.lt.s32.totalorder %s1520_s26, %s1514_s21 }
 0x134   : > { %p1523_p2 = por %p1522_p1, %p1521_p0 }
 0x136   : > { %p1524_p3 = pnand %p1523_p2, %p1517_p13 }
 0x14c   : > { %v522_v33 = vpop.f32.mrf.mxu1 }
 0x14d   : > { %v523_v53 = vadd.f32 %v1286_v49, %v522_v33 }
 0x14e   : > { %v1413_v34 = vpop.f32.mrf.mxu1 }
 0x150   : > { %v525_v35 = vpop.f32.mrf.mxu1 }
 0x151   : > { %v526_v57 = vadd.f32 %v1286_v49, %v525_v35 }
 0x152   : > { %v1414_v36 = vpop.f32.mrf.mxu1 }
 0x17b   : > { %v597_v9 = vpop.permute.xlu1 %596 }
 0x17c   : > { %599 = vst.msk [vmem:[#allocation3 + $0xc] sm:$0x3] %vm578_vm5, %v597_v9 }
 0x17e   : > { %v728_v10 = vpop.permute.xlu0 %727 }
 0x17f   : > { %730 = vst.msk [vmem:[#allocation3 + $0x4] sm:$0xc] %vm589_vm10, %v728_v10  ;;  %v718_v11 = vpop.permute.xlu1 %717 }
 0x180   : > { %720 = vst.msk [vmem:[#allocation3 + $0x4] sm:$0x3] %vm578_vm5, %v718_v11 }
 0x182   : > { %v627_v13 = vpop.permute.xlu0 %626 }
 0x183   : > { %v637_v14 = vpop.permute.xlu1 %636 }
 0x184   : > { %639 = vst.msk [vmem:[#allocation3 + $0xc] sm:$0x3] %vm618_vm6, %v637_v14 }
 0x186   : > { %v667_v15 = vpop.permute.xlu0 %666 }
 0x187   : > { %v756_v16 = vpop.permute.xlu1 %755 }
 0x188   : > { %758 = vst.msk [vmem:[#allocation3 + $0x4] sm:$0x3] %vm618_vm6, %v756_v16 }
 0x18a   : > { %v607_v17 = vpop.permute.xlu0 %606 }
 0x18b   : > { %609 = vst.msk [vmem:[#allocation3 + $0xc] sm:$0xc] %vm589_vm10, %v607_v17  ;;  %v656_v18 = vpop.permute.xlu1 %655 }
 0x18c   : > { %659 = vst.msk [vmem:[#allocation3] sm:$0x3] %vm658_vm11, %v656_v18 }
 0x18e   : > { %v747_v19 = vpop.permute.xlu0 %746 }
 0x18f   : > { %749 = vst.msk [vmem:[#allocation3 + $0x10] sm:$0xc] %vm589_vm10, %v747_v19  ;;  %v795_v20 = vpop.permute.xlu1 %794 }
 0x190   : > { %788 = vst.msk [vmem:[#allocation3 + $0x10] sm:$0xc] %vm629_vm12, %v786_v8  ;;  %v1123_v8 = vld [vmem:[%s1924_s8] sm:$0x1] }
 0x191   : > { %797 = vst.msk [vmem:[#allocation3 + $0x4] sm:$0x3] %vm658_vm11, %v795_v20 }
 0x192   : > { %v647_v21 = vpop.permute.xlu0 %646 }
 0x193   : > { %649 = vst.msk [vmem:[#allocation3 + $0xc] sm:$0xc] %vm629_vm12, %v647_v21  ;;  %v587_v22 = vpop.permute.xlu1 %586 }
 0x194   : > { %590 = vst.msk [vmem:[#allocation3] sm:$0xc] %vm589_vm10, %v587_v22 }
 0x195   : > { %630 = vst.msk [vmem:[#allocation3] sm:$0xc] %vm629_vm12, %v627_v13 }
 0x196   : > { %v766_v23 = vpop.permute.xlu0 %765  ;;  %670 = vst.msk [vmem:[#allocation3] sm:$0xc] %vm669_vm13, %v667_v15 }
 0x197   : > { %768 = vst.msk [vmem:[#allocation3 + $0x4] sm:$0xc] %vm629_vm12, %v766_v23  ;;  %v737_v24 = vpop.permute.xlu1 %736 }
 0x198   : > { %739 = vst.msk [vmem:[#allocation3 + $0x10] sm:$0x3] %vm578_vm5, %v737_v24 }
 0x19a   : > { %v687_v25 = vpop.permute.xlu0 %686 }
 0x19b   : > { %689 = vst.msk [vmem:[#allocation3 + $0xc] sm:$0xc] %vm669_vm13, %v687_v25  ;;  %v775_v26 = vpop.permute.xlu1 %774 }
 0x19c   : > { %777 = vst.msk [vmem:[#allocation3 + $0x10] sm:$0x3] %vm618_vm6, %v775_v26 }
 0x19e   : > { %v805_v27 = vpop.permute.xlu0 %804 }
 0x19f   : > { %807 = vst.msk [vmem:[#allocation3 + $0x4] sm:$0xc] %vm669_vm13, %v805_v27  ;;  %v677_v28 = vpop.permute.xlu1 %676 }
 0x1a0   : > { %679 = vst.msk [vmem:[#allocation3 + $0xc] sm:$0x3] %vm658_vm11, %v677_v28 }
 0x1a2   : > { %v824_v29 = vpop.permute.xlu0 %823 }
 0x1a3   : > { %826 = vst.msk [vmem:[#allocation3 + $0x10] sm:$0xc] %vm669_vm13, %v824_v29  ;;  %v814_v30 = vpop.permute.xlu1 %813 }
 0x1a4   : > { %816 = vst.msk [vmem:[#allocation3 + $0x10] sm:$0x3] %vm658_vm11, %v814_v30 }
 0x1a7   : > { %v1511_v31 = vld [vmem:[#allocation3] ss:$12 sps:$4 sm:$0xff]  }
 0x1ab   : > { %v1513_v32 = vld [vmem:[#allocation3 + $0x4] ss:$12 sps:$4 sm:$0xff]  }
 0x1ac   : > { %1055 = vmatprep.mubr.bf16.mxu1 %v1513_v32 }
 0x1ad   : > { %1056 = vmatmul.mubr.bf16.vlgmr.msra.gmra.mxu1 %v1511_v31 }
 0x1ae   : > { %1431 = vmatprep.mubr.msk.f32.mxu1 %vm1580_vm3, %v1577_v12  ;;  %1424 = vmatpush3.msra.mxu1 %v1122_v41 }
 0x1af   : > { %1425 = vmatprep.subr.mxu1 %v1577_v12 }
 0x1b0   : > { %1426 = vmatpush3.msra.mxu1 %v1121_v42 }
 0x1b1   : > { %1427 = vmatprep.subr.mxu1 %v1577_v12 }
 0x1b2   : > { %1428 = vmatpush3.msra.mxu1 %v1120_v43 }
 0x1b3   : > { %1429 = vmatprep.subr.mxu1 %v1577_v12 }
 0x1b4   : > { %1430 = vmatpush3.msra.mxu1 %v1119_v44 }
 0x1d5   : > { %v1098_v37 = vpop.f32.mrf.mxu0 }
 0x1d7   : > { %v1421_v38 = vpop.f32.mrf.mxu0 }
 0x1d9   : > { %v1101_v39 = vpop.f32.mrf.mxu0 }
 0x1db   : > { %v1422_v40 = vpop.f32.mrf.mxu0 }
 0x26d   : > { %v1395_v45 = vpop.f32.mrf.mxu1 }
 0x26f   : > { %v1396_v47 = vpop.f32.mrf.mxu1 }
 0x270   : > { %v1397_v48 = vadd.f32 %v1396_v47, %v1395_v45 }
 0x271   : > { %v1398_v50 = vpop.f32.mrf.mxu1 }
 0x272   : > { %v1058_v51 = vadd.f32 %v1397_v48, %v1319_v46 }
 0x273   : > { %v1399_v52 = vpop.f32.mrf.mxu1 }
 0x274   : > { %v1099_v54 = vadd.f32 %v1098_v37, %v1058_v51  ;;  %v1400_v55 = vadd.f32 %v1399_v52, %v1398_v50 }
 0x276   : > { %v1105_v56 = vadd.f32 %v1099_v54, %v523_v53  ;;  %v1061_v12 = vadd.f32 %v1400_v55, %v1319_v46 }
 0x278   : > { %v1102_v58 = vadd.f32 %v1101_v39, %v1061_v12  ;;  %v1107_v59 = vmax.f32 %v1105_v56, 0.0 }
 0x27a   : > { %v1106_v60 = vadd.f32 %v1102_v58, %v526_v57  ;;  %v1109_v62 = vsel %vm1019_vm9, %v1107_v59, 0.0 }
 0x27c   : > { %v1108_v61 = vmax.f32 %v1106_v60, 0.0 }
 0x27e   : > { %v1110_v63 = vsel %vm1019_vm9, %v1108_v61, 0.0 }
 0x27f   : > { %v1111_v0 = vadd.f32 %v1110_v63, %v1109_v62 }
 0x281   : > { %v1112_v1 = vrot.slane %v1111_v0, 4 }
 0x283   : > { %v1113_v2 = vadd.f32 %v1112_v1, %v1111_v0 }
 0x285   : > { %v1114_v3 = vrot.slane %v1113_v2, 2 }
 0x287   : > { %v1115_v4 = vadd.f32 %v1114_v3, %v1113_v2 }
 0x289   : > { %v1116_v5 = vrot.slane %v1115_v4, 1 }
 0x28b   : > { %v1117_v6 = vadd.f32 %v1116_v5, %v1115_v4 }
 0x28d   : > { %v1118_v7 = vmul.f32 0.0625, %v1117_v6 }
 0x28f   : > { %1432 = vmatmul.mubr.msk.f32.vlgmr.msra.gmra.mxu1 %vm1019_vm9, %v1118_v7 }
 0x34f   : > { %v1193_v9 = vpop.f32.mrf.mxu1 }
 0x350   : > { %v1194_v10 = vadd.f32 %v1193_v9, %v1123_v8 }
 0x351   : > { %v1433_v11 = vpop.f32.mrf.mxu1 }
 0x352   : > { %1198 = vst.msk [vmem:[%s324_s27] sm:$0x1] %vm1197_vm14, %v1194_v10 }
 0x353   : > { %1527 = shalt.err (!%p1524_p3)
}
 0x354   : > { %s1528_s24 = scalar_lea.hbm %s1881_s17, 16  ;;  %s1532_s27 = scalar_lea.hbm %s1925_s9, 32 }
 0x355   : > { %p1529_p4 = scmp.ne.s32.totalorder %s1881_s17, %s1528_s24  ;;  %p1533_p9 = scmp.lt.s32.totalorder %s1881_s17, %s1925_s9 }
 0x356   : > { %p1534_p10 = scmp.lt.s32.totalorder %s1532_s27, %s1528_s24 }
 0x357   : > { %p1530_p7 = pnand %p1529_p4, %p1671_p5 }
 0x358   : > { %p1535_p11 = por %p1534_p10, %p1533_p9 }
 0x359   : > { %p1531_p8 = pneg %p1530_p7 }
 0x35b   : > { %p1536_p12 = pnand %p1535_p11, %p1531_p8 }
 0x35d   : > { %1539 = shalt.err (!%p1536_p12)
}
 0x35e   : > { %1434 = dma.vmem_to_hbm [thread:$0]  (%p1671_p5), %s1213_s28, 16, %s1881_s17, %s1200_s22  }
 0x35f PF: > { %p1440_p13 = scmp.ge.s32.totalorder %s1574_s12, 2  ;;  %s1224_s21 = sand.u32 1, %s1562_s30  }
 0x360   : > { %s1225_s13 = scalar_lea.sflag [#allocation5], %s1224_s21 }
 0x361   : > { %p1437_p0 = pnand %p1440_p13, %p1675_p6 }
 0x363   : > { %p1438_p1 = pneg %p1437_p0 }
 0x365   : > { %1557 = dma.done.wait (%p1438_p1), %s1225_s13, 16  }
 0x366   : > { %1559 = vsyncadd (%p1438_p1), %s1225_s13, 4294967280  ;;  %p19_p2 = scmp.ge.s32.totalorder %s1658_s15, 4   ;;  %s1928_s30 = smov %s1566_s10 }
 0x367   : > { %s1929_s10 = smov %s1570_s11  ;;  %s1930_s11 = smov %s1669_s18 }
 0x368   : > { %s1931_s12 = smov %s1658_s15  ;;  %21 = sbr.rel (!%p19_p2) target bundleno = 3 (0x3), region = 96 }
 0x36d   :  { %1229 = vsyncpa [#allocation5], 1 }
 0x36e   :  { %1231 = vsyncpa [#allocation5 + $0x1], 1 }

// kernel: resnet_forward.2
= control target key start
LH: loop header
LB: loop body
LE: loop exit
PB: predicated region body
PF: predicated region fallthrough
CT: control target
= control target key end

     0   :  { %s3250_s24 = smov 0   ;;  %s4044_s0 = inlined_call_operand.vmem [shape: bf16[2,256,256], index: 0, kind: input, shape index: {}]   ;;  %s4045_s1 = inlined_call_operand.vmem [shape: bf16[256,16], index: 1, kind: input, shape index: {}]   ;;  %s4046_s2 = inlined_call_operand.vmem [shape: f32[1,16], index: 2, kind: input, shape index: {}]   ;;  %s4047_s3 = inlined_call_operand.vmem [shape: bf16[144,16], index: 3, kind: input, shape index: {}]   ;;  %s4048_s4 = inlined_call_operand.vmem [shape: f32[1,16], index: 4, kind: input, shape index: {}]   ;;  %s4049_s5 = inlined_call_operand.vmem [shape: bf16[144,16], index: 5, kind: input, shape index: {}]   ;;  %s4050_s6 = inlined_call_operand.vmem [shape: f32[1,16], index: 6, kind: input, shape index: {}]   ;;  %s4051_s7 = inlined_call_operand.vmem [shape: bf16[2,64,16], index: 7, kind: output, shape index: {}]  }
   0x1 LB: > { %s2562_s25 = sadd.s32 4294967295, %s3199_s24   ;;  %p2566_p0 = scmp.ge.s32.totalorder %s3199_s24, 1  ;;  %s3199_s24 = sphi %s3250_s24, %s17_s24  }
   0x2   : > { %p237_p1 = scmp.lt.s32.totalorder %s3199_s24, 3 }
   0x4   : > { %p238_p2 = pnand %p2566_p0, %p237_p1 }
   0x5   : > { %p269_p3 = scmp.lt.s32.totalorder (!%p238_p2), %s2562_s25, 1  ;;  %s3202_s18 = smov (!%p238_p2), 32  }
   0x6   : > { %241 = sbr.rel (%p238_p2) target bundleno = 1180 (0x49c), region = 48  ;;  %s3204_s20 = smov (!%p238_p2), 16  }
   0x7   : > { %s3206_s29 = smov (!%p238_p2), 48   ;;  %s3207_s30 = smov (!%p238_p2), 64  }
   0x8   : > { %s3208_s10 = smov (!%p238_p2), 80   ;;  %s3209_s22 = smov (!%p238_p2), 112  }
   0xb   : > { %v3101_v0 = vld [vmem:[%s4045_s1 + $0x78] sm:$0xff]   ;;  %v3103_v2 = vld [vmem:[%s4045_s1 + $0x70] sm:$0xff]   ;;  %v3105_v4 = vld [vmem:[%s4045_s1 + $0x68] sm:$0xff]   ;;  %s4053_s25 = smov (!%p269_p3, %s2562_s25), 1  ;;  %vm800_vm0 = vcmask 130048   ;;  %vm802_vm1 = vcmask 123904  }
   0xc   : > { %v3102_v1 = vld [vmem:[%s4045_s1 + $0x38] sm:$0xff]   ;;  %2972 = vmatprep.subr.bf16.mxu0 %v3101_v0  ;;  %v3104_v3 = vld [vmem:[%s4045_s1 + $0x30] sm:$0xff]   ;;  %v3106_v5 = vld [vmem:[%s4045_s1 + $0x28] sm:$0xff]   ;;  %s2818_s19 = sshll.u32 %s4053_s25, 8  ;;  %v3201_v48 = vmov 0.0   ;;  %vm979_vm2 = vcmask 125952  }
   0xd   : > { %2973 = vmatpush3.bf16.msra.mxu0 %v3102_v1  ;;  %v3107_v6 = vld [vmem:[%s4045_s1 + $0x60] sm:$0xff]   ;;  %v3109_v8 = vld [vmem:[%s4045_s1 + $0x58] sm:$0xff]   ;;  %s3291_s26 = scalar_lea.vmem %s4044_s0, %s2818_s19  ;;  %v3111_v10 = vld [vmem:[%s4045_s1 + $0x50] sm:$0xff]   ;;  %804 = vst.msk [vmem:[#allocation2 + $0x10] sm:$0xff] %vm800_vm0, %v3201_v48  ;;  %s3203_s19 = smov 96   ;;  %vm1044_vm3 = vcmask 257152  }
   0xe   : > { %2974 = vmatprep.subr.bf16.mxu0 %v3103_v2  ;;  %v3108_v7 = vld [vmem:[%s4045_s1 + $0x20] sm:$0xff]   ;;  %v3110_v9 = vld [vmem:[%s4045_s1 + $0x18] sm:$0xff]   ;;  %v3112_v12 = vld [vmem:[%s4045_s1 + $0x10] sm:$0xff]   ;;  %805 = vst.msk [vmem:[#allocation2 + $0x18] sm:$0x3] %vm802_vm1, %v3201_v48  ;;  %vm879_vm4 = vcmask 129024  }
   0xf   : > { %v3119_v11 = vld [vmem:[%s3291_s26 + $0x4] ss:$8 sps:$4 sm:$0xff]   ;;  %v3117_v17 = vld [vmem:[%s3291_s26] ss:$8 sps:$4 sm:$0xff]   ;;  %v3120_v18 = vld [vmem:[%s3291_s26 + $0x14] ss:$8 sps:$4 sm:$0xff]  }
  0x10   : > { %639 = vmatprep.mubr.bf16.mxu0 %v3119_v11  ;;  %v3113_v13 = vld [vmem:[%s4045_s1 + $0x48] sm:$0xff]   ;;  %v3115_v15 = vld [vmem:[%s4045_s1 + $0x40] sm:$0xff]   ;;  %v3122_v19 = vld [vmem:[%s3291_s26 + $0x10] ss:$8 sps:$4 sm:$0xff]   ;;  %801 = vst.msk [vmem:[#allocation2] sm:$0xff] %vm800_vm0, %v3201_v48  ;;  %vm1109_vm5 = vcmask 388352  }
  0x11   : > { %2975 = vmatpush3.bf16.msra.mxu0 %v3104_v3  ;;  %v3114_v14 = vld [vmem:[%s4045_s1 + $0x8] sm:$0xff]   ;;  %v3116_v16 = vld [vmem:[%s4045_s1] sm:$0xff]   ;;  %v3126_v22 = vld [vmem:[%s3291_s26 + $0x34] ss:$8 sps:$4 sm:$0xff]   ;;  %803 = vst.msk [vmem:[#allocation2 + $0x8] sm:$0x3] %vm802_vm1, %v3201_v48 }
  0x12   : > { %2976 = vmatprep.subr.bf16.mxu0 %v3105_v4  ;;  %v3123_v20 = vld [vmem:[%s3291_s26 + $0x24] ss:$8 sps:$4 sm:$0xff]   ;;  %v3125_v21 = vld [vmem:[%s3291_s26 + $0x20] ss:$8 sps:$4 sm:$0xff]   ;;  %v3128_v23 = vld [vmem:[%s3291_s26 + $0x30] ss:$8 sps:$4 sm:$0xff]  }
  0x13   : > { %v3129_v24 = vld [vmem:[%s3291_s26 + $0x44] ss:$8 sps:$4 sm:$0xff]   ;;  %v3131_v25 = vld [vmem:[%s3291_s26 + $0x40] ss:$8 sps:$4 sm:$0xff]   ;;  %v3132_v26 = vld [vmem:[%s3291_s26 + $0x54] ss:$8 sps:$4 sm:$0xff]  }
  0x14   : > { %v3134_v27 = vld [vmem:[%s3291_s26 + $0x50] ss:$8 sps:$4 sm:$0xff]   ;;  %v3135_v28 = vld [vmem:[%s3291_s26 + $0x64] ss:$8 sps:$4 sm:$0xff]   ;;  %v3137_v29 = vld [vmem:[%s3291_s26 + $0x60] ss:$8 sps:$4 sm:$0xff]  }
  0x15   : > { %2977 = vmatpush3.bf16.msra.mxu0 %v3106_v5  ;;  %v3138_v30 = vld [vmem:[%s3291_s26 + $0x74] ss:$8 sps:$4 sm:$0xff]   ;;  %v3140_v31 = vld [vmem:[%s3291_s26 + $0x70] ss:$8 sps:$4 sm:$0xff]   ;;  %v3141_v32 = vld [vmem:[%s3291_s26 + $0x84] ss:$8 sps:$4 sm:$0xff]  }
  0x16   : > { %2978 = vmatprep.subr.bf16.mxu0 %v3107_v6  ;;  %v3143_v33 = vld [vmem:[%s3291_s26 + $0x80] ss:$8 sps:$4 sm:$0xff]   ;;  %v3144_v34 = vld [vmem:[%s3291_s26 + $0x94] ss:$8 sps:$4 sm:$0xff]   ;;  %v3146_v35 = vld [vmem:[%s3291_s26 + $0x90] ss:$8 sps:$4 sm:$0xff]  }
  0x17   : > { %v3147_v36 = vld [vmem:[%s3291_s26 + $0xa4] ss:$8 sps:$4 sm:$0xff]   ;;  %v3149_v37 = vld [vmem:[%s3291_s26 + $0xa0] ss:$8 sps:$4 sm:$0xff]   ;;  %v3150_v38 = vld [vmem:[%s3291_s26 + $0xb4] ss:$8 sps:$4 sm:$0xff]  }
  0x18   : > { %v3152_v39 = vld [vmem:[%s3291_s26 + $0xb0] ss:$8 sps:$4 sm:$0xff]   ;;  %v3153_v40 = vld [vmem:[%s3291_s26 + $0xc4] ss:$8 sps:$4 sm:$0xff]   ;;  %v3155_v41 = vld [vmem:[%s3291_s26 + $0xc0] ss:$8 sps:$4 sm:$0xff]  }
  0x19   : > { %2979 = vmatpush3.bf16.msra.mxu0 %v3108_v7  ;;  %v3156_v42 = vld [vmem:[%s3291_s26 + $0xd4] ss:$8 sps:$4 sm:$0xff]   ;;  %v3158_v43 = vld [vmem:[%s3291_s26 + $0xd0] ss:$8 sps:$4 sm:$0xff]   ;;  %v3159_v44 = vld [vmem:[%s3291_s26 + $0xe4] ss:$8 sps:$4 sm:$0xff]  }
  0x1a   : > { %2980 = vmatprep.subr.bf16.mxu0 %v3109_v8  ;;  %v3161_v45 = vld [vmem:[%s3291_s26 + $0xe0] ss:$8 sps:$4 sm:$0xff]   ;;  %v3162_v46 = vld [vmem:[%s3291_s26 + $0xf4] ss:$8 sps:$4 sm:$0xff]   ;;  %v3164_v47 = vld [vmem:[%s3291_s26 + $0xf0] ss:$8 sps:$4 sm:$0xff]  }
  0x1b   : > { %806 = vst.msk [vmem:[#allocation2 + $0x20] sm:$0xff] %vm800_vm0, %v3201_v48  ;;  %808 = vst.msk [vmem:[#allocation2 + $0x30] sm:$0xff] %vm800_vm0, %v3201_v48  ;;  %v1053_v49 = vld [vmem:[#allocation2 + $0x2] sm:$0xff]  ;;  %vm1174_vm6 = vcmask 519552   ;;  %vm1239_vm7 = vcmask 650752   ;;  %vm1304_vm8 = vcmask 781952  }
  0x1c   : > { %807 = vst.msk [vmem:[#allocation2 + $0x28] sm:$0x3] %vm802_vm1, %v3201_v48  ;;  %809 = vst.msk [vmem:[#allocation2 + $0x38] sm:$0x3] %vm802_vm1, %v3201_v48  ;;  %v3366_v50 = vpack.c.bf16 %v1053_v49, %v1053_v49  ;;  %v988_v52 = vld [vmem:[#allocation2 + $0x1] sm:$0xff]  ;;  %vm1369_vm9 = vcmask 913152  }
  0x1d   : > { %2981 = vmatpush3.bf16.msra.mxu0 %v3110_v9  ;;  %810 = vst.msk [vmem:[#allocation2 + $0x40] sm:$0xff] %vm800_vm0, %v3201_v48  ;;  %812 = vst.msk [vmem:[#allocation2 + $0x50] sm:$0xff] %vm800_vm0, %v3201_v48  ;;  %v3372_v54 = vpack.c.bf16 %v988_v52, %v988_v52  ;;  %vm1434_vm10 = vcmask 1044352  }
  0x1e   : > { %2982 = vmatprep.subr.bf16.mxu0 %v3111_v10  ;;  %811 = vst.msk [vmem:[#allocation2 + $0x48] sm:$0x3] %vm802_vm1, %v3201_v48  ;;  %813 = vst.msk [vmem:[#allocation2 + $0x58] sm:$0x3] %vm802_vm1, %v3201_v48  ;;  %1085 = vrot.lane.b32.xlu1 %v3366_v50, %s3202_s18 }
  0x1f   : > { %814 = vst.msk [vmem:[#allocation2 + $0x60] sm:$0xff] %vm800_vm0, %v3201_v48  ;;  %816 = vst.msk [vmem:[#allocation2 + $0x70] sm:$0xff] %vm800_vm0, %v3201_v48  ;;  %1020 = vrot.lane.b32.xlu0 %v3372_v54, %s3204_s20 }
  0x20   : > { %815 = vst.msk [vmem:[#allocation2 + $0x68] sm:$0x3] %vm802_vm1, %v3201_v48  ;;  %817 = vst.msk [vmem:[#allocation2 + $0x78] sm:$0x3] %vm802_vm1, %v3201_v48 }
  0x21   : > { %2983 = vmatpush3.bf16.msra.mxu0 %v3112_v12  ;;  %818 = vst.msk [vmem:[#allocation2 + $0x80] sm:$0xff] %vm800_vm0, %v3201_v48  ;;  %820 = vst.msk [vmem:[#allocation2 + $0x90] sm:$0xff] %vm800_vm0, %v3201_v48 }
  0x22   : > { %2984 = vmatprep.subr.bf16.mxu0 %v3113_v13  ;;  %819 = vst.msk [vmem:[#allocation2 + $0x88] sm:$0x3] %vm802_vm1, %v3201_v48  ;;  %821 = vst.msk [vmem:[#allocation2 + $0x98] sm:$0x3] %vm802_vm1, %v3201_v48 }
  0x25   : > { %2985 = vmatpush3.bf16.msra.mxu0 %v3114_v14 }
  0x26   : > { %2986 = vmatprep.subr.bf16.mxu0 %v3115_v15  ;;  %v3381_v15 = vld [vmem:[%s4046_s2] ss:$0 sm:$0xff] }
  0x28   : > { %v1320_v51 = vld [vmem:[#allocation2 + $0x90] sm:$0xff] }
  0x29   : > { %2987 = vmatpush3.bf16.msra.mxu0 %v3116_v16  ;;  %v3370_v53 = vpack.c.bf16 %v1320_v51, %v1320_v51 }
  0x2b   : > { %1359 = vrot.lane.b32.xlu1 %v3370_v53, %s3203_s19 }
  0x2c   : > { %640 = vmatmul.mubr.bf16.vlgmr.msra.gmra.mxu0 %v3117_v17 }
  0x2d   : > { %647 = vmatprep.mubr.bf16.mxu0 %v3120_v18 }
  0x34   : > { %648 = vmatmul.mubr.bf16.gmra.mxu0 %v3122_v19 }
  0x35   : > { %655 = vmatprep.mubr.bf16.mxu0 %v3123_v20 }
  0x3c   : > { %656 = vmatmul.mubr.bf16.gmra.mxu0 %v3125_v21 }
  0x3d   : > { %663 = vmatprep.mubr.bf16.mxu0 %v3126_v22 }
  0x44   : > { %664 = vmatmul.mubr.bf16.gmra.mxu0 %v3128_v23 }
  0x45   : > { %671 = vmatprep.mubr.bf16.mxu0 %v3129_v24 }
  0x4c   : > { %672 = vmatmul.mubr.bf16.gmra.mxu0 %v3131_v25 }
  0x4d   : > { %679 = vmatprep.mubr.bf16.mxu0 %v3132_v26 }
  0x54   : > { %680 = vmatmul.mubr.bf16.gmra.mxu0 %v3134_v27 }
  0x55   : > { %687 = vmatprep.mubr.bf16.mxu0 %v3135_v28 }
  0x5c   : > { %688 = vmatmul.mubr.bf16.gmra.mxu0 %v3137_v29 }
  0x5d   : > { %695 = vmatprep.mubr.bf16.mxu0 %v3138_v30 }
  0x64   : > { %696 = vmatmul.mubr.bf16.gmra.mxu0 %v3140_v31 }
  0x65   : > { %703 = vmatprep.mubr.bf16.mxu0 %v3141_v32 }
  0x6c   : > { %704 = vmatmul.mubr.bf16.gmra.mxu0 %v3143_v33 }
  0x6d   : > { %711 = vmatprep.mubr.bf16.mxu0 %v3144_v34 }
  0x74   : > { %712 = vmatmul.mubr.bf16.gmra.mxu0 %v3146_v35 }
  0x75   : > { %719 = vmatprep.mubr.bf16.mxu0 %v3147_v36 }
  0x7c   : > { %720 = vmatmul.mubr.bf16.gmra.mxu0 %v3149_v37 }
  0x7d   : > { %727 = vmatprep.mubr.bf16.mxu0 %v3150_v38 }
  0x84   : > { %728 = vmatmul.mubr.bf16.gmra.mxu0 %v3152_v39 }
  0x85   : > { %735 = vmatprep.mubr.bf16.mxu0 %v3153_v40 }
  0x8c   : > { %736 = vmatmul.mubr.bf16.gmra.mxu0 %v3155_v41 }
  0x8d   : > { %743 = vmatprep.mubr.bf16.mxu0 %v3156_v42 }
  0x94   : > { %744 = vmatmul.mubr.bf16.gmra.mxu0 %v3158_v43 }
  0x95   : > { %751 = vmatprep.mubr.bf16.mxu0 %v3159_v44 }
  0x9c   : > { %752 = vmatmul.mubr.bf16.gmra.mxu0 %v3161_v45 }
  0x9d   : > { %759 = vmatprep.mubr.bf16.mxu0 %v3162_v46 }
  0xa4   : > { %760 = vmatmul.mubr.bf16.gmra.mxu0 %v3164_v47 }
  0xec   : > { %v2988_v55 = vpop.f32.mrf.mxu0 }
  0xee   : > { %v2989_v56 = vpop.f32.mrf.mxu0 }
  0xef   : > { %v2990_v57 = vadd.f32 %v2989_v56, %v2988_v55 }
  0xf0   : > { %v2991_v58 = vpop.f32.mrf.mxu0 }
  0xf1   : > { %v642_v18 = vadd.f32 %v2990_v57, %v3381_v15 }
  0xf2   : > { %v2992_v59 = vpop.f32.mrf.mxu0 }
  0xf3   : > { %v2993_v60 = vadd.f32 %v2992_v59, %v2991_v58  ;;  %v768_v23 = vmax.f32 %v642_v18, 0.0 }
  0xf4   : > { %v2994_v61 = vpop.f32.mrf.mxu0 }
  0xf5   : > { %v645_v24 = vadd.f32 %v2993_v60, %v3381_v15 }
  0xf6   : > { %v2995_v62 = vpop.f32.mrf.mxu0 }
  0xf7   : > { %v2996_v63 = vadd.f32 %v2995_v62, %v2994_v61  ;;  %v769_v31 = vmax.f32 %v645_v24, 0.0 }
  0xf8   : > { %v2997_v0 = vpop.f32.mrf.mxu0 }
  0xf9   : > { %v650_v32 = vadd.f32 %v2996_v63, %v3381_v15 }
  0xfa   : > { %v2998_v1 = vpop.f32.mrf.mxu0 }
  0xfb   : > { %v2999_v2 = vadd.f32 %v2998_v1, %v2997_v0  ;;  %v770_v39 = vmax.f32 %v650_v32, 0.0 }
  0xfc   : > { %v3000_v3 = vpop.f32.mrf.mxu0 }
  0xfd   : > { %v653_v40 = vadd.f32 %v2999_v2, %v3381_v15 }
  0xfe   : > { %v3001_v4 = vpop.f32.mrf.mxu0 }
  0xff   : > { %v3002_v5 = vadd.f32 %v3001_v4, %v3000_v3  ;;  %v771_v47 = vmax.f32 %v653_v40, 0.0 }
 0x100   : > { %v3003_v6 = vpop.f32.mrf.mxu0 }
 0x101   : > { %v658_v48 = vadd.f32 %v3002_v5, %v3381_v15 }
 0x102   : > { %v3004_v7 = vpop.f32.mrf.mxu0 }
 0x103   : > { %v3005_v8 = vadd.f32 %v3004_v7, %v3003_v6  ;;  %v772_v58 = vmax.f32 %v658_v48, 0.0 }
 0x104   : > { %v3006_v9 = vpop.f32.mrf.mxu0 }
 0x105   : > { %v661_v59 = vadd.f32 %v3005_v8, %v3381_v15 }
 0x106   : > { %v3007_v10 = vpop.f32.mrf.mxu0 }
 0x107   : > { %v3008_v11 = vadd.f32 %v3007_v10, %v3006_v9  ;;  %v773_v2 = vmax.f32 %v661_v59, 0.0 }
 0x108   : > { %v3009_v12 = vpop.f32.mrf.mxu0 }
 0x109   : > { %v666_v3 = vadd.f32 %v3008_v11, %v3381_v15 }
 0x10a   : > { %v3010_v13 = vpop.f32.mrf.mxu0 }
 0x10b   : > { %v3011_v14 = vadd.f32 %v3010_v13, %v3009_v12  ;;  %v774_v10 = vmax.f32 %v666_v3, 0.0 }
 0x10c   : > { %v3012_v16 = vpop.f32.mrf.mxu0 }
 0x10d   : > { %v669_v12 = vadd.f32 %v3011_v14, %v3381_v15 }
 0x10e   : > { %v3013_v17 = vpop.f32.mrf.mxu0 }
 0x10f   : > { %v3014_v19 = vadd.f32 %v3013_v17, %v3012_v16 }
 0x110   : > { %v3015_v20 = vpop.f32.mrf.mxu0 }
 0x111   : > { %v3385_v21 = vadd.f32 %v3014_v19, %v3381_v15 }
 0x112   : > { %v3016_v22 = vpop.f32.mrf.mxu0 }
 0x113   : > { %v776_v25 = vmax.f32 %v3385_v21, 0.0  ;;  %v3017_v26 = vadd.f32 %v3016_v22, %v3015_v20  ;;  %v775_v20 = vmax.f32 %v669_v12, 0.0 }
 0x114   : > { %v3018_v27 = vpop.f32.mrf.mxu0 }
 0x115   : > { %v3391_v28 = vmax.f32 %v768_v23, %v776_v25  ;;  %v3394_v29 = vadd.f32 %v3017_v26, %v3381_v15 }
 0x116   : > { %v3019_v30 = vpop.f32.mrf.mxu0 }
 0x117   : > { %v777_v33 = vmax.f32 %v3394_v29, 0.0  ;;  %v3020_v34 = vadd.f32 %v3019_v30, %v3018_v27  ;;  %v1450_v29 = vld [vmem:[#allocation2 + $0x92] sm:$0xff] }
 0x118   : > { %v3021_v35 = vpop.f32.mrf.mxu0 }
 0x119   : > { %v3400_v36 = vmax.f32 %v769_v31, %v777_v33  ;;  %v3403_v37 = vadd.f32 %v3020_v34, %v3381_v15 }
 0x11a   : > { %v3022_v38 = vpop.f32.mrf.mxu0 }
 0x11b   : > { %v778_v41 = vmax.f32 %v3403_v37, 0.0  ;;  %v3023_v42 = vadd.f32 %v3022_v38, %v3021_v35 }
 0x11c   : > { %v3024_v43 = vpop.f32.mrf.mxu0 }
 0x11d   : > { %v3409_v44 = vmax.f32 %v770_v39, %v778_v41  ;;  %v3412_v45 = vadd.f32 %v3023_v42, %v3381_v15 }
 0x11e   : > { %v3025_v46 = vpop.f32.mrf.mxu0 }
 0x11f   : > { %v779_v49 = vmax.f32 %v3412_v45, 0.0  ;;  %v3026_v51 = vadd.f32 %v3025_v46, %v3024_v43 }
 0x120   : > { %v3027_v52 = vpop.f32.mrf.mxu0 }
 0x121   : > { %v3418_v55 = vmax.f32 %v771_v47, %v779_v49  ;;  %v3421_v56 = vadd.f32 %v3026_v51, %v3381_v15 }
 0x122   : > { %v3028_v57 = vpop.f32.mrf.mxu0 }
 0x123   : > { %v780_v60 = vmax.f32 %v3421_v56, 0.0  ;;  %v3029_v61 = vadd.f32 %v3028_v57, %v3027_v52 }
 0x124   : > { %v3030_v62 = vpop.f32.mrf.mxu0 }
 0x125   : > { %v3427_v63 = vmax.f32 %v772_v58, %v780_v60  ;;  %v3430_v0 = vadd.f32 %v3029_v61, %v3381_v15 }
 0x126   : > { %v3031_v1 = vpop.f32.mrf.mxu0 }
 0x127   : > { %v781_v4 = vmax.f32 %v3430_v0, 0.0  ;;  %v3032_v5 = vadd.f32 %v3031_v1, %v3030_v62 }
 0x128   : > { %v3033_v6 = vpop.f32.mrf.mxu0 }
 0x129   : > { %v3436_v7 = vmax.f32 %v773_v2, %v781_v4  ;;  %v3439_v8 = vadd.f32 %v3032_v5, %v3381_v15 }
 0x12a   : > { %v3034_v9 = vpop.f32.mrf.mxu0 }
 0x12b   : > { %v782_v13 = vmax.f32 %v3439_v8, 0.0  ;;  %v3035_v16 = vadd.f32 %v3034_v9, %v3033_v6 }
 0x12c   : > { %v3036_v17 = vpop.f32.mrf.mxu0 }
 0x12d   : > { %v3445_v11 = vmax.f32 %v774_v10, %v782_v13  ;;  %v3448_v18 = vadd.f32 %v3035_v16, %v3381_v15 }
 0x12e   : > { %v3037_v19 = vpop.f32.mrf.mxu0 }
 0x12f   : > { %v783_v22 = vmax.f32 %v3448_v18, 0.0  ;;  %v3038_v46 = vadd.f32 %v3037_v19, %v3036_v17 }
 0x130   : > { %v3039_v23 = vpop.f32.mrf.mxu0 }
 0x131   : > { %v3453_v24 = vmax.f32 %v775_v20, %v783_v22  ;;  %v706_v51 = vadd.f32 %v3038_v46, %v3381_v15 }
 0x132   : > { %v3040_v14 = vpop.f32.mrf.mxu0 }
 0x133   : > { %v3041_v52 = vadd.f32 %v3040_v14, %v3039_v23  ;;  %v784_v1 = vmax.f32 %v706_v51, 0.0  ;;  %v939_v51 = vld [vmem:[#allocation2] sm:$0xff] }
 0x134   : > { %v3042_v26 = vpop.f32.mrf.mxu0 }
 0x135   : > { %v709_v2 = vadd.f32 %v3041_v52, %v3381_v15 }
 0x136   : > { %v3043_v27 = vpop.f32.mrf.mxu0 }
 0x137   : > { %v3044_v61 = vadd.f32 %v3043_v27, %v3042_v26  ;;  %v785_v19 = vmax.f32 %v709_v2, 0.0 }
 0x138   : > { %v3045_v30 = vpop.f32.mrf.mxu0 }
 0x139   : > { %v714_v12 = vadd.f32 %v3044_v61, %v3381_v15 }
 0x13a   : > { %v3046_v31 = vpop.f32.mrf.mxu0 }
 0x13b   : > { %v3047_v16 = vadd.f32 %v3046_v31, %v3045_v30 }
 0x13c   : > { %v3048_v32 = vpop.f32.mrf.mxu0 }
 0x13e   : > { %v3049_v34 = vpop.f32.mrf.mxu0 }
 0x13f   : > { %v3050_v30 = vadd.f32 %v3049_v34, %v3048_v32  ;;  %v1021_v32 = vpop.permute.xlu0 %1020 }
 0x140   : > { %v3051_v35 = vpop.f32.mrf.mxu0 }
 0x141   : > { %v722_v34 = vadd.f32 %v3050_v30, %v3381_v15 }
 0x142   : > { %v3052_v38 = vpop.f32.mrf.mxu0 }
 0x144   : > { %v3455_v39 = vpop.f32.mrf.mxu0 }
 0x146   : > { %v3457_v40 = vpop.f32.mrf.mxu0 }
 0x148   : > { %v3459_v42 = vpop.f32.mrf.mxu0 }
 0x14a   : > { %v3461_v43 = vpop.f32.mrf.mxu0 }
 0x14c   : > { %v3060_v47 = vpop.f32.mrf.mxu0 }
 0x14e   : > { %v3061_v48 = vpop.f32.mrf.mxu0 }
 0x14f   : > { %v3062_v57 = vadd.f32 %v3061_v48, %v3060_v47  ;;  %v786_v47 = vmax.f32 %v714_v12, 0.0  ;;  %v717_v48 = vadd.f32 %v3047_v16, %v3381_v15 }
 0x150   : > { %v3063_v58 = vpop.f32.mrf.mxu0 }
 0x151   : > { %v738_v59 = vadd.f32 %v3062_v57, %v3381_v15 }
 0x152   : > { %v3064_v62 = vpop.f32.mrf.mxu0 }
 0x153   : > { %v3466_v3 = vmax.f32 %v738_v59, 0.0  ;;  %v3065_v5 = vadd.f32 %v3064_v62, %v3063_v58  ;;  %v3487_v58 = vpack.c.bf16 %v939_v51, %v939_v51 }
 0x154   : > { %v3066_v6 = vpop.f32.mrf.mxu0 }
 0x155   : > { %v3469_v9 = vmax.f32 %v784_v1, %v3466_v3  ;;  %v741_v10 = vadd.f32 %v3065_v5, %v3381_v15  ;;  %980 = vst.msk [vmem:[#allocation3] sm:$0xf] %vm979_vm2, %v3487_v58  ;;  %v3053_v1 = vadd.f32 %v3052_v38, %v3051_v35  ;;  %v863_v5 = vmax.f32 %v776_v25, %v3466_v3 }
 0x156   : > { %v3067_v17 = vpop.f32.mrf.mxu0  ;;  %1045 = vst.msk [vmem:[#allocation3] sm:$0xf] %vm1044_vm3, %v1021_v32  ;;  %v3056_v25 = vadd.f32 %v3457_v40, %v3455_v39 }
 0x157   : > { %v838_v20 = vmax.f32 %v3391_v28, %v3469_v9  ;;  %v3475_v23 = vmax.f32 %v741_v10, 0.0  ;;  %v3068_v14 = vadd.f32 %v3067_v17, %v3066_v6  ;;  %v725_v21 = vadd.f32 %v3053_v1, %v3381_v15 }
 0x158   : > { %v3069_v26 = vpop.f32.mrf.mxu0 }
 0x159   : > { %847 = vst.msk [vmem:[#allocation2 + $0x11] sm:$0xff] %vm800_vm0, %v838_v20  ;;  %v3479_v27 = vmax.f32 %v785_v19, %v3475_v23  ;;  %v746_v46 = vadd.f32 %v3068_v14, %v3381_v15  ;;  %v788_v20 = vmax.f32 %v722_v34, 0.0  ;;  %v1086_v14 = vpop.permute.xlu1 %1085 }
 0x15a   : > { %v3070_v31 = vpop.f32.mrf.mxu0  ;;  %1110 = vst.msk [vmem:[#allocation3] sm:$0xf] %vm1109_vm5, %v1086_v14 }
 0x15b   : > { %v839_v28 = vmax.f32 %v3400_v36, %v3479_v27  ;;  %v3485_v52 = vmax.f32 %v746_v46, 0.0  ;;  %v3071_v57 = vadd.f32 %v3070_v31, %v3069_v26  ;;  %v787_v36 = vmax.f32 %v717_v48, 0.0 }
 0x15c   : > { %v3072_v59 = vpop.f32.mrf.mxu0  ;;  %v864_v26 = vmax.f32 %v777_v33, %v3475_v23  ;;  %v789_v33 = vmax.f32 %v725_v21, 0.0 }
 0x15d   : > { %848 = vst.msk [vmem:[#allocation2 + $0x21] sm:$0xff] %vm800_vm0, %v839_v28  ;;  %v3491_v61 = vmax.f32 %v786_v47, %v3485_v52  ;;  %v749_v62 = vadd.f32 %v3071_v57, %v3381_v15  ;;  %v730_v28 = vadd.f32 %v3056_v25, %v3381_v15 }
 0x15e   : > { %v3073_v2 = vpop.f32.mrf.mxu0 }
 0x15f   : > { %v840_v6 = vmax.f32 %v3409_v44, %v3491_v61  ;;  %v3503_v10 = vmax.f32 %v749_v62, 0.0  ;;  %v3074_v12 = vadd.f32 %v3073_v2, %v3072_v59  ;;  %v2891_v59 = vpack.c.bf16 %v1450_v29, %v1450_v29 }
 0x160   : > { %v855_v16 = vld [vmem:[#allocation2 + $0x12] sm:$0x7f]  ;;  %v3075_v17 = vpop.f32.mrf.mxu0  ;;  %v865_v62 = vmax.f32 %v778_v41, %v3485_v52  ;;  %v790_v37 = vmax.f32 %v730_v28, 0.0 }
 0x161   : > { %v871_v19 = vmax.f32 %v855_v16, %v863_v5  ;;  %849 = vst.msk [vmem:[#allocation2 + $0x31] sm:$0xff] %vm800_vm0, %v840_v6  ;;  %v3507_v35 = vmax.f32 %v787_v36, %v3503_v10  ;;  %v754_v38 = vadd.f32 %v3074_v12, %v3381_v15 }
 0x162   : > { %v3076_v44 = vpop.f32.mrf.mxu0  ;;  %1490 = vst.msk [vmem:[#allocation3 + $0x3c] sm:$0xf] %vm979_vm2, %v2891_v59 }
 0x163   : > { %880 = vst.msk [vmem:[#allocation2 + $0x12] sm:$0x7f] %vm879_vm4, %v871_v19  ;;  %v841_v46 = vmax.f32 %v3418_v55, %v3507_v35  ;;  %v3519_v47 = vmax.f32 %v754_v38, 0.0  ;;  %v3077_v48 = vadd.f32 %v3076_v44, %v3075_v17  ;;  %v3059_v55 = vadd.f32 %v3461_v43, %v3459_v42 }
 0x164   : > { %v856_v30 = vld [vmem:[#allocation2 + $0x22] sm:$0x7f]  ;;  %v3078_v31 = vpop.f32.mrf.mxu0 }
 0x165   : > { %v872_v39 = vmax.f32 %v856_v30, %v864_v26  ;;  %850 = vst.msk [vmem:[#allocation2 + $0x41] sm:$0xff] %vm800_vm0, %v841_v46  ;;  %v3524_v40 = vmax.f32 %v788_v20, %v3519_v47  ;;  %v757_v51 = vadd.f32 %v3077_v48, %v3381_v15  ;;  %v733_v41 = vadd.f32 %v3059_v55, %v3381_v15 }
 0x166   : > { %v3079_v57 = vpop.f32.mrf.mxu0 }
 0x167   : > { %881 = vst.msk [vmem:[#allocation2 + $0x22] sm:$0x7f] %vm879_vm4, %v872_v39  ;;  %v842_v32 = vmax.f32 %v3427_v63, %v3524_v40  ;;  %v3536_v36 = vmax.f32 %v757_v51, 0.0  ;;  %v3080_v34 = vadd.f32 %v3079_v57, %v3078_v31  ;;  %v866_v63 = vmax.f32 %v779_v49, %v3503_v10 }
 0x168   : > { %v857_v1 = vld [vmem:[#allocation2 + $0x32] sm:$0x7f]  ;;  %v3081_v2 = vpop.f32.mrf.mxu0  ;;  %v791_v46 = vmax.f32 %v733_v41, 0.0  ;;  %v3205_v51 = vmov 0  }
 0x169   : > { %v873_v5 = vmax.f32 %v857_v1, %v865_v62  ;;  %851 = vst.msk [vmem:[#allocation2 + $0x51] sm:$0xff] %vm800_vm0, %v842_v32  ;;  %v3541_v42 = vmax.f32 %v789_v33, %v3536_v36  ;;  %v762_v43 = vadd.f32 %v3080_v34, %v3381_v15  ;;  %1626 = vmatprep.subr.bf16.mxu1 %v3205_v51  ;;  %v3166_v33 = vld [vmem:[%s4047_s3 + $0x30] sm:$0xff]  }
 0x16a   : > { %v3545_v6 = vld [vmem:[#allocation2 + $0x11] sm:$0xff]  ;;  %v3082_v12 = vpop.f32.mrf.mxu0  ;;  %v868_v28 = vmax.f32 %v781_v4, %v3536_v36  ;;  %v3167_v4 = vld [vmem:[%s4047_s3 + $0x28] sm:$0xff]  }
 0x16b   : > { %v1054_v16 = vld [vmem:[#allocation2 + $0x12] sm:$0xff]  ;;  %882 = vst.msk [vmem:[#allocation2 + $0x32] sm:$0x7f] %vm879_vm4, %v873_v5  ;;  %v843_v19 = vmax.f32 %v3436_v7, %v3541_v42  ;;  %v3553_v38 = vmax.f32 %v762_v43, 0.0  ;;  %v3083_v20 = vadd.f32 %v3082_v12, %v3081_v2  ;;  %v2829_v44 = vpack.c.bf16 %v3545_v6, %v3545_v6 }
 0x16c   : > { %v1118_v17 = vld [vmem:[#allocation2 + $0x10] sm:$0xff]  ;;  %v2837_v21 = vpack.c.bf16 %v1054_v16, %v1054_v16  ;;  %v858_v25 = vld [vmem:[#allocation2 + $0x42] sm:$0x7f]  ;;  %v3165_v7 = vld [vmem:[%s4047_s3 + $0x38] sm:$0xff]  }
 0x16d   : > { %v2844_v14 = vpack.c.bf16 %v1118_v17, %v1118_v17  ;;  %v874_v26 = vmax.f32 %v858_v25, %v866_v63  ;;  %852 = vst.msk [vmem:[#allocation2 + $0x61] sm:$0xff] %vm800_vm0, %v843_v19  ;;  %v3559_v45 = vmax.f32 %v790_v37, %v3553_v38  ;;  %v765_v49 = vadd.f32 %v3083_v20, %v3381_v15  ;;  %v3170_v19 = vld [vmem:[%s4047_s3 + $0x10] sm:$0xff]  }
 0x16e   : > { %1087 = vrot.lane.b32.xlu1 %v2837_v21, %s3202_s18  ;;  %v889_v48 = vld [vmem:[#allocation2 + $0x21] sm:$0xff]  ;;  %1022 = vrot.lane.b32.xlu0 %v2829_v44, %s3204_s20  ;;  %v867_v15 = vmax.f32 %v780_v60, %v3519_v47  ;;  %v869_v0 = vmax.f32 %v782_v13, %v3553_v38 }
 0x16f   : > { %981 = vst.msk [vmem:[#allocation3 + $0x8] sm:$0xf] %vm979_vm2, %v2844_v14  ;;  %v896_v30 = vmax.f32 %v889_v48, %v3469_v9  ;;  %v844_v31 = vmax.f32 %v3445_v11, %v3559_v45  ;;  %v799_v39 = vmax.f32 %v765_v49, 0.0  ;;  %1627 = vmatpush1.bf16.msra.mxu1 %v3165_v7 }
 0x170   : > { %883 = vst.msk [vmem:[#allocation2 + $0x42] sm:$0x7f] %vm879_vm4, %v874_v26  ;;  %v859_v29 = vld [vmem:[#allocation2 + $0x52] sm:$0x7f]  ;;  %1628 = vmatprep.subr.bf16.mxu1 %v3205_v51 }
 0x171   : > { %903 = vst.msk [vmem:[#allocation2 + $0x21] sm:$0xff] %vm800_vm0, %v896_v30  ;;  %v875_v9 = vmax.f32 %v859_v29, %v867_v15  ;;  %853 = vst.msk [vmem:[#allocation2 + $0x71] sm:$0xff] %vm800_vm0, %v844_v31  ;;  %v837_v56 = vmax.f32 %v791_v46, %v799_v39  ;;  %v870_v13 = vmax.f32 %v783_v22, %v799_v39  ;;  %v3169_v22 = vld [vmem:[%s4047_s3 + $0x18] sm:$0xff]  }
 0x172   : > { %v890_v60 = vld [vmem:[#allocation2 + $0x31] sm:$0xff]  ;;  %1150 = vrot.lane.b32.xlu0 %v2844_v14, %s3206_s29 }
 0x173   : > { %v897_v11 = vmax.f32 %v890_v60, %v3479_v27  ;;  %884 = vst.msk [vmem:[#allocation2 + $0x52] sm:$0x7f] %vm879_vm4, %v875_v9  ;;  %v845_v55 = vmax.f32 %v3453_v24, %v837_v56  ;;  %1629 = vmatpush1.bf16.msra.mxu1 %v3166_v33 }
 0x174   : > { %v860_v57 = vld [vmem:[#allocation2 + $0x62] sm:$0x7f]  ;;  %1630 = vmatprep.subr.bf16.mxu1 %v3205_v51 }
 0x175   : > { %904 = vst.msk [vmem:[#allocation2 + $0x31] sm:$0xff] %vm800_vm0, %v897_v11  ;;  %v876_v59 = vmax.f32 %v860_v57, %v868_v28  ;;  %854 = vst.msk [vmem:[#allocation2 + $0x81] sm:$0xff] %vm800_vm0, %v845_v55  ;;  %v3173_v28 = vld [vmem:[%s4047_s3 + $0x40] sm:$0xff]  }
 0x176   : > { %1215 = vrot.lane.b32.xlu0 %v2829_v44, %s3207_s30 }
 0x177   : > { %v891_v62 = vld [vmem:[#allocation2 + $0x41] sm:$0xff]  ;;  %885 = vst.msk [vmem:[#allocation2 + $0x62] sm:$0x7f] %vm879_vm4, %v876_v59  ;;  %1631 = vmatpush1.bf16.msra.mxu1 %v3167_v4 }
 0x178   : > { %v898_v27 = vmax.f32 %v891_v62, %v3491_v61  ;;  %v910_v24 = vld [vmem:[#allocation2 + $0x22] sm:$0x7f]  ;;  %v861_v32 = vld [vmem:[#allocation2 + $0x72] sm:$0x7f]  ;;  %1632 = vmatprep.subr.bf16.mxu1 %v3205_v51 }
 0x179   : > { %v917_v34 = vmax.f32 %v910_v24, %v3466_v3  ;;  %v877_v1 = vmax.f32 %v861_v32, %v869_v0  ;;  %v3168_v3 = vld [vmem:[%s4047_s3 + $0x20] sm:$0xff]  }
 0x17a   : > { %905 = vst.msk [vmem:[#allocation2 + $0x41] sm:$0xff] %vm800_vm0, %v898_v27  ;;  %v892_v2 = vld [vmem:[#allocation2 + $0x51] sm:$0xff]  ;;  %1280 = vrot.lane.b32.xlu0 %v2837_v21, %s3208_s10 }
 0x17b   : > { %924 = vst.msk [vmem:[#allocation2 + $0x22] sm:$0x7f] %vm879_vm4, %v917_v34  ;;  %v899_v8 = vmax.f32 %v892_v2, %v3507_v35  ;;  %886 = vst.msk [vmem:[#allocation2 + $0x72] sm:$0x7f] %vm879_vm4, %v877_v1  ;;  %1633 = vmatpush1.bf16.msra.mxu1 %v3168_v3 }
 0x17c   : > { %v911_v61 = vld [vmem:[#allocation2 + $0x32] sm:$0x7f]  ;;  %v862_v5 = vld [vmem:[#allocation2 + $0x82] sm:$0x7f]  ;;  %1634 = vmatprep.subr.bf16.mxu1 %v3205_v51 }
 0x17d   : > { %v918_v43 = vmax.f32 %v911_v61, %v3475_v23  ;;  %906 = vst.msk [vmem:[#allocation2 + $0x51] sm:$0xff] %vm800_vm0, %v899_v8  ;;  %v878_v37 = vmax.f32 %v862_v5, %v870_v13 }
 0x17e   : > { %v893_v41 = vld [vmem:[#allocation2 + $0x61] sm:$0xff] }
 0x17f   : > { %925 = vst.msk [vmem:[#allocation2 + $0x32] sm:$0x7f] %vm879_vm4, %v918_v43  ;;  %v900_v18 = vmax.f32 %v893_v41, %v3524_v40  ;;  %887 = vst.msk [vmem:[#allocation2 + $0x82] sm:$0x7f] %vm879_vm4, %v878_v37  ;;  %1635 = vmatpush1.bf16.msra.mxu1 %v3169_v22 }
 0x180   : > { %1636 = vmatprep.subr.bf16.mxu1 %v3205_v51 }
 0x181   : > { %v912_v35 = vld [vmem:[#allocation2 + $0x42] sm:$0x7f]  ;;  %907 = vst.msk [vmem:[#allocation2 + $0x61] sm:$0xff] %vm800_vm0, %v900_v18 }
 0x182   : > { %v919_v23 = vmax.f32 %v912_v35, %v3485_v52  ;;  %v1443_v63 = vld [vmem:[#allocation2 + $0x22] sm:$0xff]  ;;  %v894_v12 = vld [vmem:[#allocation2 + $0x71] sm:$0xff] }
 0x183   : > { %v2884_v16 = vpack.c.bf16 %v1443_v63, %v1443_v63  ;;  %v901_v40 = vmax.f32 %v894_v12, %v3541_v42  ;;  %v1119_v17 = vld [vmem:[#allocation2 + $0x20] sm:$0xff]  ;;  %1637 = vmatpush1.bf16.msra.mxu1 %v3170_v19 }
 0x184   : > { %926 = vst.msk [vmem:[#allocation2 + $0x42] sm:$0x7f] %vm879_vm4, %v919_v23  ;;  %v913_v20 = vld [vmem:[#allocation2 + $0x52] sm:$0x7f]  ;;  %v2845_v21 = vpack.c.bf16 %v1119_v17, %v1119_v17  ;;  %v3630_v52 = vld [vmem:[#allocation2 + $0x21] sm:$0xff]  ;;  %1638 = vmatprep.subr.bf16.mxu1 %v3205_v51  ;;  %v3740_v23 = vpop.permute.xlu1 %1359 }
 0x185   : > { %1483 = vst.msk [vmem:[#allocation3 + $0x4] sm:$0xf] %vm979_vm2, %v2884_v16  ;;  %v920_v25 = vmax.f32 %v913_v20, %v3503_v10  ;;  %v3171_v10 = vld [vmem:[%s4047_s3 + $0x8] sm:$0xff]   ;;  %v2853_v46 = vpack.c.bf16 %v3630_v52, %v3630_v52 }
 0x186   : > { %908 = vst.msk [vmem:[#allocation2 + $0x71] sm:$0xff] %vm800_vm0, %v901_v40  ;;  %v1444_v44 = vld [vmem:[#allocation2 + $0x32] sm:$0xff]  ;;  %v895_v14 = vld [vmem:[#allocation2 + $0x81] sm:$0xff]  ;;  %1152 = vrot.lane.b32.xlu1 %v2845_v21, %s3206_s29  ;;  %1345 = vrot.lane.b32.xlu0 %v2845_v21, %s3203_s19 }
 0x187   : > { %982 = vst.msk [vmem:[#allocation3 + $0x10] sm:$0xf] %vm979_vm2, %v2845_v21  ;;  %v3638_v42 = vpack.c.bf16 %v1444_v44, %v1444_v44  ;;  %v902_v26 = vmax.f32 %v895_v14, %v3559_v45  ;;  %v1314_v49 = vld [vmem:[#allocation2 + $0x30] sm:$0xff]  ;;  %1639 = vmatpush1.bf16.msra.mxu1 %v3171_v10 }
 0x188   : > { %927 = vst.msk [vmem:[#allocation2 + $0x52] sm:$0x7f] %vm879_vm4, %v920_v25  ;;  %v914_v7 = vld [vmem:[#allocation2 + $0x62] sm:$0x7f]  ;;  %v2869_v48 = vpack.c.bf16 %v1314_v49, %v1314_v49  ;;  %1640 = vmatprep.subr.bf16.mxu1 %v3205_v51  ;;  %v3670_v55 = vld [vmem:[#allocation2 + $0x31] sm:$0xff] }
 0x189   : > { %1484 = vst.msk [vmem:[#allocation3 + $0xc] sm:$0xf] %vm979_vm2, %v3638_v42  ;;  %v921_v30 = vmax.f32 %v914_v7, %v3519_v47  ;;  %v3172_v47 = vld [vmem:[%s4047_s3] sm:$0xff]   ;;  %v2877_v4 = vpack.c.bf16 %v3670_v55, %v3670_v55 }
 0x18a   : > { %909 = vst.msk [vmem:[#allocation2 + $0x81] sm:$0xff] %vm800_vm0, %v902_v26  ;;  %1217 = vrot.lane.b32.xlu1 %v2853_v46, %s3207_s30  ;;  %1410 = vrot.lane.b32.xlu0 %v2853_v46, %s3209_s22 }
 0x18b   : > { %v1445_v45 = vld [vmem:[#allocation2 + $0x42] sm:$0xff]  ;;  %983 = vst.msk [vmem:[#allocation3 + $0x18] sm:$0xf] %vm979_vm2, %v2869_v48  ;;  %1641 = vmatpush1.bf16.msra.mxu1 %v3172_v47 }
 0x18c   : > { %v1121_v15 = vld [vmem:[#allocation2 + $0x40] sm:$0xff]  ;;  %v2886_v31 = vpack.c.bf16 %v1445_v45, %v1445_v45  ;;  %928 = vst.msk [vmem:[#allocation2 + $0x62] sm:$0x7f] %vm879_vm4, %v921_v30  ;;  %1656 = vmatprep.subr.bf16.mxu1 %v3205_v51 }
 0x18d   : > { %v2847_v39 = vpack.c.bf16 %v1121_v15, %v1121_v15  ;;  %v915_v29 = vld [vmem:[#allocation2 + $0x72] sm:$0x7f]  ;;  %v3694_v8 = vld [vmem:[#allocation2 + $0x41] sm:$0xff] }
 0x18e   : > { %1485 = vst.msk [vmem:[#allocation3 + $0x14] sm:$0xf] %vm979_vm2, %v2886_v31  ;;  %v922_v33 = vmax.f32 %v915_v29, %v3536_v36  ;;  %1282 = vrot.lane.b32.xlu1 %v2884_v16, %s3208_s10  ;;  %1024 = vrot.lane.b32.xlu0 %v2853_v46, %s3204_s20  ;;  %v2855_v13 = vpack.c.bf16 %v3694_v8, %v3694_v8 }
 0x18f   : > { %984 = vst.msk [vmem:[#allocation3 + $0x20] sm:$0xf] %vm979_vm2, %v2847_v39  ;;  %v1446_v9 = vld [vmem:[#allocation2 + $0x52] sm:$0xff]  ;;  %1657 = vmatpush2.bf16.msra.mxu1 %v3173_v28 }
 0x190   : > { %v1316_v56 = vld [vmem:[#allocation2 + $0x50] sm:$0xff]  ;;  %v2887_v60 = vpack.c.bf16 %v1446_v9, %v1446_v9  ;;  %929 = vst.msk [vmem:[#allocation2 + $0x72] sm:$0x7f] %vm879_vm4, %v922_v33  ;;  %2386 = vmatprep.subr.bf16.mxu1 %v3205_v51 }
 0x191   : > { %v2871_v11 = vpack.c.bf16 %v1316_v56, %v1316_v56  ;;  %v916_v36 = vld [vmem:[#allocation2 + $0x82] sm:$0x7f]  ;;  %v3704_v3 = vld [vmem:[#allocation2 + $0x51] sm:$0xff] }
 0x192   : > { %1486 = vst.msk [vmem:[#allocation3 + $0x1c] sm:$0xf] %vm979_vm2, %v2887_v60  ;;  %v923_v57 = vmax.f32 %v916_v36, %v3553_v38  ;;  %1347 = vrot.lane.b32.xlu1 %v2869_v48, %s3203_s19  ;;  %1089 = vrot.lane.b32.xlu0 %v2884_v16, %s3202_s18  ;;  %v2879_v61 = vpack.c.bf16 %v3704_v3, %v3704_v3  ;;  %v1385_v16 = vld [vmem:[#allocation2 + $0x91] sm:$0xff] }
 0x193   : > { %985 = vst.msk [vmem:[#allocation3 + $0x28] sm:$0xf] %vm979_vm2, %v2871_v11  ;;  %v1447_v59 = vld [vmem:[#allocation2 + $0x62] sm:$0xff]  ;;  %v3751_v17 = vpack.c.bf16 %v1385_v16, %v1385_v16 }
 0x194   : > { %v1123_v62 = vld [vmem:[#allocation2 + $0x60] sm:$0xff]  ;;  %v2888_v27 = vpack.c.bf16 %v1447_v59, %v1447_v59  ;;  %930 = vst.msk [vmem:[#allocation2 + $0x82] sm:$0x7f] %vm879_vm4, %v923_v57 }
 0x195   : > { %v2849_v0 = vpack.c.bf16 %v1123_v62, %v1123_v62  ;;  %v3716_v5 = vld [vmem:[#allocation2 + $0x61] sm:$0xff] }
 0x196   : > { %1487 = vst.msk [vmem:[#allocation3 + $0x24] sm:$0xf] %vm979_vm2, %v2888_v27  ;;  %1412 = vrot.lane.b32.xlu1 %v2877_v4, %s3209_s22  ;;  %1154 = vrot.lane.b32.xlu0 %v2869_v48, %s3206_s29  ;;  %v2857_v43 = vpack.c.bf16 %v3716_v5, %v3716_v5 }
 0x197   : > { %986 = vst.msk [vmem:[#allocation3 + $0x30] sm:$0xf] %vm979_vm2, %v2849_v0  ;;  %v1448_v38 = vld [vmem:[#allocation2 + $0x72] sm:$0xff] }
 0x198   : > { %v1318_v24 = vld [vmem:[#allocation2 + $0x70] sm:$0xff]  ;;  %v2889_v32 = vpack.c.bf16 %v1448_v38, %v1448_v38 }
 0x199   : > { %v2873_v34 = vpack.c.bf16 %v1318_v24, %v1318_v24  ;;  %v3726_v37 = vld [vmem:[#allocation2 + $0x71] sm:$0xff] }
 0x19a   : > { %1488 = vst.msk [vmem:[#allocation3 + $0x2c] sm:$0xf] %vm979_vm2, %v2889_v32  ;;  %1026 = vrot.lane.b32.xlu1 %v2877_v4, %s3204_s20  ;;  %1219 = vrot.lane.b32.xlu0 %v2877_v4, %s3207_s30  ;;  %v2881_v41 = vpack.c.bf16 %v3726_v37, %v3726_v37 }
 0x19b   : > { %987 = vst.msk [vmem:[#allocation3 + $0x38] sm:$0xf] %vm979_vm2, %v2873_v34  ;;  %v1449_v1 = vld [vmem:[#allocation2 + $0x82] sm:$0xff] }
 0x19c   : > { %v2890_v2 = vpack.c.bf16 %v1449_v1, %v1449_v1  ;;  %v1125_v18 = vld [vmem:[#allocation2 + $0x80] sm:$0xff] }
 0x19d   : > { %v2851_v22 = vpack.c.bf16 %v1125_v18, %v1125_v18  ;;  %v3738_v35 = vld [vmem:[#allocation2 + $0x81] sm:$0xff] }
 0x19e   : > { %1489 = vst.msk [vmem:[#allocation3 + $0x34] sm:$0xf] %vm979_vm2, %v2890_v2  ;;  %1091 = vrot.lane.b32.xlu1 %v3638_v42, %s3202_s18  ;;  %1284 = vrot.lane.b32.xlu0 %v3638_v42, %s3208_s10  ;;  %v2859_v63 = vpack.c.bf16 %v3738_v35, %v3738_v35 }
 0x1a2   : > { %1156 = vrot.lane.b32.xlu1 %v2847_v39, %s3206_s29  ;;  %1349 = vrot.lane.b32.xlu0 %v2847_v39, %s3203_s19 }
 0x1a6   : > { %1221 = vrot.lane.b32.xlu1 %v2855_v13, %s3207_s30  ;;  %1414 = vrot.lane.b32.xlu0 %v2855_v13, %s3209_s22 }
 0x1aa   : > { %1286 = vrot.lane.b32.xlu1 %v2886_v31, %s3208_s10  ;;  %1028 = vrot.lane.b32.xlu0 %v2855_v13, %s3204_s20 }
 0x1ae   : > { %1351 = vrot.lane.b32.xlu1 %v2871_v11, %s3203_s19  ;;  %1093 = vrot.lane.b32.xlu0 %v2886_v31, %s3202_s18 }
 0x1b2   : > { %1416 = vrot.lane.b32.xlu1 %v2879_v61, %s3209_s22  ;;  %1158 = vrot.lane.b32.xlu0 %v2871_v11, %s3206_s29 }
 0x1b6   : > { %1030 = vrot.lane.b32.xlu1 %v2879_v61, %s3204_s20  ;;  %1223 = vrot.lane.b32.xlu0 %v2879_v61, %s3207_s30 }
 0x1ba   : > { %1095 = vrot.lane.b32.xlu1 %v2887_v60, %s3202_s18  ;;  %1288 = vrot.lane.b32.xlu0 %v2887_v60, %s3208_s10 }
 0x1be   : > { %1160 = vrot.lane.b32.xlu1 %v2849_v0, %s3206_s29  ;;  %1353 = vrot.lane.b32.xlu0 %v2849_v0, %s3203_s19 }
 0x1c2   : > { %1225 = vrot.lane.b32.xlu1 %v2857_v43, %s3207_s30  ;;  %1418 = vrot.lane.b32.xlu0 %v2857_v43, %s3209_s22 }
 0x1c6   : > { %1290 = vrot.lane.b32.xlu1 %v2888_v27, %s3208_s10  ;;  %1032 = vrot.lane.b32.xlu0 %v2857_v43, %s3204_s20 }
 0x1ca   : > { %1355 = vrot.lane.b32.xlu1 %v2873_v34, %s3203_s19  ;;  %1097 = vrot.lane.b32.xlu0 %v2888_v27, %s3202_s18 }
 0x1ce   : > { %1420 = vrot.lane.b32.xlu1 %v2881_v41, %s3209_s22  ;;  %1162 = vrot.lane.b32.xlu0 %v2873_v34, %s3206_s29 }
 0x1d2   : > { %1034 = vrot.lane.b32.xlu1 %v2881_v41, %s3204_s20  ;;  %1227 = vrot.lane.b32.xlu0 %v2881_v41, %s3207_s30 }
 0x1d6   : > { %1099 = vrot.lane.b32.xlu1 %v2889_v32, %s3202_s18  ;;  %1292 = vrot.lane.b32.xlu0 %v2889_v32, %s3208_s10 }
 0x1da   : > { %1164 = vrot.lane.b32.xlu1 %v2851_v22, %s3206_s29  ;;  %1357 = vrot.lane.b32.xlu0 %v2851_v22, %s3203_s19 }
 0x1de   : > { %1229 = vrot.lane.b32.xlu1 %v2859_v63, %s3207_s30  ;;  %1422 = vrot.lane.b32.xlu0 %v2859_v63, %s3209_s22 }
 0x1e0   : > { %v1088_v12 = vpop.permute.xlu1 %1087  ;;  %v1023_v40 = vpop.permute.xlu0 %1022 }
 0x1e1   : > { %1046 = vst.msk [vmem:[#allocation3 + $0x8] sm:$0xf] %vm1044_vm3, %v1023_v40 }
 0x1e2   : > { %1294 = vrot.lane.b32.xlu1 %v2890_v2, %s3208_s10  ;;  %1111 = vst.msk [vmem:[#allocation3 + $0x8] sm:$0xf] %vm1109_vm5, %v1088_v12  ;;  %1787 = vrot.lane.b32.xlu0 %v3372_v54, %s3204_s20 }
 0x1e4   : > { %v1151_v19 = vpop.permute.xlu0 %1150 }
 0x1e5   : > { %1175 = vst.msk [vmem:[#allocation3] sm:$0xf] %vm1174_vm6, %v1151_v19 }
 0x1e6   : > { %1424 = vrot.lane.b32.xlu1 %v3751_v17, %s3209_s22  ;;  %1851 = vrot.lane.b32.xlu0 %v3366_v50, %s3202_s18 }
 0x1e8   : > { %v1216_v20 = vpop.permute.xlu0 %1215 }
 0x1e9   : > { %1240 = vst.msk [vmem:[#allocation3] sm:$0xf] %vm1239_vm7, %v1216_v20 }
 0x1ea   : > { %2121 = vrot.lane.b32.xlu1 %v3370_v53, %s3203_s19 }
 0x1ec   : > { %v1281_v21 = vpop.permute.xlu0 %1280 }
 0x1ed   : > { %1305 = vst.msk [vmem:[#allocation3] sm:$0xf] %vm1304_vm8, %v1281_v21 }
 0x1f8   : > { %v1153_v54 = vpop.permute.xlu1 %1152  ;;  %v1346_v25 = vpop.permute.xlu0 %1345 }
 0x1f9   : > { %1176 = vst.msk [vmem:[#allocation3 + $0x8] sm:$0xf] %vm1174_vm6, %v1153_v54 }
 0x1fa   : > { %1370 = vst.msk [vmem:[#allocation3] sm:$0xf] %vm1369_vm9, %v1346_v25 }
 0x1fc   : > { %v1218_v44 = vpop.permute.xlu1 %1217  ;;  %v1411_v50 = vpop.permute.xlu0 %1410 }
 0x1fd   : > { %1241 = vst.msk [vmem:[#allocation3 + $0x8] sm:$0xf] %vm1239_vm7, %v1218_v44 }
 0x1fe   : > { %1435 = vst.msk [vmem:[#allocation3] sm:$0xf] %vm1434_vm10, %v1411_v50 }
 0x200   : > { %v1283_v14 = vpop.permute.xlu1 %1282  ;;  %v1025_v42 = vpop.permute.xlu0 %1024 }
 0x201   : > { %1306 = vst.msk [vmem:[#allocation3 + $0x8] sm:$0xf] %vm1304_vm8, %v1283_v14 }
 0x202   : > { %1047 = vst.msk [vmem:[#allocation3 + $0x10] sm:$0xf] %vm1044_vm3, %v1025_v42 }
 0x204   : > { %v1348_v26 = vpop.permute.xlu1 %1347  ;;  %v1090_v49 = vpop.permute.xlu0 %1089 }
 0x205   : > { %v1491_v53 = vld [vmem:[#allocation3] sm:$0xff]  ;;  %1371 = vst.msk [vmem:[#allocation3 + $0x8] sm:$0xf] %vm1369_vm9, %v1348_v26 }
 0x206   : > { %1747 = vst.msk [vmem:[#allocation3] sm:$0xf] %vm979_vm2, %v3487_v58 }
 0x207   : > { %1112 = vst.msk [vmem:[#allocation3 + $0x10] sm:$0xf] %vm1109_vm5, %v1090_v49 }
 0x208   : > { %v1413_v10 = vpop.permute.xlu1 %1412  ;;  %v1155_v7 = vpop.permute.xlu0 %1154 }
 0x209   : > { %1436 = vst.msk [vmem:[#allocation3 + $0x8] sm:$0xf] %vm1434_vm10, %v1413_v10 }
 0x20a   : > { %1177 = vst.msk [vmem:[#allocation3 + $0x10] sm:$0xf] %vm1174_vm6, %v1155_v7 }
 0x20c   : > { %v1027_v46 = vpop.permute.xlu1 %1026  ;;  %v1220_v48 = vpop.permute.xlu0 %1219 }
 0x20d   : > { %1048 = vst.msk [vmem:[#allocation3 + $0x18] sm:$0xf] %vm1044_vm3, %v1027_v46 }
 0x20e   : > { %1242 = vst.msk [vmem:[#allocation3 + $0x10] sm:$0xf] %vm1239_vm7, %v1220_v48 }
 0x210   : > { %v1092_v30 = vpop.permute.xlu1 %1091  ;;  %v1285_v45 = vpop.permute.xlu0 %1284  ;;  %v1492_v15 = vld [vmem:[#allocation3 + $0x8] sm:$0xff] }
 0x211   : > { %1113 = vst.msk [vmem:[#allocation3 + $0x18] sm:$0xf] %vm1109_vm5, %v1092_v30  ;;  %v2694_v58 = vcombine.high %v1491_v53, %v1492_v15  ;;  %v2693_v31 = vcombine.low %v1491_v53, %v1492_v15 }
 0x212   : > { %1307 = vst.msk [vmem:[#allocation3 + $0x10] sm:$0xf] %vm1304_vm8, %v1285_v45 }
 0x213   : > { %2710 = vmatprep.mubr.msk.bf16.mxu1 %vm800_vm0, %v2694_v58 }
 0x214   : > { %v1157_v39 = vpop.permute.xlu1 %1156  ;;  %v1350_v47 = vpop.permute.xlu0 %1349  ;;  %1659 = vmatmul.mubr.bf16.vlgmr.msra.gmra.mxu1 %v2693_v31 }
 0x215   : > { %1178 = vst.msk [vmem:[#allocation3 + $0x18] sm:$0xf] %vm1174_vm6, %v1157_v39 }
 0x216   : > { %1372 = vst.msk [vmem:[#allocation3 + $0x10] sm:$0xf] %vm1369_vm9, %v1350_v47 }
 0x218   : > { %v1222_v29 = vpop.permute.xlu1 %1221  ;;  %v1415_v33 = vpop.permute.xlu0 %1414 }
 0x219   : > { %1243 = vst.msk [vmem:[#allocation3 + $0x18] sm:$0xf] %vm1239_vm7, %v1222_v29 }
 0x21a   : > { %1437 = vst.msk [vmem:[#allocation3 + $0x10] sm:$0xf] %vm1434_vm10, %v1415_v33  ;;  %v3174_v33 = vld [vmem:[%s4049_s5 + $0x38] sm:$0xff]  }
 0x21b   : > { %2387 = vmatpush1.bf16.msra.mxu1 %v3174_v33 }
 0x21c   : > { %v1287_v9 = vpop.permute.xlu1 %1286  ;;  %v1029_v56 = vpop.permute.xlu0 %1028  ;;  %2388 = vmatprep.subr.bf16.mxu1 %v3205_v51 }
 0x21d   : > { %1308 = vst.msk [vmem:[#allocation3 + $0x18] sm:$0xf] %vm1304_vm8, %v1287_v9  ;;  %v3175_v9 = vld [vmem:[%s4049_s5 + $0x30] sm:$0xff]  }
 0x21e   : > { %1049 = vst.msk [vmem:[#allocation3 + $0x20] sm:$0xf] %vm1044_vm3, %v1029_v56 }
 0x21f   : > { %2389 = vmatpush1.bf16.msra.mxu1 %v3175_v9 }
 0x220   : > { %v1352_v60 = vpop.permute.xlu1 %1351  ;;  %v1094_v11 = vpop.permute.xlu0 %1093  ;;  %2390 = vmatprep.subr.bf16.mxu1 %v3205_v51 }
 0x221   : > { %1373 = vst.msk [vmem:[#allocation3 + $0x18] sm:$0xf] %vm1369_vm9, %v1352_v60  ;;  %v1493_v62 = vld [vmem:[#allocation3 + $0x10] sm:$0xff] }
 0x222   : > { %1114 = vst.msk [vmem:[#allocation3 + $0x20] sm:$0xf] %vm1109_vm5, %v1094_v11 }
 0x224   : > { %v1417_v28 = vpop.permute.xlu1 %1416  ;;  %v1159_v36 = vpop.permute.xlu0 %1158 }
 0x225   : > { %1438 = vst.msk [vmem:[#allocation3 + $0x18] sm:$0xf] %vm1434_vm10, %v1417_v28 }
 0x226   : > { %1179 = vst.msk [vmem:[#allocation3 + $0x20] sm:$0xf] %vm1174_vm6, %v1159_v36 }
 0x228   : > { %v1031_v57 = vpop.permute.xlu1 %1030  ;;  %v1224_v59 = vpop.permute.xlu0 %1223 }
 0x229   : > { %1050 = vst.msk [vmem:[#allocation3 + $0x28] sm:$0xf] %vm1044_vm3, %v1031_v57  ;;  %v3176_v57 = vld [vmem:[%s4049_s5 + $0x28] sm:$0xff]  }
 0x22a   : > { %1244 = vst.msk [vmem:[#allocation3 + $0x20] sm:$0xf] %vm1239_vm7, %v1224_v59  ;;  %2391 = vmatpush1.bf16.msra.mxu1 %v3176_v57 }
 0x22b   : > { %2392 = vmatprep.subr.bf16.mxu1 %v3205_v51 }
 0x22c   : > { %v1494_v27 = vld [vmem:[#allocation3 + $0x18] sm:$0xff]  ;;  %v1096_v0 = vpop.permute.xlu1 %1095  ;;  %v1289_v4 = vpop.permute.xlu0 %1288 }
 0x22d   : > { %1115 = vst.msk [vmem:[#allocation3 + $0x28] sm:$0xf] %vm1109_vm5, %v1096_v0  ;;  %v2696_v38 = vcombine.high %v1493_v62, %v1494_v27  ;;  %v2695_v24 = vcombine.low %v1493_v62, %v1494_v27 }
 0x22e   : > { %1309 = vst.msk [vmem:[#allocation3 + $0x20] sm:$0xf] %vm1304_vm8, %v1289_v4 }
 0x22f   : > { %2711 = vmatprep.mubr.msk.bf16.mxu1 %vm800_vm0, %v2696_v38  ;;  %v3177_v38 = vld [vmem:[%s4049_s5 + $0x20] sm:$0xff]  }
 0x230   : > { %v1161_v32 = vpop.permute.xlu1 %1160  ;;  %v1354_v34 = vpop.permute.xlu0 %1353  ;;  %1667 = vmatmul.mubr.bf16.gmra.mxu1 %v2695_v24 }
 0x231   : > { %1180 = vst.msk [vmem:[#allocation3 + $0x28] sm:$0xf] %vm1174_vm6, %v1161_v32  ;;  %2393 = vmatpush1.bf16.msra.mxu1 %v3177_v38  ;;  %v3178_v32 = vld [vmem:[%s4049_s5 + $0x18] sm:$0xff]  }
 0x232   : > { %1374 = vst.msk [vmem:[#allocation3 + $0x20] sm:$0xf] %vm1369_vm9, %v1354_v34  ;;  %2394 = vmatprep.subr.bf16.mxu1 %v3205_v51 }
 0x234   : > { %v1226_v1 = vpop.permute.xlu1 %1225  ;;  %v1419_v2 = vpop.permute.xlu0 %1418 }
 0x235   : > { %1245 = vst.msk [vmem:[#allocation3 + $0x28] sm:$0xf] %vm1239_vm7, %v1226_v1  ;;  %2395 = vmatpush1.bf16.msra.mxu1 %v3178_v32  ;;  %v3179_v1 = vld [vmem:[%s4049_s5 + $0x10] sm:$0xff]  }
 0x236   : > { %1439 = vst.msk [vmem:[#allocation3 + $0x20] sm:$0xf] %vm1434_vm10, %v1419_v2  ;;  %2396 = vmatprep.subr.bf16.mxu1 %v3205_v51 }
 0x238   : > { %v1291_v13 = vpop.permute.xlu1 %1290  ;;  %v1033_v61 = vpop.permute.xlu0 %1032 }
 0x239   : > { %1310 = vst.msk [vmem:[#allocation3 + $0x28] sm:$0xf] %vm1304_vm8, %v1291_v13  ;;  %2397 = vmatpush1.bf16.msra.mxu1 %v3179_v1 }
 0x23a   : > { %1051 = vst.msk [vmem:[#allocation3 + $0x30] sm:$0xf] %vm1044_vm3, %v1033_v61  ;;  %2398 = vmatprep.subr.bf16.mxu1 %v3205_v51 }
 0x23c   : > { %v1356_v43 = vpop.permute.xlu1 %1355  ;;  %v1098_v41 = vpop.permute.xlu0 %1097 }
 0x23d   : > { %1375 = vst.msk [vmem:[#allocation3 + $0x28] sm:$0xf] %vm1369_vm9, %v1356_v43  ;;  %v1495_v16 = vld [vmem:[#allocation3 + $0x20] sm:$0xff] }
 0x23e   : > { %1116 = vst.msk [vmem:[#allocation3 + $0x30] sm:$0xf] %vm1109_vm5, %v1098_v41  ;;  %v3180_v41 = vld [vmem:[%s4049_s5 + $0x8] sm:$0xff]  }
 0x23f   : > { %2399 = vmatpush1.bf16.msra.mxu1 %v3180_v41 }
 0x240   : > { %v1421_v18 = vpop.permute.xlu1 %1420  ;;  %v1163_v22 = vpop.permute.xlu0 %1162  ;;  %2400 = vmatprep.subr.bf16.mxu1 %v3205_v51 }
 0x241   : > { %1440 = vst.msk [vmem:[#allocation3 + $0x28] sm:$0xf] %vm1434_vm10, %v1421_v18 }
 0x242   : > { %1181 = vst.msk [vmem:[#allocation3 + $0x30] sm:$0xf] %vm1174_vm6, %v1163_v22 }
 0x244   : > { %v1035_v63 = vpop.permute.xlu1 %1034  ;;  %v1228_v12 = vpop.permute.xlu0 %1227 }
 0x245   : > { %1052 = vst.msk [vmem:[#allocation3 + $0x38] sm:$0xf] %vm1044_vm3, %v1035_v63 }
 0x246   : > { %1246 = vst.msk [vmem:[#allocation3 + $0x30] sm:$0xf] %vm1239_vm7, %v1228_v12 }
 0x248   : > { %v1496_v40 = vld [vmem:[#allocation3 + $0x28] sm:$0xff]  ;;  %v1100_v19 = vpop.permute.xlu1 %1099  ;;  %v1293_v20 = vpop.permute.xlu0 %1292 }
 0x249   : > { %1117 = vst.msk [vmem:[#allocation3 + $0x38] sm:$0xf] %vm1109_vm5, %v1100_v19  ;;  %v2698_v21 = vcombine.high %v1495_v16, %v1496_v40  ;;  %v2697_v54 = vcombine.low %v1495_v16, %v1496_v40  ;;  %v3181_v16 = vld [vmem:[%s4049_s5] sm:$0xff]  }
 0x24a   : > { %1311 = vst.msk [vmem:[#allocation3 + $0x30] sm:$0xf] %vm1304_vm8, %v1293_v20  ;;  %2401 = vmatpush1.bf16.msra.mxu1 %v3181_v16  ;;  %v3182_v40 = vld [vmem:[%s4049_s5 + $0x40] sm:$0xff]  }
 0x24b   : > { %2712 = vmatprep.mubr.msk.bf16.mxu1 %vm800_vm0, %v2698_v21  ;;  %2416 = vmatprep.subr.bf16.mxu1 %v3205_v51 }
 0x24c   : > { %v1165_v25 = vpop.permute.xlu1 %1164  ;;  %v1358_v44 = vpop.permute.xlu0 %1357  ;;  %1675 = vmatmul.mubr.bf16.gmra.mxu1 %v2697_v54 }
 0x24d   : > { %1182 = vst.msk [vmem:[#allocation3 + $0x38] sm:$0xf] %vm1174_vm6, %v1165_v25 }
 0x24e   : > { %1376 = vst.msk [vmem:[#allocation3 + $0x30] sm:$0xf] %vm1369_vm9, %v1358_v44  ;;  %2417 = vmatpush2.bf16.msra.mxu1 %v3182_v40 }
 0x250   : > { %v1230_v50 = vpop.permute.xlu1 %1229  ;;  %v1423_v14 = vpop.permute.xlu0 %1422 }
 0x251   : > { %1247 = vst.msk [vmem:[#allocation3 + $0x38] sm:$0xf] %vm1239_vm7, %v1230_v50 }
 0x252   : > { %1441 = vst.msk [vmem:[#allocation3 + $0x30] sm:$0xf] %vm1434_vm10, %v1423_v14 }
 0x254   : > { %v1295_v42 = vpop.permute.xlu1 %1294  ;;  %v1788_v46 = vpop.permute.xlu0 %1787 }
 0x255   : > { %1312 = vst.msk [vmem:[#allocation3 + $0x38] sm:$0xf] %vm1304_vm8, %v1295_v42 }
 0x256   : > { %1377 = vst.msk [vmem:[#allocation3 + $0x38] sm:$0xf] %vm1369_vm9, %v3740_v23  ;;  %v3825_v23 = vld [vmem:[%s4048_s4] ss:$0 sm:$0xff] }
 0x257   : > { %1811 = vst.msk [vmem:[#allocation3] sm:$0xf] %vm1044_vm3, %v1788_v46 }
 0x258   : > { %v1425_v53 = vpop.permute.xlu1 %1424  ;;  %v1852_v48 = vpop.permute.xlu0 %1851 }
 0x259   : > { %1442 = vst.msk [vmem:[#allocation3 + $0x38] sm:$0xf] %vm1434_vm10, %v1425_v53  ;;  %v1497_v26 = vld [vmem:[#allocation3 + $0x30] sm:$0xff] }
 0x25a   : > { %1875 = vst.msk [vmem:[#allocation3] sm:$0xf] %vm1109_vm5, %v1852_v48 }
 0x25c   : > { %v3945_v40 = vpop.permute.xlu1 %2121 }
 0x260   : > { %v1498_v49 = vld [vmem:[#allocation3 + $0x38] sm:$0xff] }
 0x261   : > { %v2700_v10 = vcombine.high %v1497_v26, %v1498_v49  ;;  %v2699_v7 = vcombine.low %v1497_v26, %v1498_v49 }
 0x263   : > { %2713 = vmatprep.mubr.msk.bf16.mxu1 %vm800_vm0, %v2700_v10 }
 0x264   : > { %1683 = vmatmul.mubr.bf16.gmra.mxu1 %v2699_v7 }
 0x2d4   : > { %v1660_v30 = vpop.f32.mrf.mxu1 }
 0x2d5   : > { %v1661_v45 = vadd.f32 %v3825_v23, %v1660_v30 }
 0x2d6   : > { %v1662_v15 = vpop.f32.mrf.mxu1 }
 0x2d7   : > { %v1691_v58 = vmax.f32 %v1661_v45, 0.0 }
 0x2d8   : > { %v1663_v31 = vpop.f32.mrf.mxu1 }
 0x2d9   : > { %1699 = vst.msk [vmem:[#allocation2 + $0x11] sm:$0xff] %vm800_vm0, %v1691_v58  ;;  %v1664_v39 = vadd.f32 %v3825_v23, %v1663_v31 }
 0x2da   : > { %v1665_v47 = vpop.f32.mrf.mxu1 }
 0x2db   : > { %v1692_v29 = vmax.f32 %v1664_v39, 0.0 }
 0x2dd   : > { %1700 = vst.msk [vmem:[#allocation2 + $0x21] sm:$0xff] %vm800_vm0, %v1692_v29 }
 0x2e0   : > { %v1883_v56 = vld [vmem:[#allocation2 + $0x10] sm:$0xff] }
 0x2e1   : > { %v1756_v60 = vld [vmem:[#allocation2 + $0x11] sm:$0xff]  ;;  %v2916_v11 = vpack.c.bf16 %v1883_v56, %v1883_v56 }
 0x2e2   : > { %v2901_v28 = vpack.c.bf16 %v1756_v60, %v1756_v60  ;;  %v1820_v36 = vld [vmem:[#allocation2 + $0x12] sm:$0xff] }
 0x2e3   : > { %1915 = vrot.lane.b32.xlu0 %v2916_v11, %s3206_s29  ;;  %1748 = vst.msk [vmem:[#allocation3 + $0x8] sm:$0xf] %vm979_vm2, %v2916_v11  ;;  %v2909_v27 = vpack.c.bf16 %v1820_v36, %v1820_v36 }
 0x2e4   : > { %1789 = vrot.lane.b32.xlu1 %v2901_v28, %s3204_s20  ;;  %v1884_v59 = vld [vmem:[#allocation2 + $0x20] sm:$0xff] }
 0x2e5   : > { %v2012_v62 = vld [vmem:[#allocation2 + $0x22] sm:$0xff]  ;;  %v2917_v0 = vpack.c.bf16 %v1884_v59, %v1884_v59 }
 0x2e6   : > { %v2933_v4 = vpack.c.bf16 %v2012_v62, %v2012_v62  ;;  %v1948_v24 = vld [vmem:[#allocation2 + $0x21] sm:$0xff] }
 0x2e7   : > { %1979 = vrot.lane.b32.xlu0 %v2901_v28, %s3207_s30  ;;  %1749 = vst.msk [vmem:[#allocation3 + $0x10] sm:$0xf] %vm979_vm2, %v2917_v0  ;;  %v2925_v34 = vpack.c.bf16 %v1948_v24, %v1948_v24 }
 0x2e8   : > { %1853 = vrot.lane.b32.xlu1 %v2909_v27, %s3202_s18  ;;  %2243 = vst.msk [vmem:[#allocation3 + $0x4] sm:$0xf] %vm979_vm2, %v2933_v4 }
 0x2eb   : > { %2043 = vrot.lane.b32.xlu0 %v2909_v27, %s3208_s10 }
 0x2ec   : > { %1917 = vrot.lane.b32.xlu1 %v2917_v0, %s3206_s29 }
 0x2ef   : > { %2107 = vrot.lane.b32.xlu0 %v2917_v0, %s3203_s19 }
 0x2f0   : > { %1981 = vrot.lane.b32.xlu1 %v2925_v34, %s3207_s30  ;;  %v1668_v2 = vpop.f32.mrf.mxu1 }
 0x2f1   : > { %v1669_v13 = vadd.f32 %v3825_v23, %v1668_v2 }
 0x2f2   : > { %v1670_v61 = vpop.f32.mrf.mxu1 }
 0x2f3   : > { %v1693_v43 = vmax.f32 %v1669_v13, 0.0  ;;  %2171 = vrot.lane.b32.xlu0 %v2925_v34, %s3209_s22 }
 0x2f4   : > { %2045 = vrot.lane.b32.xlu1 %v2933_v4, %s3208_s10  ;;  %v1671_v18 = vpop.f32.mrf.mxu1 }
 0x2f5   : > { %1701 = vst.msk [vmem:[#allocation2 + $0x31] sm:$0xff] %vm800_vm0, %v1693_v43  ;;  %v1672_v22 = vadd.f32 %v3825_v23, %v1671_v18 }
 0x2f6   : > { %v1673_v63 = vpop.f32.mrf.mxu1 }
 0x2f7   : > { %v1694_v12 = vmax.f32 %v1672_v22, 0.0  ;;  %1791 = vrot.lane.b32.xlu0 %v2925_v34, %s3204_s20  ;;  %v2210_v63 = vld [vmem:[#allocation2 + $0x92] sm:$0xff] }
 0x2f9   : > { %1702 = vst.msk [vmem:[#allocation2 + $0x41] sm:$0xff] %vm800_vm0, %v1694_v12  ;;  %v2963_v12 = vpack.c.bf16 %v2210_v63, %v2210_v63 }
 0x2fb   : > { %1855 = vrot.lane.b32.xlu0 %v2933_v4, %s3202_s18  ;;  %2250 = vst.msk [vmem:[#allocation3 + $0x3c] sm:$0xf] %vm979_vm2, %v2963_v12 }
 0x2fc   : > { %v1885_v19 = vld [vmem:[#allocation2 + $0x30] sm:$0xff] }
 0x2fd   : > { %v2013_v20 = vld [vmem:[#allocation2 + $0x32] sm:$0xff]  ;;  %v2918_v21 = vpack.c.bf16 %v1885_v19, %v1885_v19 }
 0x2fe   : > { %v2934_v54 = vpack.c.bf16 %v2013_v20, %v2013_v20  ;;  %v1949_v25 = vld [vmem:[#allocation2 + $0x31] sm:$0xff] }
 0x2ff   : > { %1919 = vrot.lane.b32.xlu0 %v2918_v21, %s3206_s29  ;;  %2109 = vrot.lane.b32.xlu1 %v2918_v21, %s3203_s19  ;;  %1750 = vst.msk [vmem:[#allocation3 + $0x18] sm:$0xf] %vm979_vm2, %v2918_v21  ;;  %v2926_v50 = vpack.c.bf16 %v1949_v25, %v1949_v25 }
 0x300   : > { %2244 = vst.msk [vmem:[#allocation3 + $0xc] sm:$0xf] %vm979_vm2, %v2934_v54  ;;  %v2077_v51 = vld [vmem:[#allocation2 + $0x40] sm:$0xff] }
 0x301   : > { %v1823_v44 = vld [vmem:[#allocation2 + $0x42] sm:$0xff]  ;;  %v2942_v14 = vpack.c.bf16 %v2077_v51, %v2077_v51 }
 0x302   : > { %v2912_v42 = vpack.c.bf16 %v1823_v44, %v1823_v44  ;;  %v2141_v53 = vld [vmem:[#allocation2 + $0x41] sm:$0xff] }
 0x303   : > { %1983 = vrot.lane.b32.xlu0 %v2926_v50, %s3207_s30  ;;  %2173 = vrot.lane.b32.xlu1 %v2926_v50, %s3209_s22  ;;  %1751 = vst.msk [vmem:[#allocation3 + $0x20] sm:$0xf] %vm979_vm2, %v2942_v14  ;;  %v2950_v10 = vpack.c.bf16 %v2141_v53, %v2141_v53 }
 0x304   : > { %2245 = vst.msk [vmem:[#allocation3 + $0x14] sm:$0xf] %vm979_vm2, %v2912_v42 }
 0x307   : > { %2047 = vrot.lane.b32.xlu0 %v2934_v54, %s3208_s10  ;;  %1793 = vrot.lane.b32.xlu1 %v2926_v50, %s3204_s20 }
 0x30b   : > { %2111 = vrot.lane.b32.xlu0 %v2942_v14, %s3203_s19  ;;  %1857 = vrot.lane.b32.xlu1 %v2934_v54, %s3202_s18 }
 0x30c   : > { %v1676_v26 = vpop.f32.mrf.mxu1 }
 0x30d   : > { %v1677_v49 = vadd.f32 %v3825_v23, %v1676_v26 }
 0x30e   : > { %v1678_v7 = vpop.f32.mrf.mxu1 }
 0x30f   : > { %v1695_v46 = vmax.f32 %v1677_v49, 0.0  ;;  %2175 = vrot.lane.b32.xlu0 %v2950_v10, %s3209_s22  ;;  %1921 = vrot.lane.b32.xlu1 %v2942_v14, %s3206_s29 }
 0x310   : > { %v1679_v48 = vpop.f32.mrf.mxu1 }
 0x311   : > { %1703 = vst.msk [vmem:[#allocation2 + $0x51] sm:$0xff] %vm800_vm0, %v1695_v46  ;;  %v1680_v30 = vadd.f32 %v3825_v23, %v1679_v48 }
 0x312   : > { %v1681_v45 = vpop.f32.mrf.mxu1 }
 0x313   : > { %v1696_v15 = vmax.f32 %v1680_v30, 0.0  ;;  %1795 = vrot.lane.b32.xlu0 %v2950_v10, %s3204_s20  ;;  %1985 = vrot.lane.b32.xlu1 %v2950_v10, %s3207_s30 }
 0x315   : > { %1704 = vst.msk [vmem:[#allocation2 + $0x61] sm:$0xff] %vm800_vm0, %v1696_v15 }
 0x317   : > { %1859 = vrot.lane.b32.xlu0 %v2912_v42, %s3202_s18  ;;  %2049 = vrot.lane.b32.xlu1 %v2912_v42, %s3208_s10 }
 0x318   : > { %v1887_v58 = vld [vmem:[#allocation2 + $0x50] sm:$0xff] }
 0x319   : > { %v2015_v31 = vld [vmem:[#allocation2 + $0x52] sm:$0xff]  ;;  %v2920_v39 = vpack.c.bf16 %v1887_v58, %v1887_v58  ;;  %v3185_v58 = vld [vmem:[#allocation3 + $0x4] ss:$8 sps:$4 sm:$0xff]  }
 0x31a   : > { %v2936_v47 = vpack.c.bf16 %v2015_v31, %v2015_v31  ;;  %v1951_v29 = vld [vmem:[#allocation2 + $0x51] sm:$0xff]  ;;  %2804 = vmatprep.mubr.msk.bf16.mxu1 %vm800_vm0, %v3185_v58 }
 0x31b   : > { %1923 = vrot.lane.b32.xlu0 %v2920_v39, %s3206_s29  ;;  %2113 = vrot.lane.b32.xlu1 %v2920_v39, %s3203_s19  ;;  %1752 = vst.msk [vmem:[#allocation3 + $0x28] sm:$0xf] %vm979_vm2, %v2920_v39  ;;  %v2928_v56 = vpack.c.bf16 %v1951_v29, %v1951_v29 }
 0x31c   : > { %2246 = vst.msk [vmem:[#allocation3 + $0x1c] sm:$0xf] %vm979_vm2, %v2936_v47  ;;  %v2079_v33 = vld [vmem:[#allocation2 + $0x60] sm:$0xff] }
 0x31d   : > { %v1825_v9 = vld [vmem:[#allocation2 + $0x62] sm:$0xff]  ;;  %v2944_v60 = vpack.c.bf16 %v2079_v33, %v2079_v33 }
 0x31e   : > { %v2914_v11 = vpack.c.bf16 %v1825_v9, %v1825_v9  ;;  %v2143_v59 = vld [vmem:[#allocation2 + $0x61] sm:$0xff] }
 0x31f   : > { %1987 = vrot.lane.b32.xlu0 %v2928_v56, %s3207_s30  ;;  %2177 = vrot.lane.b32.xlu1 %v2928_v56, %s3209_s22  ;;  %1753 = vst.msk [vmem:[#allocation3 + $0x30] sm:$0xf] %vm979_vm2, %v2944_v60  ;;  %v2952_v4 = vpack.c.bf16 %v2143_v59, %v2143_v59 }
 0x320   : > { %2247 = vst.msk [vmem:[#allocation3 + $0x24] sm:$0xf] %vm979_vm2, %v2914_v11 }
 0x323   : > { %2051 = vrot.lane.b32.xlu0 %v2936_v47, %s3208_s10  ;;  %1797 = vrot.lane.b32.xlu1 %v2928_v56, %s3204_s20 }
 0x324   : > { %v1684_v28 = vpop.f32.mrf.mxu1 }
 0x325   : > { %v1685_v36 = vadd.f32 %v3825_v23, %v1684_v28 }
 0x326   : > { %v1686_v57 = vpop.f32.mrf.mxu1 }
 0x327   : > { %v1697_v62 = vmax.f32 %v1685_v36, 0.0  ;;  %2115 = vrot.lane.b32.xlu0 %v2944_v60, %s3203_s19  ;;  %1861 = vrot.lane.b32.xlu1 %v2936_v47, %s3202_s18 }
 0x328   : > { %v1687_v27 = vpop.f32.mrf.mxu1 }
 0x329   : > { %1705 = vst.msk [vmem:[#allocation2 + $0x71] sm:$0xff] %vm800_vm0, %v1697_v62  ;;  %v1688_v0 = vadd.f32 %v3825_v23, %v1687_v27 }
 0x32a   : > { %v1689_v38 = vpop.f32.mrf.mxu1 }
 0x32b   : > { %v1698_v24 = vmax.f32 %v1688_v0, 0.0  ;;  %2179 = vrot.lane.b32.xlu0 %v2952_v4, %s3209_s22  ;;  %1925 = vrot.lane.b32.xlu1 %v2944_v60, %s3206_s29 }
 0x32d   : > { %1706 = vst.msk [vmem:[#allocation2 + $0x81] sm:$0xff] %vm800_vm0, %v1698_v24 }
 0x32f   : > { %1799 = vrot.lane.b32.xlu0 %v2952_v4, %s3204_s20  ;;  %1989 = vrot.lane.b32.xlu1 %v2952_v4, %s3207_s30  ;;  %v3186_v4 = vld [vmem:[#allocation3 + $0x14] ss:$8 sps:$4 sm:$0xff]  }
 0x330   : > { %v1889_v32 = vld [vmem:[#allocation2 + $0x70] sm:$0xff] }
 0x331   : > { %v2017_v34 = vld [vmem:[#allocation2 + $0x72] sm:$0xff]  ;;  %v2922_v1 = vpack.c.bf16 %v1889_v32, %v1889_v32 }
 0x332   : > { %v2938_v2 = vpack.c.bf16 %v2017_v34, %v2017_v34  ;;  %v1953_v61 = vld [vmem:[#allocation2 + $0x71] sm:$0xff] }
 0x333   : > { %1863 = vrot.lane.b32.xlu0 %v2914_v11, %s3202_s18  ;;  %2053 = vrot.lane.b32.xlu1 %v2914_v11, %s3208_s10  ;;  %1754 = vst.msk [vmem:[#allocation3 + $0x38] sm:$0xf] %vm979_vm2, %v2922_v1  ;;  %v2930_v43 = vpack.c.bf16 %v1953_v61, %v1953_v61 }
 0x334   : > { %2248 = vst.msk [vmem:[#allocation3 + $0x2c] sm:$0xf] %vm979_vm2, %v2938_v2  ;;  %v2018_v23 = vld [vmem:[#allocation2 + $0x82] sm:$0xff] }
 0x335   : > { %v2939_v13 = vpack.c.bf16 %v2018_v23, %v2018_v23  ;;  %v2081_v41 = vld [vmem:[#allocation2 + $0x80] sm:$0xff] }
 0x336   : > { %v2946_v18 = vpack.c.bf16 %v2081_v41, %v2081_v41  ;;  %v2145_v22 = vld [vmem:[#allocation2 + $0x81] sm:$0xff] }
 0x337   : > { %1927 = vrot.lane.b32.xlu0 %v2922_v1, %s3206_s29  ;;  %2117 = vrot.lane.b32.xlu1 %v2922_v1, %s3203_s19  ;;  %2249 = vst.msk [vmem:[#allocation3 + $0x34] sm:$0xf] %vm979_vm2, %v2939_v13  ;;  %v2954_v16 = vpack.c.bf16 %v2145_v22, %v2145_v22 }
 0x33b   : > { %1991 = vrot.lane.b32.xlu0 %v2930_v43, %s3207_s30  ;;  %2181 = vrot.lane.b32.xlu1 %v2930_v43, %s3209_s22 }
 0x33f   : > { %2055 = vrot.lane.b32.xlu0 %v2938_v2, %s3208_s10  ;;  %1801 = vrot.lane.b32.xlu1 %v2930_v43, %s3204_s20  ;;  %s2819_s20 = sshll.u32 %s4053_s25, 5 }
 0x343   : > { %2119 = vrot.lane.b32.xlu0 %v2946_v18, %s3203_s19  ;;  %1865 = vrot.lane.b32.xlu1 %v2938_v2, %s3202_s18 }
 0x347   : > { %2183 = vrot.lane.b32.xlu0 %v2954_v16, %s3209_s22  ;;  %1929 = vrot.lane.b32.xlu1 %v2946_v18, %s3206_s29 }
 0x34b   : > { %1993 = vrot.lane.b32.xlu1 %v2954_v16, %s3207_s30 }
 0x34f   : > { %2057 = vrot.lane.b32.xlu1 %v2939_v13, %s3208_s10  ;;  %s4016_s10 = scalar_lea.vmem %s4051_s7, %s2819_s20 }
 0x353   : > { %2185 = vrot.lane.b32.xlu1 %v3751_v17, %s3209_s22 }
 0x355   : > { %v1916_v19 = vpop.permute.xlu0 %1915 }
 0x356   : > { %v1790_v20 = vpop.permute.xlu1 %1789  ;;  %1939 = vst.msk [vmem:[#allocation3] sm:$0xf] %vm1174_vm6, %v1916_v19 }
 0x357   : > { %1812 = vst.msk [vmem:[#allocation3 + $0x8] sm:$0xf] %vm1044_vm3, %v1790_v20  ;;  %v3188_v20 = vld [vmem:[#allocation3 + $0x24] ss:$8 sps:$4 sm:$0xff]  }
 0x359   : > { %v1980_v21 = vpop.permute.xlu0 %1979 }
 0x35a   : > { %v1854_v54 = vpop.permute.xlu1 %1853  ;;  %2003 = vst.msk [vmem:[#allocation3] sm:$0xf] %vm1239_vm7, %v1980_v21 }
 0x35b   : > { %1876 = vst.msk [vmem:[#allocation3 + $0x8] sm:$0xf] %vm1109_vm5, %v1854_v54 }
 0x35d   : > { %v2044_v25 = vpop.permute.xlu0 %2043 }
 0x35e   : > { %v1918_v51 = vpop.permute.xlu1 %1917  ;;  %2067 = vst.msk [vmem:[#allocation3] sm:$0xf] %vm1304_vm8, %v2044_v25 }
 0x35f   : > { %1940 = vst.msk [vmem:[#allocation3 + $0x8] sm:$0xf] %vm1174_vm6, %v1918_v51 }
 0x361   : > { %v2108_v44 = vpop.permute.xlu0 %2107 }
 0x362   : > { %v1982_v17 = vpop.permute.xlu1 %1981  ;;  %2131 = vst.msk [vmem:[#allocation3] sm:$0xf] %vm1369_vm9, %v2108_v44 }
 0x363   : > { %2004 = vst.msk [vmem:[#allocation3 + $0x8] sm:$0xf] %vm1239_vm7, %v1982_v17 }
 0x365   : > { %v2172_v50 = vpop.permute.xlu0 %2171 }
 0x366   : > { %v2046_v14 = vpop.permute.xlu1 %2045  ;;  %2195 = vst.msk [vmem:[#allocation3] sm:$0xf] %vm1434_vm10, %v2172_v50  ;;  %v3190_v50 = vld [vmem:[#allocation3 + $0x34] ss:$8 sps:$4 sm:$0xff]  }
 0x367   : > { %2068 = vst.msk [vmem:[#allocation3 + $0x8] sm:$0xf] %vm1304_vm8, %v2046_v14 }
 0x369   : > { %v1792_v42 = vpop.permute.xlu0 %1791 }
 0x36a   : > { %1813 = vst.msk [vmem:[#allocation3 + $0x10] sm:$0xf] %vm1044_vm3, %v1792_v42  ;;  %v2786_v42 = vld [vmem:[%s4050_s6] ss:$0 sm:$0xff] }
 0x36d   : > { %v1856_v53 = vpop.permute.xlu0 %1855 }
 0x36e   : > { %1877 = vst.msk [vmem:[#allocation3 + $0x10] sm:$0xf] %vm1109_vm5, %v1856_v53 }
 0x371   : > { %v1920_v26 = vpop.permute.xlu0 %1919  ;;  %v2110_v49 = vpop.permute.xlu1 %2109 }
 0x372   : > { %1941 = vst.msk [vmem:[#allocation3 + $0x10] sm:$0xf] %vm1174_vm6, %v1920_v26 }
 0x373   : > { %2132 = vst.msk [vmem:[#allocation3 + $0x8] sm:$0xf] %vm1369_vm9, %v2110_v49 }
 0x375   : > { %v1984_v10 = vpop.permute.xlu0 %1983  ;;  %v2174_v7 = vpop.permute.xlu1 %2173 }
 0x376   : > { %2005 = vst.msk [vmem:[#allocation3 + $0x10] sm:$0xf] %vm1239_vm7, %v1984_v10 }
 0x377   : > { %2196 = vst.msk [vmem:[#allocation3 + $0x8] sm:$0xf] %vm1434_vm10, %v2174_v7 }
 0x379   : > { %v2048_v46 = vpop.permute.xlu0 %2047  ;;  %v1794_v48 = vpop.permute.xlu1 %1793 }
 0x37a   : > { %2069 = vst.msk [vmem:[#allocation3 + $0x10] sm:$0xf] %vm1304_vm8, %v2048_v46 }
 0x37b   : > { %1814 = vst.msk [vmem:[#allocation3 + $0x18] sm:$0xf] %vm1044_vm3, %v1794_v48 }
 0x37d   : > { %v2112_v30 = vpop.permute.xlu0 %2111  ;;  %v1858_v45 = vpop.permute.xlu1 %1857 }
 0x37e   : > { %v3183_v15 = vld [vmem:[#allocation3] ss:$8 sps:$4 sm:$0xff]   ;;  %2133 = vst.msk [vmem:[#allocation3 + $0x10] sm:$0xf] %vm1369_vm9, %v2112_v30 }
 0x37f   : > { %1878 = vst.msk [vmem:[#allocation3 + $0x18] sm:$0xf] %vm1109_vm5, %v1858_v45  ;;  %2419 = vmatmul.mubr.bf16.vlgmr.msra.gmra.mxu1 %v3183_v15 }
 0x380   : > { %2805 = vmatprep.mubr.msk.bf16.mxu1 %vm800_vm0, %v3186_v4 }
 0x381   : > { %v2176_v31 = vpop.permute.xlu0 %2175  ;;  %v1922_v39 = vpop.permute.xlu1 %1921 }
 0x382   : > { %2197 = vst.msk [vmem:[#allocation3 + $0x10] sm:$0xf] %vm1434_vm10, %v2176_v31 }
 0x383   : > { %1942 = vst.msk [vmem:[#allocation3 + $0x18] sm:$0xf] %vm1174_vm6, %v1922_v39 }
 0x385   : > { %v1796_v47 = vpop.permute.xlu0 %1795  ;;  %v1986_v29 = vpop.permute.xlu1 %1985 }
 0x386   : > { %1815 = vst.msk [vmem:[#allocation3 + $0x20] sm:$0xf] %vm1044_vm3, %v1796_v47 }
 0x387   : > { %2006 = vst.msk [vmem:[#allocation3 + $0x18] sm:$0xf] %vm1239_vm7, %v1986_v29 }
 0x389   : > { %v1860_v33 = vpop.permute.xlu0 %1859  ;;  %v2050_v9 = vpop.permute.xlu1 %2049  ;;  %v2253_v27 = vld [vmem:[#allocation3 + $0x10] sm:$0xff] }
 0x38a   : > { %1879 = vst.msk [vmem:[#allocation3 + $0x20] sm:$0xf] %vm1109_vm5, %v1860_v33 }
 0x38b   : > { %2070 = vst.msk [vmem:[#allocation3 + $0x18] sm:$0xf] %vm1304_vm8, %v2050_v9 }
 0x38d   : > { %v1924_v56 = vpop.permute.xlu0 %1923  ;;  %v2114_v60 = vpop.permute.xlu1 %2113 }
 0x38e   : > { %1943 = vst.msk [vmem:[#allocation3 + $0x20] sm:$0xf] %vm1174_vm6, %v1924_v56 }
 0x38f   : > { %2134 = vst.msk [vmem:[#allocation3 + $0x18] sm:$0xf] %vm1369_vm9, %v2114_v60 }
 0x391   : > { %v1988_v11 = vpop.permute.xlu0 %1987  ;;  %v2178_v28 = vpop.permute.xlu1 %2177 }
 0x392   : > { %2007 = vst.msk [vmem:[#allocation3 + $0x20] sm:$0xf] %vm1239_vm7, %v1988_v11 }
 0x393   : > { %2198 = vst.msk [vmem:[#allocation3 + $0x18] sm:$0xf] %vm1434_vm10, %v2178_v28 }
 0x395   : > { %v2052_v36 = vpop.permute.xlu0 %2051  ;;  %v1798_v57 = vpop.permute.xlu1 %1797 }
 0x396   : > { %2071 = vst.msk [vmem:[#allocation3 + $0x20] sm:$0xf] %vm1304_vm8, %v2052_v36 }
 0x397   : > { %1816 = vst.msk [vmem:[#allocation3 + $0x28] sm:$0xf] %vm1044_vm3, %v1798_v57 }
 0x399   : > { %v2116_v59 = vpop.permute.xlu0 %2115  ;;  %v1862_v62 = vpop.permute.xlu1 %1861 }
 0x39a   : > { %v2254_v0 = vld [vmem:[#allocation3 + $0x18] sm:$0xff]  ;;  %2135 = vst.msk [vmem:[#allocation3 + $0x20] sm:$0xf] %vm1369_vm9, %v2116_v59 }
 0x39b   : > { %1880 = vst.msk [vmem:[#allocation3 + $0x28] sm:$0xf] %vm1109_vm5, %v1862_v62  ;;  %v2789_v38 = vcombine.low %v2253_v27, %v2254_v0 }
 0x39d   : > { %2427 = vmatmul.mubr.bf16.gmra.mxu1 %v2789_v38  ;;  %v2180_v24 = vpop.permute.xlu0 %2179  ;;  %v1926_v32 = vpop.permute.xlu1 %1925 }
 0x39e   : > { %2199 = vst.msk [vmem:[#allocation3 + $0x20] sm:$0xf] %vm1434_vm10, %v2180_v24  ;;  %2806 = vmatprep.mubr.msk.bf16.mxu1 %vm800_vm0, %v3188_v20 }
 0x39f   : > { %1944 = vst.msk [vmem:[#allocation3 + $0x28] sm:$0xf] %vm1174_vm6, %v1926_v32 }
 0x3a1   : > { %v1800_v34 = vpop.permute.xlu0 %1799  ;;  %v1990_v1 = vpop.permute.xlu1 %1989 }
 0x3a2   : > { %1817 = vst.msk [vmem:[#allocation3 + $0x30] sm:$0xf] %vm1044_vm3, %v1800_v34 }
 0x3a3   : > { %2008 = vst.msk [vmem:[#allocation3 + $0x28] sm:$0xf] %vm1239_vm7, %v1990_v1 }
 0x3a5   : > { %v1864_v2 = vpop.permute.xlu0 %1863  ;;  %v2054_v23 = vpop.permute.xlu1 %2053  ;;  %v2255_v16 = vld [vmem:[#allocation3 + $0x20] sm:$0xff] }
 0x3a6   : > { %1881 = vst.msk [vmem:[#allocation3 + $0x30] sm:$0xf] %vm1109_vm5, %v1864_v2 }
 0x3a7   : > { %2072 = vst.msk [vmem:[#allocation3 + $0x28] sm:$0xf] %vm1304_vm8, %v2054_v23 }
 0x3a9   : > { %v1928_v13 = vpop.permute.xlu0 %1927  ;;  %v2118_v61 = vpop.permute.xlu1 %2117 }
 0x3aa   : > { %1945 = vst.msk [vmem:[#allocation3 + $0x30] sm:$0xf] %vm1174_vm6, %v1928_v13 }
 0x3ab   : > { %2136 = vst.msk [vmem:[#allocation3 + $0x28] sm:$0xf] %vm1369_vm9, %v2118_v61 }
 0x3ad   : > { %v1992_v43 = vpop.permute.xlu0 %1991  ;;  %v2182_v41 = vpop.permute.xlu1 %2181 }
 0x3ae   : > { %2009 = vst.msk [vmem:[#allocation3 + $0x30] sm:$0xf] %vm1239_vm7, %v1992_v43 }
 0x3af   : > { %2200 = vst.msk [vmem:[#allocation3 + $0x28] sm:$0xf] %vm1434_vm10, %v2182_v41 }
 0x3b1   : > { %v2056_v18 = vpop.permute.xlu0 %2055  ;;  %v1802_v22 = vpop.permute.xlu1 %1801 }
 0x3b2   : > { %2073 = vst.msk [vmem:[#allocation3 + $0x30] sm:$0xf] %vm1304_vm8, %v2056_v18 }
 0x3b3   : > { %1818 = vst.msk [vmem:[#allocation3 + $0x38] sm:$0xf] %vm1044_vm3, %v1802_v22 }
 0x3b5   : > { %v2120_v63 = vpop.permute.xlu0 %2119  ;;  %v1866_v12 = vpop.permute.xlu1 %1865 }
 0x3b6   : > { %v2256_v19 = vld [vmem:[#allocation3 + $0x28] sm:$0xff]  ;;  %2137 = vst.msk [vmem:[#allocation3 + $0x30] sm:$0xf] %vm1369_vm9, %v2120_v63 }
 0x3b7   : > { %1882 = vst.msk [vmem:[#allocation3 + $0x38] sm:$0xf] %vm1109_vm5, %v1866_v12  ;;  %v2791_v21 = vcombine.low %v2255_v16, %v2256_v19 }
 0x3b9   : > { %2435 = vmatmul.mubr.bf16.gmra.mxu1 %v2791_v21  ;;  %v2184_v54 = vpop.permute.xlu0 %2183  ;;  %v1930_v25 = vpop.permute.xlu1 %1929 }
 0x3ba   : > { %2201 = vst.msk [vmem:[#allocation3 + $0x30] sm:$0xf] %vm1434_vm10, %v2184_v54  ;;  %2807 = vmatprep.mubr.msk.bf16.mxu1 %vm800_vm0, %v3190_v50 }
 0x3bb   : > { %1946 = vst.msk [vmem:[#allocation3 + $0x38] sm:$0xf] %vm1174_vm6, %v1930_v25 }
 0x3bd   : > { %v1994_v51 = vpop.permute.xlu1 %1993 }
 0x3be   : > { %2010 = vst.msk [vmem:[#allocation3 + $0x38] sm:$0xf] %vm1239_vm7, %v1994_v51 }
 0x3c1   : > { %v2058_v44 = vpop.permute.xlu1 %2057 }
 0x3c2   : > { %2074 = vst.msk [vmem:[#allocation3 + $0x38] sm:$0xf] %vm1304_vm8, %v2058_v44 }
 0x3c3   : > { %2138 = vst.msk [vmem:[#allocation3 + $0x38] sm:$0xf] %vm1369_vm9, %v3945_v40 }
 0x3c5   : > { %v2186_v17 = vpop.permute.xlu1 %2185 }
 0x3c6   : > { %2202 = vst.msk [vmem:[#allocation3 + $0x38] sm:$0xf] %vm1434_vm10, %v2186_v17 }
 0x3cd   : > { %v3192_v14 = vld [vmem:[#allocation3 + $0x30] ss:$8 sps:$4 sm:$0xff]  }
 0x3ce   : > { %2443 = vmatmul.mubr.bf16.gmra.mxu1 %v3192_v14 }
 0x43f   : > { %v2420_v53 = vpop.f32.mrf.mxu1 }
 0x440   : > { %v2421_v26 = vadd.f32 %v2786_v42, %v2420_v53 }
 0x441   : > { %v2422_v49 = vpop.f32.mrf.mxu1 }
 0x442   : > { %v2451_v10 = vadd.f32 %v2421_v26, %v3545_v6 }
 0x443   : > { %v2423_v7 = vpop.f32.mrf.mxu1 }
 0x444   : > { %v2459_v40 = vmax.f32 %v2451_v10, 0.0  ;;  %v2424_v46 = vadd.f32 %v2786_v42, %v2423_v7 }
 0x445   : > { %v2425_v48 = vpop.f32.mrf.mxu1 }
 0x446   : > { %v2964_v30 = vpack.c.bf16 %v2459_v40, %v2459_v40  ;;  %v2452_v45 = vadd.f32 %v2424_v46, %v3630_v52 }
 0x448   : > { %2499 = vst.msk [vmem:[%s4016_s10] sm:$0xf] %vm979_vm2, %v2964_v30  ;;  %v2460_v15 = vmax.f32 %v2452_v45, 0.0 }
 0x44a   : > { %v2965_v6 = vpack.c.bf16 %v2460_v15, %v2460_v15 }
 0x44c   : > { %2500 = vst.msk [vmem:[%s4016_s10 + $0x4] sm:$0xf] %vm979_vm2, %v2965_v6 }
 0x45d   : > { %v2428_v58 = vpop.f32.mrf.mxu1 }
 0x45e   : > { %v2429_v31 = vadd.f32 %v2786_v42, %v2428_v58 }
 0x45f   : > { %v2430_v39 = vpop.f32.mrf.mxu1 }
 0x460   : > { %v2453_v47 = vadd.f32 %v2429_v31, %v3670_v55 }
 0x461   : > { %v2431_v29 = vpop.f32.mrf.mxu1 }
 0x462   : > { %v2461_v33 = vmax.f32 %v2453_v47, 0.0  ;;  %v2432_v9 = vadd.f32 %v2786_v42, %v2431_v29 }
 0x463   : > { %v2433_v56 = vpop.f32.mrf.mxu1 }
 0x464   : > { %v2966_v60 = vpack.c.bf16 %v2461_v33, %v2461_v33  ;;  %v2454_v52 = vadd.f32 %v2432_v9, %v3694_v8 }
 0x466   : > { %2501 = vst.msk [vmem:[%s4016_s10 + $0x8] sm:$0xf] %vm979_vm2, %v2966_v60  ;;  %v2462_v11 = vmax.f32 %v2454_v52, 0.0 }
 0x468   : > { %v2967_v28 = vpack.c.bf16 %v2462_v11, %v2462_v11 }
 0x46a   : > { %2502 = vst.msk [vmem:[%s4016_s10 + $0xc] sm:$0xf] %vm979_vm2, %v2967_v28 }
 0x479   : > { %v2436_v36 = vpop.f32.mrf.mxu1 }
 0x47a   : > { %v2437_v57 = vadd.f32 %v2786_v42, %v2436_v36 }
 0x47b   : > { %v2438_v59 = vpop.f32.mrf.mxu1 }
 0x47c   : > { %v2455_v55 = vadd.f32 %v2437_v57, %v3704_v3 }
 0x47d   : > { %v2439_v62 = vpop.f32.mrf.mxu1 }
 0x47e   : > { %v2463_v27 = vmax.f32 %v2455_v55, 0.0  ;;  %v2440_v0 = vadd.f32 %v2786_v42, %v2439_v62 }
 0x47f   : > { %v2441_v4 = vpop.f32.mrf.mxu1 }
 0x480   : > { %v2968_v38 = vpack.c.bf16 %v2463_v27, %v2463_v27  ;;  %v2456_v8 = vadd.f32 %v2440_v0, %v3716_v5 }
 0x482   : > { %2503 = vst.msk [vmem:[%s4016_s10 + $0x10] sm:$0xf] %vm979_vm2, %v2968_v38  ;;  %v2464_v24 = vmax.f32 %v2456_v8, 0.0 }
 0x484   : > { %v2969_v32 = vpack.c.bf16 %v2464_v24, %v2464_v24 }
 0x486   : > { %2504 = vst.msk [vmem:[%s4016_s10 + $0x14] sm:$0xf] %vm979_vm2, %v2969_v32 }
 0x48e   : > { %v2444_v34 = vpop.f32.mrf.mxu1 }
 0x48f   : > { %v2445_v1 = vadd.f32 %v2786_v42, %v2444_v34 }
 0x490   : > { %v2446_v2 = vpop.f32.mrf.mxu1 }
 0x491   : > { %v2457_v3 = vadd.f32 %v2445_v1, %v3726_v37 }
 0x492   : > { %v2447_v23 = vpop.f32.mrf.mxu1 }
 0x493   : > { %v2465_v13 = vmax.f32 %v2457_v3, 0.0  ;;  %v2448_v61 = vadd.f32 %v2786_v42, %v2447_v23 }
 0x494   : > { %v2449_v43 = vpop.f32.mrf.mxu1 }
 0x495   : > { %v2970_v41 = vpack.c.bf16 %v2465_v13, %v2465_v13  ;;  %v2458_v18 = vadd.f32 %v2448_v61, %v3738_v35 }
 0x497   : > { %2505 = vst.msk [vmem:[%s4016_s10 + $0x18] sm:$0xf] %vm979_vm2, %v2970_v41  ;;  %v2466_v5 = vmax.f32 %v2458_v18, 0.0 }
 0x499   : > { %v2971_v22 = vpack.c.bf16 %v2466_v5, %v2466_v5 }
 0x49b   : > { %2506 = vst.msk [vmem:[%s4016_s10 + $0x1c] sm:$0xf] %vm979_vm2, %v2971_v22 }
 0x49c PF: > { %s17_s24 = sadd.s32 1, %s3199_s24  }
 0x49d   : > { %p14_p4 = scmp.ge.s32.totalorder %s17_s24, 4  }
 0x49f   :  { %16 = sbr.rel (!%p14_p4) target bundleno = 1 (0x1), region = 80 }

</bundles_post_ra>
